<compile_context>
chip_gen: v7x
topology: tpu7x:2x2x1
jax: 0.10.0
libtpu: 0.0.40
codegen_flags: <defaults>
</compile_context>

<pallas_src>
import jax
import jax.numpy as jnp
from jax import lax
from jax.experimental import pallas as pl
from jax.experimental.pallas import tpu as pltpu


def _sigmoid(x):
    # Exact logistic sigmoid in tanh form: keeps the transcendental on the EUP
    # and avoids a VALU divide on the serial gate path.
    return 0.5 * jnp.tanh(0.5 * x) + 0.5


# ----------------------------- fused model kernel -----------------------------
def _make_fused_lstm_kernel(L, T, Bp, H, vocab_p):
    G = 4 * H            # packed gate group per direction (== 128 lanes)
    TBp = T * Bp

    def kernel(tok_ref, emb_ref, *refs):
        # inputs
        layer_refs = refs[:3 * L]                              # (wih, whh, b) per layer
        h0_ref, c0_ref, fcw_ref, fcb_ref = refs[3 * L:3 * L + 4]
        # outputs
        hn_ref, cn_ref, sig_ref = refs[3 * L + 4:3 * L + 7]
        # VMEM scratch
        act_ref, gin_ref = refs[3 * L + 7:]

        # ---- embedding lookup fused as a one-hot matmul (no XLA gather) -----
        onehot = (tok_ref[...] ==
                  lax.broadcasted_iota(jnp.int32, (TBp, vocab_p), 1)
                  ).astype(jnp.float32)                         # (T*Bp, vocab_p)
        x0 = jnp.dot(onehot, emb_ref[...],
                     preferred_element_type=jnp.float32)        # (T*Bp, EP)

        last_bwd = None
        for l in range(L):
            wih_ref, whh_ref, b_ref = layer_refs[3 * l:3 * l + 3]

            # hoisted input projection for BOTH directions: one big MXU matmul
            xin = x0 if l == 0 else act_ref[...]
            gin_ref[...] = (
                jnp.dot(xin, wih_ref[...], preferred_element_type=jnp.float32)
                + b_ref[...])                                   # (T*Bp, 2*G)

            whh = whh_ref[...]            # (H, 2*G); resident across the loop
            h_fb = h0_ref[l]              # (2*Bp, H): rows 0:Bp fwd, Bp:2Bp bwd
            c_fb = c0_ref[l]

            # TODO(synk): for long sequences switch to lax.fori_loop and hold
            # Whh in the MXU explicitly (pltpu.matmul_push_rhs/_acc_lhs/_pop);
            # at T=8 the static unroll keeps every slice and store static.
            # TODO(synk): on v7x the two directions could be split across the
            # two TensorCores (core_map / parallel leading grid axis).
            for t in range(T):
                rt = T - 1 - t
                # merged recurrent dot for both directions in one matmul
                g_rec = jnp.dot(h_fb, whh,
                                preferred_element_type=jnp.float32)   # (2Bp, 2G)
                g_f = gin_ref[t * Bp:(t + 1) * Bp, 0:G] + g_rec[0:Bp, 0:G]
                g_b = (gin_ref[rt * Bp:(rt + 1) * Bp, G:2 * G]
                       + g_rec[Bp:2 * Bp, G:2 * G])
                g = jnp.concatenate([g_f, g_b], axis=0)               # (2Bp, G)

                i_g = _sigmoid(g[:, 0 * H:1 * H])
                f_g = _sigmoid(g[:, 1 * H:2 * H])
                g_g = jnp.tanh(g[:, 2 * H:3 * H])
                o_g = _sigmoid(g[:, 3 * H:4 * H])
                c_fb = f_g * c_fb + i_g * g_g
                h_fb = o_g * jnp.tanh(c_fb)

                if l < L - 1:      # the last layer's full output is never used
                    act_ref[t * Bp:(t + 1) * Bp, 0:H] = h_fb[0:Bp, :]
                    act_ref[rt * Bp:(rt + 1) * Bp, H:2 * H] = h_fb[Bp:2 * Bp, :]
                if l == L - 1 and t == 0:
                    # backward hidden at time T-1: the only rows that survive
                    # view(B, -1)[:, -1] in the reference tail.
                    last_bwd = h_fb[Bp:2 * Bp, :]

            # final states written once per layer
            hn_ref[l] = h_fb
            cn_ref[l] = c_fb

        # ---- fc + sigmoid epilogue (output padded to 128 lanes) --------------
        sig_ref[...] = _sigmoid(
            jnp.dot(last_bwd, fcw_ref[...], preferred_element_type=jnp.float32)
            + fcb_ref[...])

    return kernel


# -------------------------------- model forward -------------------------------
def lstm_model_forward(tokens, h0, c0, params, hp):
    B, H, L, O = hp['batch'], hp['hidden'], hp['layers'], hp['output']
    T = tokens.shape[1]
    Bp, OP = params['Bp'], params['OP']
    G = 4 * H
    TBp = T * Bp
    emb_pad = params['embedding_pad']
    vocab_p, EP = emb_pad.shape

    # time-major tokens, batch padded to Bp sublanes (pad rows read table row 0)
    tok = jnp.zeros((T, Bp), jnp.int32).at[:, :B].set(tokens.T.astype(jnp.int32))
    tok = tok.reshape(TBp, 1)

    # (L, 2*Bp, H): per layer, rows 0:Bp = forward dir, rows Bp:2Bp = backward
    h0p = jnp.zeros((L, 2, Bp, H), jnp.float32).at[:, :, :B, :].set(
        h0.reshape(L, 2, B, H)).reshape(L, 2 * Bp, H)
    c0p = jnp.zeros((L, 2, Bp, H), jnp.float32).at[:, :, :B, :].set(
        c0.reshape(L, 2, B, H)).reshape(L, 2 * Bp, H)

    inputs = [tok, emb_pad]
    in_specs = [
        pl.BlockSpec((TBp, 1), lambda i: (0, 0)),
        pl.BlockSpec((vocab_p, EP), lambda i: (0, 0)),
    ]
    for wih, whh, bias in params['lstm']:
        inputs += [wih, whh, bias]
        in_specs += [
            pl.BlockSpec(wih.shape, lambda i: (0, 0)),
            pl.BlockSpec(whh.shape, lambda i: (0, 0)),
            pl.BlockSpec(bias.shape, lambda i: (0, 0)),
        ]
    inputs += [h0p, c0p, params['fc_w_pad'], params['fc_b_pad']]
    in_specs += [
        pl.BlockSpec((L, 2 * Bp, H), lambda i: (0, 0, 0)),
        pl.BlockSpec((L, 2 * Bp, H), lambda i: (0, 0, 0)),
        pl.BlockSpec((H, OP), lambda i: (0, 0)),
        pl.BlockSpec((1, OP), lambda i: (0, 0)),
    ]

    grid_spec = pltpu.PrefetchScalarGridSpec(
        num_scalar_prefetch=0,
        grid=(1,),
        in_specs=in_specs,
        out_specs=(
            pl.BlockSpec((L, 2 * Bp, H), lambda i: (0, 0, 0)),
            pl.BlockSpec((L, 2 * Bp, H), lambda i: (0, 0, 0)),
            pl.BlockSpec((Bp, OP), lambda i: (0, 0)),
        ),
        scratch_shapes=[
            pltpu.VMEM((TBp, 2 * H), jnp.float32),   # inter-layer activations
            pltpu.VMEM((TBp, 2 * G), jnp.float32),   # hoisted input projection
        ],
    )
    out_shape = (
        jax.ShapeDtypeStruct((L, 2 * Bp, H), jnp.float32),
        jax.ShapeDtypeStruct((L, 2 * Bp, H), jnp.float32),
        jax.ShapeDtypeStruct((Bp, OP), jnp.float32),
    )
    hn, cn, sig = pl.pallas_call(
        _make_fused_lstm_kernel(L, T, Bp, H, vocab_p),
        out_shape=out_shape,
        grid_spec=grid_spec,
        compiler_params=pltpu.CompilerParams(
            dimension_semantics=("arbitrary",)),
    )(*inputs)

    h_n = hn.reshape(L, 2, Bp, H)[:, :, :B, :].reshape(2 * L, B, H)
    c_n = cn.reshape(L, 2, Bp, H)[:, :, :B, :].reshape(2 * L, B, H)
    p = sig[:B, O - 1]
    return p, (h_n, c_n)


# ----------------------------- deterministic params ---------------------------
def init_params(key, hp, vocab, Bp=8, EP=128, OP=128):
    """PyTorch-style LSTM/fc weights in the packed-gate kernel layout."""
    E, H, O, L = hp['emb'], hp['hidden'], hp['output'], hp['layers']
    G = 4 * H
    assert G == 128, "packed-gate layout assumes 4*hidden == 128 lanes"
    keys = iter(jax.random.split(key, 8 * L + 3))
    params = {'Bp': Bp, 'OP': OP}

    vocab_p = ((vocab + 7) // 8) * 8
    emb = jax.random.normal(next(keys), (vocab, E), jnp.float32)
    params['embedding_pad'] = (
        jnp.zeros((vocab_p, EP), jnp.float32).at[:vocab, :E].set(emb))

    bound = 1.0 / float(H) ** 0.5
    lstm = []
    for layer in range(L):
        din = E if layer == 0 else 2 * H            # fwd-h then bwd-h features
        din_p = EP if layer == 0 else 2 * H
        wih = jnp.zeros((din_p, 2 * G), jnp.float32)   # [fwd gates | bwd gates]
        whh = jnp.zeros((H, 2 * G), jnp.float32)
        bias = jnp.zeros((1, 2 * G), jnp.float32)
        for d in range(2):                          # 0 = forward, 1 = reverse
            w_ih = jax.random.uniform(next(keys), (G, din), jnp.float32, -bound, bound)
            w_hh = jax.random.uniform(next(keys), (G, H), jnp.float32, -bound, bound)
            b_ih = jax.random.uniform(next(keys), (G,), jnp.float32, -bound, bound)
            b_hh = jax.random.uniform(next(keys), (G,), jnp.float32, -bound, bound)
            wih = wih.at[:din, d * G:(d + 1) * G].set(w_ih.T)   # packed i|f|g|o
            whh = whh.at[:, d * G:(d + 1) * G].set(w_hh.T)
            bias = bias.at[0, d * G:(d + 1) * G].set(b_ih + b_hh)
        lstm.append((wih, whh, bias))
    params['lstm'] = lstm

    fc_w = jax.random.uniform(next(keys), (O, H), jnp.float32, -bound, bound)
    fc_b = jax.random.uniform(next(keys), (O,), jnp.float32, -bound, bound)
    params['fc_w_pad'] = jnp.zeros((H, OP), jnp.float32).at[:, :O].set(fc_w.T)
    params['fc_b_pad'] = jnp.zeros((1, OP), jnp.float32).at[0, :O].set(fc_b)
    return params


if __name__ == "__main__":
    hp = dict(hidden=32, output=1, emb=16, layers=2, batch=2, dropout=0.5)
    vocab = 50
    T = 8

    key = jax.random.PRNGKey(0)
    k_params, k_tok, k_h, k_c = jax.random.split(key, 4)
    params = init_params(k_params, hp, vocab)

    tokens = jax.random.randint(k_tok, (hp['batch'], T), 0, vocab)
    h0 = jax.random.normal(k_h, (2 * hp['layers'], hp['batch'], hp['hidden']), jnp.float32)
    c0 = jax.random.normal(k_c, (2 * hp['layers'], hp['batch'], hp['hidden']), jnp.float32)

    fwd = jax.jit(lambda tok, h, c: lstm_model_forward(tok, h, c, params, hp))
    p, (h_n, c_n) = fwd(tokens, h0, c0)
    jax.block_until_ready((p, h_n, c_n))

    assert p.shape == (hp['batch'],)
    assert h_n.shape == (2 * hp['layers'], hp['batch'], hp['hidden'])
    assert c_n.shape == (2 * hp['layers'], hp['batch'], hp['hidden'])
    assert bool(jnp.all(jnp.isfinite(p)))
    print("KERNEL_OK")
</pallas_src>

<mosaic_0001>
module attributes {stable_mosaic.version = 11 : i64} {
  func.func @kernel(%arg0: i32, %arg1: memref<64x1xi32, #tpu.memory_space<vmem>>, %arg2: memref<56x128xf32, #tpu.memory_space<vmem>>, %arg3: memref<128x256xf32, #tpu.memory_space<vmem>>, %arg4: memref<32x256xf32, #tpu.memory_space<vmem>>, %arg5: memref<1x256xf32, #tpu.memory_space<vmem>>, %arg6: memref<64x256xf32, #tpu.memory_space<vmem>>, %arg7: memref<32x256xf32, #tpu.memory_space<vmem>>, %arg8: memref<1x256xf32, #tpu.memory_space<vmem>>, %arg9: memref<2x16x32xf32, #tpu.memory_space<vmem>>, %arg10: memref<2x16x32xf32, #tpu.memory_space<vmem>>, %arg11: memref<32x128xf32, #tpu.memory_space<vmem>>, %arg12: memref<1x128xf32, #tpu.memory_space<vmem>>, %arg13: memref<2x16x32xf32, #tpu.memory_space<vmem>>, %arg14: memref<2x16x32xf32, #tpu.memory_space<vmem>>, %arg15: memref<8x128xf32, #tpu.memory_space<vmem>>, %arg16: memref<64x64xf32, #tpu.memory_space<vmem>>, %arg17: memref<64x256xf32, #tpu.memory_space<vmem>>) attributes {dimension_semantics = [#tpu.dimension_semantics<arbitrary>], iteration_bounds = array<i64: 1>, scalar_prefetch = 0 : i64, scratch_operands = 2 : i64, tpu.core_type = #tpu.core_type<tc>, window_params = [{pipeline_mode = #tpu.pipeline_mode<synchronous>, transform_indices = @transform_0, window_bounds = array<i64: 64, 1>}, {pipeline_mode = #tpu.pipeline_mode<synchronous>, transform_indices = @transform_1, window_bounds = array<i64: 56, 128>}, {pipeline_mode = #tpu.pipeline_mode<synchronous>, transform_indices = @transform_2, window_bounds = array<i64: 128, 256>}, {pipeline_mode = #tpu.pipeline_mode<synchronous>, transform_indices = @transform_3, window_bounds = array<i64: 32, 256>}, {pipeline_mode = #tpu.pipeline_mode<synchronous>, transform_indices = @transform_4, window_bounds = array<i64: 1, 256>}, {pipeline_mode = #tpu.pipeline_mode<synchronous>, transform_indices = @transform_5, window_bounds = array<i64: 64, 256>}, {pipeline_mode = #tpu.pipeline_mode<synchronous>, transform_indices = @transform_6, window_bounds = array<i64: 32, 256>}, {pipeline_mode = #tpu.pipeline_mode<synchronous>, transform_indices = @transform_7, window_bounds = array<i64: 1, 256>}, {pipeline_mode = #tpu.pipeline_mode<synchronous>, transform_indices = @transform_8, window_bounds = array<i64: 2, 16, 32>}, {pipeline_mode = #tpu.pipeline_mode<synchronous>, transform_indices = @transform_9, window_bounds = array<i64: 2, 16, 32>}, {pipeline_mode = #tpu.pipeline_mode<synchronous>, transform_indices = @transform_10, window_bounds = array<i64: 32, 128>}, {pipeline_mode = #tpu.pipeline_mode<synchronous>, transform_indices = @transform_11, window_bounds = array<i64: 1, 128>}, {pipeline_mode = #tpu.pipeline_mode<synchronous>, transform_indices = @transform_12, window_bounds = array<i64: 2, 16, 32>}, {pipeline_mode = #tpu.pipeline_mode<synchronous>, transform_indices = @transform_13, window_bounds = array<i64: 2, 16, 32>}, {pipeline_mode = #tpu.pipeline_mode<synchronous>, transform_indices = @transform_14, window_bounds = array<i64: 8, 128>}]} {
    %c0 = arith.constant 0 : index
    %c0_0 = arith.constant 0 : index
    %0 = vector.load %arg1[%c0, %c0_0] : memref<64x1xi32, #tpu.memory_space<vmem>>, vector<64x1xi32>
    %1 = tpu.iota {dimensions = array<i32: 1>} : vector<64x56xi32>
    %2 = vector.broadcast %0 : vector<64x1xi32> to vector<64x56xi32>
    %3 = arith.cmpi eq, %2, %1 : vector<64x56xi32>
    %4 = arith.extui %3 : vector<64x56xi1> to vector<64x56xi32>
    %5 = arith.sitofp %4 : vector<64x56xi32> to vector<64x56xf32>
    %c0_1 = arith.constant 0 : index
    %c0_2 = arith.constant 0 : index
    %6 = vector.load %arg2[%c0_1, %c0_2] : memref<56x128xf32, #tpu.memory_space<vmem>>, vector<56x128xf32>
    %cst = arith.constant dense<0.000000e+00> : vector<64x128xf32>
    %7 = tpu.matmul %5, %6, %cst {dimension_numbers = #tpu.dot_dimension_numbers<[1], [0], [0], [1], [0, 0, 1, 1], [], []>} : vector<64x56xf32>, vector<56x128xf32>, vector<64x128xf32> -> vector<64x128xf32>
    %c0_3 = arith.constant 0 : index
    %c0_4 = arith.constant 0 : index
    %8 = vector.load %arg3[%c0_3, %c0_4] : memref<128x256xf32, #tpu.memory_space<vmem>>, vector<128x256xf32>
    %cst_5 = arith.constant dense<0.000000e+00> : vector<64x256xf32>
    %9 = tpu.matmul %7, %8, %cst_5 {dimension_numbers = #tpu.dot_dimension_numbers<[1], [0], [0], [1], [0, 0, 1, 1], [], []>} : vector<64x128xf32>, vector<128x256xf32>, vector<64x256xf32> -> vector<64x256xf32>
    %c0_6 = arith.constant 0 : index
    %c0_7 = arith.constant 0 : index
    %10 = vector.load %arg5[%c0_6, %c0_7] : memref<1x256xf32, #tpu.memory_space<vmem>>, vector<1x256xf32>
    %11 = vector.broadcast %10 : vector<1x256xf32> to vector<64x256xf32>
    %12 = arith.addf %9, %11 : vector<64x256xf32>
    %c0_8 = arith.constant 0 : index
    %c0_9 = arith.constant 0 : index
    %13 = vector.load %arg17[%c0_8, %c0_9] : memref<64x256xf32, #tpu.memory_space<vmem>>, vector<64x256xf32>
    tpu.vector_store %arg17[%c0_8, %c0_9], %12 {strides = array<i32>} : memref<64x256xf32, #tpu.memory_space<vmem>>, vector<64x256xf32>,
    %c0_10 = arith.constant 0 : index
    %c0_11 = arith.constant 0 : index
    %14 = vector.load %arg4[%c0_10, %c0_11] : memref<32x256xf32, #tpu.memory_space<vmem>>, vector<32x256xf32>
    %c0_12 = arith.constant 0 : index
    %c0_13 = arith.constant 0 : index
    %c0_14 = arith.constant 0 : index
    %15 = vector.load %arg9[%c0_12, %c0_13, %c0_14] : memref<2x16x32xf32, #tpu.memory_space<vmem>>, vector<1x16x32xf32>
    %16 = vector.shape_cast %15 : vector<1x16x32xf32> to vector<16x32xf32>
    %c0_15 = arith.constant 0 : index
    %c0_16 = arith.constant 0 : index
    %c0_17 = arith.constant 0 : index
    %17 = vector.load %arg10[%c0_15, %c0_16, %c0_17] : memref<2x16x32xf32, #tpu.memory_space<vmem>>, vector<1x16x32xf32>
    %18 = vector.shape_cast %17 : vector<1x16x32xf32> to vector<16x32xf32>
    %cst_18 = arith.constant dense<0.000000e+00> : vector<16x256xf32>
    %19 = tpu.matmul %16, %14, %cst_18 {dimension_numbers = #tpu.dot_dimension_numbers<[1], [0], [0], [1], [0, 0, 1, 1], [], []>} : vector<16x32xf32>, vector<32x256xf32>, vector<16x256xf32> -> vector<16x256xf32>
    %c0_19 = arith.constant 0 : index
    %c0_20 = arith.constant 0 : index
    %20 = vector.load %arg17[%c0_19, %c0_20] : memref<64x256xf32, #tpu.memory_space<vmem>>, vector<8x128xf32>
    %21 = vector.extract_strided_slice %19 {offsets = [0, 0], sizes = [8, 128], strides = [1, 1]} : vector<16x256xf32> to vector<8x128xf32>
    %22 = arith.addf %20, %21 : vector<8x128xf32>
    %c56 = arith.constant 56 : index
    %c128 = arith.constant 128 : index
    %23 = vector.load %arg17[%c56, %c128] : memref<64x256xf32, #tpu.memory_space<vmem>>, vector<8x128xf32>
    %24 = vector.extract_strided_slice %19 {offsets = [8, 128], sizes = [8, 128], strides = [1, 1]} : vector<16x256xf32> to vector<8x128xf32>
    %25 = arith.addf %23, %24 : vector<8x128xf32>
    %26 = tpu.concatenate %22, %25 in 0 : vector<8x128xf32>, vector<8x128xf32> -> vector<16x128xf32>
    %27 = vector.extract_strided_slice %26 {offsets = [0, 0], sizes = [16, 32], strides = [1, 1]} : vector<16x128xf32> to vector<16x32xf32>
    %cst_21 = arith.constant 5.000000e-01 : f32
    %28 = vector.broadcast %cst_21 : f32 to vector<16x32xf32>
    %29 = arith.mulf %28, %27 : vector<16x32xf32>
    %30 = math.tanh %29 : vector<16x32xf32>
    %cst_22 = arith.constant 5.000000e-01 : f32
    %31 = vector.broadcast %cst_22 : f32 to vector<16x32xf32>
    %32 = arith.mulf %31, %30 : vector<16x32xf32>
    %cst_23 = arith.constant 5.000000e-01 : f32
    %33 = vector.broadcast %cst_23 : f32 to vector<16x32xf32>
    %34 = arith.addf %32, %33 : vector<16x32xf32>
    %35 = vector.extract_strided_slice %26 {offsets = [0, 32], sizes = [16, 32], strides = [1, 1]} : vector<16x128xf32> to vector<16x32xf32>
    %cst_24 = arith.constant 5.000000e-01 : f32
    %36 = vector.broadcast %cst_24 : f32 to vector<16x32xf32>
    %37 = arith.mulf %36, %35 : vector<16x32xf32>
    %38 = math.tanh %37 : vector<16x32xf32>
    %cst_25 = arith.constant 5.000000e-01 : f32
    %39 = vector.broadcast %cst_25 : f32 to vector<16x32xf32>
    %40 = arith.mulf %39, %38 : vector<16x32xf32>
    %cst_26 = arith.constant 5.000000e-01 : f32
    %41 = vector.broadcast %cst_26 : f32 to vector<16x32xf32>
    %42 = arith.addf %40, %41 : vector<16x32xf32>
    %43 = vector.extract_strided_slice %26 {offsets = [0, 64], sizes = [16, 32], strides = [1, 1]} : vector<16x128xf32> to vector<16x32xf32>
    %44 = math.tanh %43 : vector<16x32xf32>
    %45 = vector.extract_strided_slice %26 {offsets = [0, 96], sizes = [16, 32], strides = [1, 1]} : vector<16x128xf32> to vector<16x32xf32>
    %cst_27 = arith.constant 5.000000e-01 : f32
    %46 = vector.broadcast %cst_27 : f32 to vector<16x32xf32>
    %47 = arith.mulf %46, %45 : vector<16x32xf32>
    %48 = math.tanh %47 : vector<16x32xf32>
    %cst_28 = arith.constant 5.000000e-01 : f32
    %49 = vector.broadcast %cst_28 : f32 to vector<16x32xf32>
    %50 = arith.mulf %49, %48 : vector<16x32xf32>
    %cst_29 = arith.constant 5.000000e-01 : f32
    %51 = vector.broadcast %cst_29 : f32 to vector<16x32xf32>
    %52 = arith.addf %50, %51 : vector<16x32xf32>
    %53 = arith.mulf %42, %18 : vector<16x32xf32>
    %54 = arith.mulf %34, %44 : vector<16x32xf32>
    %55 = arith.addf %53, %54 : vector<16x32xf32>
    %56 = math.tanh %55 : vector<16x32xf32>
    %57 = arith.mulf %52, %56 : vector<16x32xf32>
    %58 = vector.extract_strided_slice %57 {offsets = [0, 0], sizes = [8, 32], strides = [1, 1]} : vector<16x32xf32> to vector<8x32xf32>
    %c0_30 = arith.constant 0 : index
    %c0_31 = arith.constant 0 : index
    %59 = vector.load %arg16[%c0_30, %c0_31] : memref<64x64xf32, #tpu.memory_space<vmem>>, vector<8x32xf32>
    tpu.vector_store %arg16[%c0_30, %c0_31], %58 {strides = array<i32>} : memref<64x64xf32, #tpu.memory_space<vmem>>, vector<8x32xf32>,
    %60 = vector.extract_strided_slice %57 {offsets = [8, 0], sizes = [8, 32], strides = [1, 1]} : vector<16x32xf32> to vector<8x32xf32>
    %c56_32 = arith.constant 56 : index
    %c32 = arith.constant 32 : index
    %61 = vector.load %arg16[%c56_32, %c32] : memref<64x64xf32, #tpu.memory_space<vmem>>, vector<8x32xf32>
    tpu.vector_store %arg16[%c56_32, %c32], %60 {strides = array<i32>} : memref<64x64xf32, #tpu.memory_space<vmem>>, vector<8x32xf32>,
    %cst_33 = arith.constant dense<0.000000e+00> : vector<16x256xf32>
    %62 = tpu.matmul %57, %14, %cst_33 {dimension_numbers = #tpu.dot_dimension_numbers<[1], [0], [0], [1], [0, 0, 1, 1], [], []>} : vector<16x32xf32>, vector<32x256xf32>, vector<16x256xf32> -> vector<16x256xf32>
    %c8 = arith.constant 8 : index
    %c0_34 = arith.constant 0 : index
    %63 = vector.load %arg17[%c8, %c0_34] : memref<64x256xf32, #tpu.memory_space<vmem>>, vector<8x128xf32>
    %64 = vector.extract_strided_slice %62 {offsets = [0, 0], sizes = [8, 128], strides = [1, 1]} : vector<16x256xf32> to vector<8x128xf32>
    %65 = arith.addf %63, %64 : vector<8x128xf32>
    %c48 = arith.constant 48 : index
    %c128_35 = arith.constant 128 : index
    %66 = vector.load %arg17[%c48, %c128_35] : memref<64x256xf32, #tpu.memory_space<vmem>>, vector<8x128xf32>
    %67 = vector.extract_strided_slice %62 {offsets = [8, 128], sizes = [8, 128], strides = [1, 1]} : vector<16x256xf32> to vector<8x128xf32>
    %68 = arith.addf %66, %67 : vector<8x128xf32>
    %69 = tpu.concatenate %65, %68 in 0 : vector<8x128xf32>, vector<8x128xf32> -> vector<16x128xf32>
    %70 = vector.extract_strided_slice %69 {offsets = [0, 0], sizes = [16, 32], strides = [1, 1]} : vector<16x128xf32> to vector<16x32xf32>
    %cst_36 = arith.constant 5.000000e-01 : f32
    %71 = vector.broadcast %cst_36 : f32 to vector<16x32xf32>
    %72 = arith.mulf %71, %70 : vector<16x32xf32>
    %73 = math.tanh %72 : vector<16x32xf32>
    %cst_37 = arith.constant 5.000000e-01 : f32
    %74 = vector.broadcast %cst_37 : f32 to vector<16x32xf32>
    %75 = arith.mulf %74, %73 : vector<16x32xf32>
    %cst_38 = arith.constant 5.000000e-01 : f32
    %76 = vector.broadcast %cst_38 : f32 to vector<16x32xf32>
    %77 = arith.addf %75, %76 : vector<16x32xf32>
    %78 = vector.extract_strided_slice %69 {offsets = [0, 32], sizes = [16, 32], strides = [1, 1]} : vector<16x128xf32> to vector<16x32xf32>
    %cst_39 = arith.constant 5.000000e-01 : f32
    %79 = vector.broadcast %cst_39 : f32 to vector<16x32xf32>
    %80 = arith.mulf %79, %78 : vector<16x32xf32>
    %81 = math.tanh %80 : vector<16x32xf32>
    %cst_40 = arith.constant 5.000000e-01 : f32
    %82 = vector.broadcast %cst_40 : f32 to vector<16x32xf32>
    %83 = arith.mulf %82, %81 : vector<16x32xf32>
    %cst_41 = arith.constant 5.000000e-01 : f32
    %84 = vector.broadcast %cst_41 : f32 to vector<16x32xf32>
    %85 = arith.addf %83, %84 : vector<16x32xf32>
    %86 = vector.extract_strided_slice %69 {offsets = [0, 64], sizes = [16, 32], strides = [1, 1]} : vector<16x128xf32> to vector<16x32xf32>
    %87 = math.tanh %86 : vector<16x32xf32>
    %88 = vector.extract_strided_slice %69 {offsets = [0, 96], sizes = [16, 32], strides = [1, 1]} : vector<16x128xf32> to vector<16x32xf32>
    %cst_42 = arith.constant 5.000000e-01 : f32
    %89 = vector.broadcast %cst_42 : f32 to vector<16x32xf32>
    %90 = arith.mulf %89, %88 : vector<16x32xf32>
    %91 = math.tanh %90 : vector<16x32xf32>
    %cst_43 = arith.constant 5.000000e-01 : f32
    %92 = vector.broadcast %cst_43 : f32 to vector<16x32xf32>
    %93 = arith.mulf %92, %91 : vector<16x32xf32>
    %cst_44 = arith.constant 5.000000e-01 : f32
    %94 = vector.broadcast %cst_44 : f32 to vector<16x32xf32>
    %95 = arith.addf %93, %94 : vector<16x32xf32>
    %96 = arith.mulf %85, %55 : vector<16x32xf32>
    %97 = arith.mulf %77, %87 : vector<16x32xf32>
    %98 = arith.addf %96, %97 : vector<16x32xf32>
    %99 = math.tanh %98 : vector<16x32xf32>
    %100 = arith.mulf %95, %99 : vector<16x32xf32>
    %101 = vector.extract_strided_slice %100 {offsets = [0, 0], sizes = [8, 32], strides = [1, 1]} : vector<16x32xf32> to vector<8x32xf32>
    %c8_45 = arith.constant 8 : index
    %c0_46 = arith.constant 0 : index
    %102 = vector.load %arg16[%c8_45, %c0_46] : memref<64x64xf32, #tpu.memory_space<vmem>>, vector<8x32xf32>
    tpu.vector_store %arg16[%c8_45, %c0_46], %101 {strides = array<i32>} : memref<64x64xf32, #tpu.memory_space<vmem>>, vector<8x32xf32>,
    %103 = vector.extract_strided_slice %100 {offsets = [8, 0], sizes = [8, 32], strides = [1, 1]} : vector<16x32xf32> to vector<8x32xf32>
    %c48_47 = arith.constant 48 : index
    %c32_48 = arith.constant 32 : index
    %104 = vector.load %arg16[%c48_47, %c32_48] : memref<64x64xf32, #tpu.memory_space<vmem>>, vector<8x32xf32>
    tpu.vector_store %arg16[%c48_47, %c32_48], %103 {strides = array<i32>} : memref<64x64xf32, #tpu.memory_space<vmem>>, vector<8x32xf32>,
    %cst_49 = arith.constant dense<0.000000e+00> : vector<16x256xf32>
    %105 = tpu.matmul %100, %14, %cst_49 {dimension_numbers = #tpu.dot_dimension_numbers<[1], [0], [0], [1], [0, 0, 1, 1], [], []>} : vector<16x32xf32>, vector<32x256xf32>, vector<16x256xf32> -> vector<16x256xf32>
    %c16 = arith.constant 16 : index
    %c0_50 = arith.constant 0 : index
    %106 = vector.load %arg17[%c16, %c0_50] : memref<64x256xf32, #tpu.memory_space<vmem>>, vector<8x128xf32>
    %107 = vector.extract_strided_slice %105 {offsets = [0, 0], sizes = [8, 128], strides = [1, 1]} : vector<16x256xf32> to vector<8x128xf32>
    %108 = arith.addf %106, %107 : vector<8x128xf32>
    %c40 = arith.constant 40 : index
    %c128_51 = arith.constant 128 : index
    %109 = vector.load %arg17[%c40, %c128_51] : memref<64x256xf32, #tpu.memory_space<vmem>>, vector<8x128xf32>
    %110 = vector.extract_strided_slice %105 {offsets = [8, 128], sizes = [8, 128], strides = [1, 1]} : vector<16x256xf32> to vector<8x128xf32>
    %111 = arith.addf %109, %110 : vector<8x128xf32>
    %112 = tpu.concatenate %108, %111 in 0 : vector<8x128xf32>, vector<8x128xf32> -> vector<16x128xf32>
    %113 = vector.extract_strided_slice %112 {offsets = [0, 0], sizes = [16, 32], strides = [1, 1]} : vector<16x128xf32> to vector<16x32xf32>
    %cst_52 = arith.constant 5.000000e-01 : f32
    %114 = vector.broadcast %cst_52 : f32 to vector<16x32xf32>
    %115 = arith.mulf %114, %113 : vector<16x32xf32>
    %116 = math.tanh %115 : vector<16x32xf32>
    %cst_53 = arith.constant 5.000000e-01 : f32
    %117 = vector.broadcast %cst_53 : f32 to vector<16x32xf32>
    %118 = arith.mulf %117, %116 : vector<16x32xf32>
    %cst_54 = arith.constant 5.000000e-01 : f32
    %119 = vector.broadcast %cst_54 : f32 to vector<16x32xf32>
    %120 = arith.addf %118, %119 : vector<16x32xf32>
    %121 = vector.extract_strided_slice %112 {offsets = [0, 32], sizes = [16, 32], strides = [1, 1]} : vector<16x128xf32> to vector<16x32xf32>
    %cst_55 = arith.constant 5.000000e-01 : f32
    %122 = vector.broadcast %cst_55 : f32 to vector<16x32xf32>
    %123 = arith.mulf %122, %121 : vector<16x32xf32>
    %124 = math.tanh %123 : vector<16x32xf32>
    %cst_56 = arith.constant 5.000000e-01 : f32
    %125 = vector.broadcast %cst_56 : f32 to vector<16x32xf32>
    %126 = arith.mulf %125, %124 : vector<16x32xf32>
    %cst_57 = arith.constant 5.000000e-01 : f32
    %127 = vector.broadcast %cst_57 : f32 to vector<16x32xf32>
    %128 = arith.addf %126, %127 : vector<16x32xf32>
    %129 = vector.extract_strided_slice %112 {offsets = [0, 64], sizes = [16, 32], strides = [1, 1]} : vector<16x128xf32> to vector<16x32xf32>
    %130 = math.tanh %129 : vector<16x32xf32>
    %131 = vector.extract_strided_slice %112 {offsets = [0, 96], sizes = [16, 32], strides = [1, 1]} : vector<16x128xf32> to vector<16x32xf32>
    %cst_58 = arith.constant 5.000000e-01 : f32
    %132 = vector.broadcast %cst_58 : f32 to vector<16x32xf32>
    %133 = arith.mulf %132, %131 : vector<16x32xf32>
    %134 = math.tanh %133 : vector<16x32xf32>
    %cst_59 = arith.constant 5.000000e-01 : f32
    %135 = vector.broadcast %cst_59 : f32 to vector<16x32xf32>
    %136 = arith.mulf %135, %134 : vector<16x32xf32>
    %cst_60 = arith.constant 5.000000e-01 : f32
    %137 = vector.broadcast %cst_60 : f32 to vector<16x32xf32>
    %138 = arith.addf %136, %137 : vector<16x32xf32>
    %139 = arith.mulf %128, %98 : vector<16x32xf32>
    %140 = arith.mulf %120, %130 : vector<16x32xf32>
    %141 = arith.addf %139, %140 : vector<16x32xf32>
    %142 = math.tanh %141 : vector<16x32xf32>
    %143 = arith.mulf %138, %142 : vector<16x32xf32>
    %144 = vector.extract_strided_slice %143 {offsets = [0, 0], sizes = [8, 32], strides = [1, 1]} : vector<16x32xf32> to vector<8x32xf32>
    %c16_61 = arith.constant 16 : index
    %c0_62 = arith.constant 0 : index
    %145 = vector.load %arg16[%c16_61, %c0_62] : memref<64x64xf32, #tpu.memory_space<vmem>>, vector<8x32xf32>
    tpu.vector_store %arg16[%c16_61, %c0_62], %144 {strides = array<i32>} : memref<64x64xf32, #tpu.memory_space<vmem>>, vector<8x32xf32>,
    %146 = vector.extract_strided_slice %143 {offsets = [8, 0], sizes = [8, 32], strides = [1, 1]} : vector<16x32xf32> to vector<8x32xf32>
    %c40_63 = arith.constant 40 : index
    %c32_64 = arith.constant 32 : index
    %147 = vector.load %arg16[%c40_63, %c32_64] : memref<64x64xf32, #tpu.memory_space<vmem>>, vector<8x32xf32>
    tpu.vector_store %arg16[%c40_63, %c32_64], %146 {strides = array<i32>} : memref<64x64xf32, #tpu.memory_space<vmem>>, vector<8x32xf32>,
    %cst_65 = arith.constant dense<0.000000e+00> : vector<16x256xf32>
    %148 = tpu.matmul %143, %14, %cst_65 {dimension_numbers = #tpu.dot_dimension_numbers<[1], [0], [0], [1], [0, 0, 1, 1], [], []>} : vector<16x32xf32>, vector<32x256xf32>, vector<16x256xf32> -> vector<16x256xf32>
    %c24 = arith.constant 24 : index
    %c0_66 = arith.constant 0 : index
    %149 = vector.load %arg17[%c24, %c0_66] : memref<64x256xf32, #tpu.memory_space<vmem>>, vector<8x128xf32>
    %150 = vector.extract_strided_slice %148 {offsets = [0, 0], sizes = [8, 128], strides = [1, 1]} : vector<16x256xf32> to vector<8x128xf32>
    %151 = arith.addf %149, %150 : vector<8x128xf32>
    %c32_67 = arith.constant 32 : index
    %c128_68 = arith.constant 128 : index
    %152 = vector.load %arg17[%c32_67, %c128_68] : memref<64x256xf32, #tpu.memory_space<vmem>>, vector<8x128xf32>
    %153 = vector.extract_strided_slice %148 {offsets = [8, 128], sizes = [8, 128], strides = [1, 1]} : vector<16x256xf32> to vector<8x128xf32>
    %154 = arith.addf %152, %153 : vector<8x128xf32>
    %155 = tpu.concatenate %151, %154 in 0 : vector<8x128xf32>, vector<8x128xf32> -> vector<16x128xf32>
    %156 = vector.extract_strided_slice %155 {offsets = [0, 0], sizes = [16, 32], strides = [1, 1]} : vector<16x128xf32> to vector<16x32xf32>
    %cst_69 = arith.constant 5.000000e-01 : f32
    %157 = vector.broadcast %cst_69 : f32 to vector<16x32xf32>
    %158 = arith.mulf %157, %156 : vector<16x32xf32>
    %159 = math.tanh %158 : vector<16x32xf32>
    %cst_70 = arith.constant 5.000000e-01 : f32
    %160 = vector.broadcast %cst_70 : f32 to vector<16x32xf32>
    %161 = arith.mulf %160, %159 : vector<16x32xf32>
    %cst_71 = arith.constant 5.000000e-01 : f32
    %162 = vector.broadcast %cst_71 : f32 to vector<16x32xf32>
    %163 = arith.addf %161, %162 : vector<16x32xf32>
    %164 = vector.extract_strided_slice %155 {offsets = [0, 32], sizes = [16, 32], strides = [1, 1]} : vector<16x128xf32> to vector<16x32xf32>
    %cst_72 = arith.constant 5.000000e-01 : f32
    %165 = vector.broadcast %cst_72 : f32 to vector<16x32xf32>
    %166 = arith.mulf %165, %164 : vector<16x32xf32>
    %167 = math.tanh %166 : vector<16x32xf32>
    %cst_73 = arith.constant 5.000000e-01 : f32
    %168 = vector.broadcast %cst_73 : f32 to vector<16x32xf32>
    %169 = arith.mulf %168, %167 : vector<16x32xf32>
    %cst_74 = arith.constant 5.000000e-01 : f32
    %170 = vector.broadcast %cst_74 : f32 to vector<16x32xf32>
    %171 = arith.addf %169, %170 : vector<16x32xf32>
    %172 = vector.extract_strided_slice %155 {offsets = [0, 64], sizes = [16, 32], strides = [1, 1]} : vector<16x128xf32> to vector<16x32xf32>
    %173 = math.tanh %172 : vector<16x32xf32>
    %174 = vector.extract_strided_slice %155 {offsets = [0, 96], sizes = [16, 32], strides = [1, 1]} : vector<16x128xf32> to vector<16x32xf32>
    %cst_75 = arith.constant 5.000000e-01 : f32
    %175 = vector.broadcast %cst_75 : f32 to vector<16x32xf32>
    %176 = arith.mulf %175, %174 : vector<16x32xf32>
    %177 = math.tanh %176 : vector<16x32xf32>
    %cst_76 = arith.constant 5.000000e-01 : f32
    %178 = vector.broadcast %cst_76 : f32 to vector<16x32xf32>
    %179 = arith.mulf %178, %177 : vector<16x32xf32>
    %cst_77 = arith.constant 5.000000e-01 : f32
    %180 = vector.broadcast %cst_77 : f32 to vector<16x32xf32>
    %181 = arith.addf %179, %180 : vector<16x32xf32>
    %182 = arith.mulf %171, %141 : vector<16x32xf32>
    %183 = arith.mulf %163, %173 : vector<16x32xf32>
    %184 = arith.addf %182, %183 : vector<16x32xf32>
    %185 = math.tanh %184 : vector<16x32xf32>
    %186 = arith.mulf %181, %185 : vector<16x32xf32>
    %187 = vector.extract_strided_slice %186 {offsets = [0, 0], sizes = [8, 32], strides = [1, 1]} : vector<16x32xf32> to vector<8x32xf32>
    %c24_78 = arith.constant 24 : index
    %c0_79 = arith.constant 0 : index
    %188 = vector.load %arg16[%c24_78, %c0_79] : memref<64x64xf32, #tpu.memory_space<vmem>>, vector<8x32xf32>
    tpu.vector_store %arg16[%c24_78, %c0_79], %187 {strides = array<i32>} : memref<64x64xf32, #tpu.memory_space<vmem>>, vector<8x32xf32>,
    %189 = vector.extract_strided_slice %186 {offsets = [8, 0], sizes = [8, 32], strides = [1, 1]} : vector<16x32xf32> to vector<8x32xf32>
    %c32_80 = arith.constant 32 : index
    %c32_81 = arith.constant 32 : index
    %190 = vector.load %arg16[%c32_80, %c32_81] : memref<64x64xf32, #tpu.memory_space<vmem>>, vector<8x32xf32>
    tpu.vector_store %arg16[%c32_80, %c32_81], %189 {strides = array<i32>} : memref<64x64xf32, #tpu.memory_space<vmem>>, vector<8x32xf32>,
    %cst_82 = arith.constant dense<0.000000e+00> : vector<16x256xf32>
    %191 = tpu.matmul %186, %14, %cst_82 {dimension_numbers = #tpu.dot_dimension_numbers<[1], [0], [0], [1], [0, 0, 1, 1], [], []>} : vector<16x32xf32>, vector<32x256xf32>, vector<16x256xf32> -> vector<16x256xf32>
    %c32_83 = arith.constant 32 : index
    %c0_84 = arith.constant 0 : index
    %192 = vector.load %arg17[%c32_83, %c0_84] : memref<64x256xf32, #tpu.memory_space<vmem>>, vector<8x128xf32>
    %193 = vector.extract_strided_slice %191 {offsets = [0, 0], sizes = [8, 128], strides = [1, 1]} : vector<16x256xf32> to vector<8x128xf32>
    %194 = arith.addf %192, %193 : vector<8x128xf32>
    %c24_85 = arith.constant 24 : index
    %c128_86 = arith.constant 128 : index
    %195 = vector.load %arg17[%c24_85, %c128_86] : memref<64x256xf32, #tpu.memory_space<vmem>>, vector<8x128xf32>
    %196 = vector.extract_strided_slice %191 {offsets = [8, 128], sizes = [8, 128], strides = [1, 1]} : vector<16x256xf32> to vector<8x128xf32>
    %197 = arith.addf %195, %196 : vector<8x128xf32>
    %198 = tpu.concatenate %194, %197 in 0 : vector<8x128xf32>, vector<8x128xf32> -> vector<16x128xf32>
    %199 = vector.extract_strided_slice %198 {offsets = [0, 0], sizes = [16, 32], strides = [1, 1]} : vector<16x128xf32> to vector<16x32xf32>
    %cst_87 = arith.constant 5.000000e-01 : f32
    %200 = vector.broadcast %cst_87 : f32 to vector<16x32xf32>
    %201 = arith.mulf %200, %199 : vector<16x32xf32>
    %202 = math.tanh %201 : vector<16x32xf32>
    %cst_88 = arith.constant 5.000000e-01 : f32
    %203 = vector.broadcast %cst_88 : f32 to vector<16x32xf32>
    %204 = arith.mulf %203, %202 : vector<16x32xf32>
    %cst_89 = arith.constant 5.000000e-01 : f32
    %205 = vector.broadcast %cst_89 : f32 to vector<16x32xf32>
    %206 = arith.addf %204, %205 : vector<16x32xf32>
    %207 = vector.extract_strided_slice %198 {offsets = [0, 32], sizes = [16, 32], strides = [1, 1]} : vector<16x128xf32> to vector<16x32xf32>
    %cst_90 = arith.constant 5.000000e-01 : f32
    %208 = vector.broadcast %cst_90 : f32 to vector<16x32xf32>
    %209 = arith.mulf %208, %207 : vector<16x32xf32>
    %210 = math.tanh %209 : vector<16x32xf32>
    %cst_91 = arith.constant 5.000000e-01 : f32
    %211 = vector.broadcast %cst_91 : f32 to vector<16x32xf32>
    %212 = arith.mulf %211, %210 : vector<16x32xf32>
    %cst_92 = arith.constant 5.000000e-01 : f32
    %213 = vector.broadcast %cst_92 : f32 to vector<16x32xf32>
    %214 = arith.addf %212, %213 : vector<16x32xf32>
    %215 = vector.extract_strided_slice %198 {offsets = [0, 64], sizes = [16, 32], strides = [1, 1]} : vector<16x128xf32> to vector<16x32xf32>
    %216 = math.tanh %215 : vector<16x32xf32>
    %217 = vector.extract_strided_slice %198 {offsets = [0, 96], sizes = [16, 32], strides = [1, 1]} : vector<16x128xf32> to vector<16x32xf32>
    %cst_93 = arith.constant 5.000000e-01 : f32
    %218 = vector.broadcast %cst_93 : f32 to vector<16x32xf32>
    %219 = arith.mulf %218, %217 : vector<16x32xf32>
    %220 = math.tanh %219 : vector<16x32xf32>
    %cst_94 = arith.constant 5.000000e-01 : f32
    %221 = vector.broadcast %cst_94 : f32 to vector<16x32xf32>
    %222 = arith.mulf %221, %220 : vector<16x32xf32>
    %cst_95 = arith.constant 5.000000e-01 : f32
    %223 = vector.broadcast %cst_95 : f32 to vector<16x32xf32>
    %224 = arith.addf %222, %223 : vector<16x32xf32>
    %225 = arith.mulf %214, %184 : vector<16x32xf32>
    %226 = arith.mulf %206, %216 : vector<16x32xf32>
    %227 = arith.addf %225, %226 : vector<16x32xf32>
    %228 = math.tanh %227 : vector<16x32xf32>
    %229 = arith.mulf %224, %228 : vector<16x32xf32>
    %230 = vector.extract_strided_slice %229 {offsets = [0, 0], sizes = [8, 32], strides = [1, 1]} : vector<16x32xf32> to vector<8x32xf32>
    %c32_96 = arith.constant 32 : index
    %c0_97 = arith.constant 0 : index
    %231 = vector.load %arg16[%c32_96, %c0_97] : memref<64x64xf32, #tpu.memory_space<vmem>>, vector<8x32xf32>
    tpu.vector_store %arg16[%c32_96, %c0_97], %230 {strides = array<i32>} : memref<64x64xf32, #tpu.memory_space<vmem>>, vector<8x32xf32>,
    %232 = vector.extract_strided_slice %229 {offsets = [8, 0], sizes = [8, 32], strides = [1, 1]} : vector<16x32xf32> to vector<8x32xf32>
    %c24_98 = arith.constant 24 : index
    %c32_99 = arith.constant 32 : index
    %233 = vector.load %arg16[%c24_98, %c32_99] : memref<64x64xf32, #tpu.memory_space<vmem>>, vector<8x32xf32>
    tpu.vector_store %arg16[%c24_98, %c32_99], %232 {strides = array<i32>} : memref<64x64xf32, #tpu.memory_space<vmem>>, vector<8x32xf32>,
    %cst_100 = arith.constant dense<0.000000e+00> : vector<16x256xf32>
    %234 = tpu.matmul %229, %14, %cst_100 {dimension_numbers = #tpu.dot_dimension_numbers<[1], [0], [0], [1], [0, 0, 1, 1], [], []>} : vector<16x32xf32>, vector<32x256xf32>, vector<16x256xf32> -> vector<16x256xf32>
    %c40_101 = arith.constant 40 : index
    %c0_102 = arith.constant 0 : index
    %235 = vector.load %arg17[%c40_101, %c0_102] : memref<64x256xf32, #tpu.memory_space<vmem>>, vector<8x128xf32>
    %236 = vector.extract_strided_slice %234 {offsets = [0, 0], sizes = [8, 128], strides = [1, 1]} : vector<16x256xf32> to vector<8x128xf32>
    %237 = arith.addf %235, %236 : vector<8x128xf32>
    %c16_103 = arith.constant 16 : index
    %c128_104 = arith.constant 128 : index
    %238 = vector.load %arg17[%c16_103, %c128_104] : memref<64x256xf32, #tpu.memory_space<vmem>>, vector<8x128xf32>
    %239 = vector.extract_strided_slice %234 {offsets = [8, 128], sizes = [8, 128], strides = [1, 1]} : vector<16x256xf32> to vector<8x128xf32>
    %240 = arith.addf %238, %239 : vector<8x128xf32>
    %241 = tpu.concatenate %237, %240 in 0 : vector<8x128xf32>, vector<8x128xf32> -> vector<16x128xf32>
    %242 = vector.extract_strided_slice %241 {offsets = [0, 0], sizes = [16, 32], strides = [1, 1]} : vector<16x128xf32> to vector<16x32xf32>
    %cst_105 = arith.constant 5.000000e-01 : f32
    %243 = vector.broadcast %cst_105 : f32 to vector<16x32xf32>
    %244 = arith.mulf %243, %242 : vector<16x32xf32>
    %245 = math.tanh %244 : vector<16x32xf32>
    %cst_106 = arith.constant 5.000000e-01 : f32
    %246 = vector.broadcast %cst_106 : f32 to vector<16x32xf32>
    %247 = arith.mulf %246, %245 : vector<16x32xf32>
    %cst_107 = arith.constant 5.000000e-01 : f32
    %248 = vector.broadcast %cst_107 : f32 to vector<16x32xf32>
    %249 = arith.addf %247, %248 : vector<16x32xf32>
    %250 = vector.extract_strided_slice %241 {offsets = [0, 32], sizes = [16, 32], strides = [1, 1]} : vector<16x128xf32> to vector<16x32xf32>
    %cst_108 = arith.constant 5.000000e-01 : f32
    %251 = vector.broadcast %cst_108 : f32 to vector<16x32xf32>
    %252 = arith.mulf %251, %250 : vector<16x32xf32>
    %253 = math.tanh %252 : vector<16x32xf32>
    %cst_109 = arith.constant 5.000000e-01 : f32
    %254 = vector.broadcast %cst_109 : f32 to vector<16x32xf32>
    %255 = arith.mulf %254, %253 : vector<16x32xf32>
    %cst_110 = arith.constant 5.000000e-01 : f32
    %256 = vector.broadcast %cst_110 : f32 to vector<16x32xf32>
    %257 = arith.addf %255, %256 : vector<16x32xf32>
    %258 = vector.extract_strided_slice %241 {offsets = [0, 64], sizes = [16, 32], strides = [1, 1]} : vector<16x128xf32> to vector<16x32xf32>
    %259 = math.tanh %258 : vector<16x32xf32>
    %260 = vector.extract_strided_slice %241 {offsets = [0, 96], sizes = [16, 32], strides = [1, 1]} : vector<16x128xf32> to vector<16x32xf32>
    %cst_111 = arith.constant 5.000000e-01 : f32
    %261 = vector.broadcast %cst_111 : f32 to vector<16x32xf32>
    %262 = arith.mulf %261, %260 : vector<16x32xf32>
    %263 = math.tanh %262 : vector<16x32xf32>
    %cst_112 = arith.constant 5.000000e-01 : f32
    %264 = vector.broadcast %cst_112 : f32 to vector<16x32xf32>
    %265 = arith.mulf %264, %263 : vector<16x32xf32>
    %cst_113 = arith.constant 5.000000e-01 : f32
    %266 = vector.broadcast %cst_113 : f32 to vector<16x32xf32>
    %267 = arith.addf %265, %266 : vector<16x32xf32>
    %268 = arith.mulf %257, %227 : vector<16x32xf32>
    %269 = arith.mulf %249, %259 : vector<16x32xf32>
    %270 = arith.addf %268, %269 : vector<16x32xf32>
    %271 = math.tanh %270 : vector<16x32xf32>
    %272 = arith.mulf %267, %271 : vector<16x32xf32>
    %273 = vector.extract_strided_slice %272 {offsets = [0, 0], sizes = [8, 32], strides = [1, 1]} : vector<16x32xf32> to vector<8x32xf32>
    %c40_114 = arith.constant 40 : index
    %c0_115 = arith.constant 0 : index
    %274 = vector.load %arg16[%c40_114, %c0_115] : memref<64x64xf32, #tpu.memory_space<vmem>>, vector<8x32xf32>
    tpu.vector_store %arg16[%c40_114, %c0_115], %273 {strides = array<i32>} : memref<64x64xf32, #tpu.memory_space<vmem>>, vector<8x32xf32>,
    %275 = vector.extract_strided_slice %272 {offsets = [8, 0], sizes = [8, 32], strides = [1, 1]} : vector<16x32xf32> to vector<8x32xf32>
    %c16_116 = arith.constant 16 : index
    %c32_117 = arith.constant 32 : index
    %276 = vector.load %arg16[%c16_116, %c32_117] : memref<64x64xf32, #tpu.memory_space<vmem>>, vector<8x32xf32>
    tpu.vector_store %arg16[%c16_116, %c32_117], %275 {strides = array<i32>} : memref<64x64xf32, #tpu.memory_space<vmem>>, vector<8x32xf32>,
    %cst_118 = arith.constant dense<0.000000e+00> : vector<16x256xf32>
    %277 = tpu.matmul %272, %14, %cst_118 {dimension_numbers = #tpu.dot_dimension_numbers<[1], [0], [0], [1], [0, 0, 1, 1], [], []>} : vector<16x32xf32>, vector<32x256xf32>, vector<16x256xf32> -> vector<16x256xf32>
    %c48_119 = arith.constant 48 : index
    %c0_120 = arith.constant 0 : index
    %278 = vector.load %arg17[%c48_119, %c0_120] : memref<64x256xf32, #tpu.memory_space<vmem>>, vector<8x128xf32>
    %279 = vector.extract_strided_slice %277 {offsets = [0, 0], sizes = [8, 128], strides = [1, 1]} : vector<16x256xf32> to vector<8x128xf32>
    %280 = arith.addf %278, %279 : vector<8x128xf32>
    %c8_121 = arith.constant 8 : index
    %c128_122 = arith.constant 128 : index
    %281 = vector.load %arg17[%c8_121, %c128_122] : memref<64x256xf32, #tpu.memory_space<vmem>>, vector<8x128xf32>
    %282 = vector.extract_strided_slice %277 {offsets = [8, 128], sizes = [8, 128], strides = [1, 1]} : vector<16x256xf32> to vector<8x128xf32>
    %283 = arith.addf %281, %282 : vector<8x128xf32>
    %284 = tpu.concatenate %280, %283 in 0 : vector<8x128xf32>, vector<8x128xf32> -> vector<16x128xf32>
    %285 = vector.extract_strided_slice %284 {offsets = [0, 0], sizes = [16, 32], strides = [1, 1]} : vector<16x128xf32> to vector<16x32xf32>
    %cst_123 = arith.constant 5.000000e-01 : f32
    %286 = vector.broadcast %cst_123 : f32 to vector<16x32xf32>
    %287 = arith.mulf %286, %285 : vector<16x32xf32>
    %288 = math.tanh %287 : vector<16x32xf32>
    %cst_124 = arith.constant 5.000000e-01 : f32
    %289 = vector.broadcast %cst_124 : f32 to vector<16x32xf32>
    %290 = arith.mulf %289, %288 : vector<16x32xf32>
    %cst_125 = arith.constant 5.000000e-01 : f32
    %291 = vector.broadcast %cst_125 : f32 to vector<16x32xf32>
    %292 = arith.addf %290, %291 : vector<16x32xf32>
    %293 = vector.extract_strided_slice %284 {offsets = [0, 32], sizes = [16, 32], strides = [1, 1]} : vector<16x128xf32> to vector<16x32xf32>
    %cst_126 = arith.constant 5.000000e-01 : f32
    %294 = vector.broadcast %cst_126 : f32 to vector<16x32xf32>
    %295 = arith.mulf %294, %293 : vector<16x32xf32>
    %296 = math.tanh %295 : vector<16x32xf32>
    %cst_127 = arith.constant 5.000000e-01 : f32
    %297 = vector.broadcast %cst_127 : f32 to vector<16x32xf32>
    %298 = arith.mulf %297, %296 : vector<16x32xf32>
    %cst_128 = arith.constant 5.000000e-01 : f32
    %299 = vector.broadcast %cst_128 : f32 to vector<16x32xf32>
    %300 = arith.addf %298, %299 : vector<16x32xf32>
    %301 = vector.extract_strided_slice %284 {offsets = [0, 64], sizes = [16, 32], strides = [1, 1]} : vector<16x128xf32> to vector<16x32xf32>
    %302 = math.tanh %301 : vector<16x32xf32>
    %303 = vector.extract_strided_slice %284 {offsets = [0, 96], sizes = [16, 32], strides = [1, 1]} : vector<16x128xf32> to vector<16x32xf32>
    %cst_129 = arith.constant 5.000000e-01 : f32
    %304 = vector.broadcast %cst_129 : f32 to vector<16x32xf32>
    %305 = arith.mulf %304, %303 : vector<16x32xf32>
    %306 = math.tanh %305 : vector<16x32xf32>
    %cst_130 = arith.constant 5.000000e-01 : f32
    %307 = vector.broadcast %cst_130 : f32 to vector<16x32xf32>
    %308 = arith.mulf %307, %306 : vector<16x32xf32>
    %cst_131 = arith.constant 5.000000e-01 : f32
    %309 = vector.broadcast %cst_131 : f32 to vector<16x32xf32>
    %310 = arith.addf %308, %309 : vector<16x32xf32>
    %311 = arith.mulf %300, %270 : vector<16x32xf32>
    %312 = arith.mulf %292, %302 : vector<16x32xf32>
    %313 = arith.addf %311, %312 : vector<16x32xf32>
    %314 = math.tanh %313 : vector<16x32xf32>
    %315 = arith.mulf %310, %314 : vector<16x32xf32>
    %316 = vector.extract_strided_slice %315 {offsets = [0, 0], sizes = [8, 32], strides = [1, 1]} : vector<16x32xf32> to vector<8x32xf32>
    %c48_132 = arith.constant 48 : index
    %c0_133 = arith.constant 0 : index
    %317 = vector.load %arg16[%c48_132, %c0_133] : memref<64x64xf32, #tpu.memory_space<vmem>>, vector<8x32xf32>
    tpu.vector_store %arg16[%c48_132, %c0_133], %316 {strides = array<i32>} : memref<64x64xf32, #tpu.memory_space<vmem>>, vector<8x32xf32>,
    %318 = vector.extract_strided_slice %315 {offsets = [8, 0], sizes = [8, 32], strides = [1, 1]} : vector<16x32xf32> to vector<8x32xf32>
    %c8_134 = arith.constant 8 : index
    %c32_135 = arith.constant 32 : index
    %319 = vector.load %arg16[%c8_134, %c32_135] : memref<64x64xf32, #tpu.memory_space<vmem>>, vector<8x32xf32>
    tpu.vector_store %arg16[%c8_134, %c32_135], %318 {strides = array<i32>} : memref<64x64xf32, #tpu.memory_space<vmem>>, vector<8x32xf32>,
    %cst_136 = arith.constant dense<0.000000e+00> : vector<16x256xf32>
    %320 = tpu.matmul %315, %14, %cst_136 {dimension_numbers = #tpu.dot_dimension_numbers<[1], [0], [0], [1], [0, 0, 1, 1], [], []>} : vector<16x32xf32>, vector<32x256xf32>, vector<16x256xf32> -> vector<16x256xf32>
    %c56_137 = arith.constant 56 : index
    %c0_138 = arith.constant 0 : index
    %321 = vector.load %arg17[%c56_137, %c0_138] : memref<64x256xf32, #tpu.memory_space<vmem>>, vector<8x128xf32>
    %322 = vector.extract_strided_slice %320 {offsets = [0, 0], sizes = [8, 128], strides = [1, 1]} : vector<16x256xf32> to vector<8x128xf32>
    %323 = arith.addf %321, %322 : vector<8x128xf32>
    %c0_139 = arith.constant 0 : index
    %c128_140 = arith.constant 128 : index
    %324 = vector.load %arg17[%c0_139, %c128_140] : memref<64x256xf32, #tpu.memory_space<vmem>>, vector<8x128xf32>
    %325 = vector.extract_strided_slice %320 {offsets = [8, 128], sizes = [8, 128], strides = [1, 1]} : vector<16x256xf32> to vector<8x128xf32>
    %326 = arith.addf %324, %325 : vector<8x128xf32>
    %327 = tpu.concatenate %323, %326 in 0 : vector<8x128xf32>, vector<8x128xf32> -> vector<16x128xf32>
    %328 = vector.extract_strided_slice %327 {offsets = [0, 0], sizes = [16, 32], strides = [1, 1]} : vector<16x128xf32> to vector<16x32xf32>
    %cst_141 = arith.constant 5.000000e-01 : f32
    %329 = vector.broadcast %cst_141 : f32 to vector<16x32xf32>
    %330 = arith.mulf %329, %328 : vector<16x32xf32>
    %331 = math.tanh %330 : vector<16x32xf32>
    %cst_142 = arith.constant 5.000000e-01 : f32
    %332 = vector.broadcast %cst_142 : f32 to vector<16x32xf32>
    %333 = arith.mulf %332, %331 : vector<16x32xf32>
    %cst_143 = arith.constant 5.000000e-01 : f32
    %334 = vector.broadcast %cst_143 : f32 to vector<16x32xf32>
    %335 = arith.addf %333, %334 : vector<16x32xf32>
    %336 = vector.extract_strided_slice %327 {offsets = [0, 32], sizes = [16, 32], strides = [1, 1]} : vector<16x128xf32> to vector<16x32xf32>
    %cst_144 = arith.constant 5.000000e-01 : f32
    %337 = vector.broadcast %cst_144 : f32 to vector<16x32xf32>
    %338 = arith.mulf %337, %336 : vector<16x32xf32>
    %339 = math.tanh %338 : vector<16x32xf32>
    %cst_145 = arith.constant 5.000000e-01 : f32
    %340 = vector.broadcast %cst_145 : f32 to vector<16x32xf32>
    %341 = arith.mulf %340, %339 : vector<16x32xf32>
    %cst_146 = arith.constant 5.000000e-01 : f32
    %342 = vector.broadcast %cst_146 : f32 to vector<16x32xf32>
    %343 = arith.addf %341, %342 : vector<16x32xf32>
    %344 = vector.extract_strided_slice %327 {offsets = [0, 64], sizes = [16, 32], strides = [1, 1]} : vector<16x128xf32> to vector<16x32xf32>
    %345 = math.tanh %344 : vector<16x32xf32>
    %346 = vector.extract_strided_slice %327 {offsets = [0, 96], sizes = [16, 32], strides = [1, 1]} : vector<16x128xf32> to vector<16x32xf32>
    %cst_147 = arith.constant 5.000000e-01 : f32
    %347 = vector.broadcast %cst_147 : f32 to vector<16x32xf32>
    %348 = arith.mulf %347, %346 : vector<16x32xf32>
    %349 = math.tanh %348 : vector<16x32xf32>
    %cst_148 = arith.constant 5.000000e-01 : f32
    %350 = vector.broadcast %cst_148 : f32 to vector<16x32xf32>
    %351 = arith.mulf %350, %349 : vector<16x32xf32>
    %cst_149 = arith.constant 5.000000e-01 : f32
    %352 = vector.broadcast %cst_149 : f32 to vector<16x32xf32>
    %353 = arith.addf %351, %352 : vector<16x32xf32>
    %354 = arith.mulf %343, %313 : vector<16x32xf32>
    %355 = arith.mulf %335, %345 : vector<16x32xf32>
    %356 = arith.addf %354, %355 : vector<16x32xf32>
    %357 = math.tanh %356 : vector<16x32xf32>
    %358 = arith.mulf %353, %357 : vector<16x32xf32>
    %359 = vector.extract_strided_slice %358 {offsets = [0, 0], sizes = [8, 32], strides = [1, 1]} : vector<16x32xf32> to vector<8x32xf32>
    %c56_150 = arith.constant 56 : index
    %c0_151 = arith.constant 0 : index
    %360 = vector.load %arg16[%c56_150, %c0_151] : memref<64x64xf32, #tpu.memory_space<vmem>>, vector<8x32xf32>
    tpu.vector_store %arg16[%c56_150, %c0_151], %359 {strides = array<i32>} : memref<64x64xf32, #tpu.memory_space<vmem>>, vector<8x32xf32>,
    %361 = vector.extract_strided_slice %358 {offsets = [8, 0], sizes = [8, 32], strides = [1, 1]} : vector<16x32xf32> to vector<8x32xf32>
    %c0_152 = arith.constant 0 : index
    %c32_153 = arith.constant 32 : index
    %362 = vector.load %arg16[%c0_152, %c32_153] : memref<64x64xf32, #tpu.memory_space<vmem>>, vector<8x32xf32>
    tpu.vector_store %arg16[%c0_152, %c32_153], %361 {strides = array<i32>} : memref<64x64xf32, #tpu.memory_space<vmem>>, vector<8x32xf32>,
    %c0_154 = arith.constant 0 : index
    %c0_155 = arith.constant 0 : index
    %c0_156 = arith.constant 0 : index
    %363 = vector.load %arg13[%c0_154, %c0_155, %c0_156] : memref<2x16x32xf32, #tpu.memory_space<vmem>>, vector<1x16x32xf32>
    %364 = vector.shape_cast %363 : vector<1x16x32xf32> to vector<16x32xf32>
    %365 = vector.shape_cast %358 : vector<16x32xf32> to vector<1x16x32xf32>
    tpu.vector_store %arg13[%c0_154, %c0_155, %c0_156], %365 {strides = array<i32>} : memref<2x16x32xf32, #tpu.memory_space<vmem>>, vector<1x16x32xf32>,
    %c0_157 = arith.constant 0 : index
    %c0_158 = arith.constant 0 : index
    %c0_159 = arith.constant 0 : index
    %366 = vector.load %arg14[%c0_157, %c0_158, %c0_159] : memref<2x16x32xf32, #tpu.memory_space<vmem>>, vector<1x16x32xf32>
    %367 = vector.shape_cast %366 : vector<1x16x32xf32> to vector<16x32xf32>
    %368 = vector.shape_cast %356 : vector<16x32xf32> to vector<1x16x32xf32>
    tpu.vector_store %arg14[%c0_157, %c0_158, %c0_159], %368 {strides = array<i32>} : memref<2x16x32xf32, #tpu.memory_space<vmem>>, vector<1x16x32xf32>,
    %c0_160 = arith.constant 0 : index
    %c0_161 = arith.constant 0 : index
    %369 = vector.load %arg16[%c0_160, %c0_161] : memref<64x64xf32, #tpu.memory_space<vmem>>, vector<64x64xf32>
    %c0_162 = arith.constant 0 : index
    %c0_163 = arith.constant 0 : index
    %370 = vector.load %arg6[%c0_162, %c0_163] : memref<64x256xf32, #tpu.memory_space<vmem>>, vector<64x256xf32>
    %cst_164 = arith.constant dense<0.000000e+00> : vector<64x256xf32>
    %371 = tpu.matmul %369, %370, %cst_164 {dimension_numbers = #tpu.dot_dimension_numbers<[1], [0], [0], [1], [0, 0, 1, 1], [], []>} : vector<64x64xf32>, vector<64x256xf32>, vector<64x256xf32> -> vector<64x256xf32>
    %c0_165 = arith.constant 0 : index
    %c0_166 = arith.constant 0 : index
    %372 = vector.load %arg8[%c0_165, %c0_166] : memref<1x256xf32, #tpu.memory_space<vmem>>, vector<1x256xf32>
    %373 = vector.broadcast %372 : vector<1x256xf32> to vector<64x256xf32>
    %374 = arith.addf %371, %373 : vector<64x256xf32>
    %c0_167 = arith.constant 0 : index
    %c0_168 = arith.constant 0 : index
    %375 = vector.load %arg17[%c0_167, %c0_168] : memref<64x256xf32, #tpu.memory_space<vmem>>, vector<64x256xf32>
    tpu.vector_store %arg17[%c0_167, %c0_168], %374 {strides = array<i32>} : memref<64x256xf32, #tpu.memory_space<vmem>>, vector<64x256xf32>,
    %c0_169 = arith.constant 0 : index
    %c0_170 = arith.constant 0 : index
    %376 = vector.load %arg7[%c0_169, %c0_170] : memref<32x256xf32, #tpu.memory_space<vmem>>, vector<32x256xf32>
    %c1 = arith.constant 1 : index
    %c0_171 = arith.constant 0 : index
    %c0_172 = arith.constant 0 : index
    %377 = vector.load %arg9[%c1, %c0_171, %c0_172] : memref<2x16x32xf32, #tpu.memory_space<vmem>>, vector<1x16x32xf32>
    %378 = vector.shape_cast %377 : vector<1x16x32xf32> to vector<16x32xf32>
    %c1_173 = arith.constant 1 : index
    %c0_174 = arith.constant 0 : index
    %c0_175 = arith.constant 0 : index
    %379 = vector.load %arg10[%c1_173, %c0_174, %c0_175] : memref<2x16x32xf32, #tpu.memory_space<vmem>>, vector<1x16x32xf32>
    %380 = vector.shape_cast %379 : vector<1x16x32xf32> to vector<16x32xf32>
    %cst_176 = arith.constant dense<0.000000e+00> : vector<16x256xf32>
    %381 = tpu.matmul %378, %376, %cst_176 {dimension_numbers = #tpu.dot_dimension_numbers<[1], [0], [0], [1], [0, 0, 1, 1], [], []>} : vector<16x32xf32>, vector<32x256xf32>, vector<16x256xf32> -> vector<16x256xf32>
    %c0_177 = arith.constant 0 : index
    %c0_178 = arith.constant 0 : index
    %382 = vector.load %arg17[%c0_177, %c0_178] : memref<64x256xf32, #tpu.memory_space<vmem>>, vector<8x128xf32>
    %383 = vector.extract_strided_slice %381 {offsets = [0, 0], sizes = [8, 128], strides = [1, 1]} : vector<16x256xf32> to vector<8x128xf32>
    %384 = arith.addf %382, %383 : vector<8x128xf32>
    %c56_179 = arith.constant 56 : index
    %c128_180 = arith.constant 128 : index
    %385 = vector.load %arg17[%c56_179, %c128_180] : memref<64x256xf32, #tpu.memory_space<vmem>>, vector<8x128xf32>
    %386 = vector.extract_strided_slice %381 {offsets = [8, 128], sizes = [8, 128], strides = [1, 1]} : vector<16x256xf32> to vector<8x128xf32>
    %387 = arith.addf %385, %386 : vector<8x128xf32>
    %388 = tpu.concatenate %384, %387 in 0 : vector<8x128xf32>, vector<8x128xf32> -> vector<16x128xf32>
    %389 = vector.extract_strided_slice %388 {offsets = [0, 0], sizes = [16, 32], strides = [1, 1]} : vector<16x128xf32> to vector<16x32xf32>
    %cst_181 = arith.constant 5.000000e-01 : f32
    %390 = vector.broadcast %cst_181 : f32 to vector<16x32xf32>
    %391 = arith.mulf %390, %389 : vector<16x32xf32>
    %392 = math.tanh %391 : vector<16x32xf32>
    %cst_182 = arith.constant 5.000000e-01 : f32
    %393 = vector.broadcast %cst_182 : f32 to vector<16x32xf32>
    %394 = arith.mulf %393, %392 : vector<16x32xf32>
    %cst_183 = arith.constant 5.000000e-01 : f32
    %395 = vector.broadcast %cst_183 : f32 to vector<16x32xf32>
    %396 = arith.addf %394, %395 : vector<16x32xf32>
    %397 = vector.extract_strided_slice %388 {offsets = [0, 32], sizes = [16, 32], strides = [1, 1]} : vector<16x128xf32> to vector<16x32xf32>
    %cst_184 = arith.constant 5.000000e-01 : f32
    %398 = vector.broadcast %cst_184 : f32 to vector<16x32xf32>
    %399 = arith.mulf %398, %397 : vector<16x32xf32>
    %400 = math.tanh %399 : vector<16x32xf32>
    %cst_185 = arith.constant 5.000000e-01 : f32
    %401 = vector.broadcast %cst_185 : f32 to vector<16x32xf32>
    %402 = arith.mulf %401, %400 : vector<16x32xf32>
    %cst_186 = arith.constant 5.000000e-01 : f32
    %403 = vector.broadcast %cst_186 : f32 to vector<16x32xf32>
    %404 = arith.addf %402, %403 : vector<16x32xf32>
    %405 = vector.extract_strided_slice %388 {offsets = [0, 64], sizes = [16, 32], strides = [1, 1]} : vector<16x128xf32> to vector<16x32xf32>
    %406 = math.tanh %405 : vector<16x32xf32>
    %407 = vector.extract_strided_slice %388 {offsets = [0, 96], sizes = [16, 32], strides = [1, 1]} : vector<16x128xf32> to vector<16x32xf32>
    %cst_187 = arith.constant 5.000000e-01 : f32
    %408 = vector.broadcast %cst_187 : f32 to vector<16x32xf32>
    %409 = arith.mulf %408, %407 : vector<16x32xf32>
    %410 = math.tanh %409 : vector<16x32xf32>
    %cst_188 = arith.constant 5.000000e-01 : f32
    %411 = vector.broadcast %cst_188 : f32 to vector<16x32xf32>
    %412 = arith.mulf %411, %410 : vector<16x32xf32>
    %cst_189 = arith.constant 5.000000e-01 : f32
    %413 = vector.broadcast %cst_189 : f32 to vector<16x32xf32>
    %414 = arith.addf %412, %413 : vector<16x32xf32>
    %415 = arith.mulf %404, %380 : vector<16x32xf32>
    %416 = arith.mulf %396, %406 : vector<16x32xf32>
    %417 = arith.addf %415, %416 : vector<16x32xf32>
    %418 = math.tanh %417 : vector<16x32xf32>
    %419 = arith.mulf %414, %418 : vector<16x32xf32>
    %420 = vector.extract_strided_slice %419 {offsets = [8, 0], sizes = [8, 32], strides = [1, 1]} : vector<16x32xf32> to vector<8x32xf32>
    %cst_190 = arith.constant dense<0.000000e+00> : vector<16x256xf32>
    %421 = tpu.matmul %419, %376, %cst_190 {dimension_numbers = #tpu.dot_dimension_numbers<[1], [0], [0], [1], [0, 0, 1, 1], [], []>} : vector<16x32xf32>, vector<32x256xf32>, vector<16x256xf32> -> vector<16x256xf32>
    %c8_191 = arith.constant 8 : index
    %c0_192 = arith.constant 0 : index
    %422 = vector.load %arg17[%c8_191, %c0_192] : memref<64x256xf32, #tpu.memory_space<vmem>>, vector<8x128xf32>
    %423 = vector.extract_strided_slice %421 {offsets = [0, 0], sizes = [8, 128], strides = [1, 1]} : vector<16x256xf32> to vector<8x128xf32>
    %424 = arith.addf %422, %423 : vector<8x128xf32>
    %c48_193 = arith.constant 48 : index
    %c128_194 = arith.constant 128 : index
    %425 = vector.load %arg17[%c48_193, %c128_194] : memref<64x256xf32, #tpu.memory_space<vmem>>, vector<8x128xf32>
    %426 = vector.extract_strided_slice %421 {offsets = [8, 128], sizes = [8, 128], strides = [1, 1]} : vector<16x256xf32> to vector<8x128xf32>
    %427 = arith.addf %425, %426 : vector<8x128xf32>
    %428 = tpu.concatenate %424, %427 in 0 : vector<8x128xf32>, vector<8x128xf32> -> vector<16x128xf32>
    %429 = vector.extract_strided_slice %428 {offsets = [0, 0], sizes = [16, 32], strides = [1, 1]} : vector<16x128xf32> to vector<16x32xf32>
    %cst_195 = arith.constant 5.000000e-01 : f32
    %430 = vector.broadcast %cst_195 : f32 to vector<16x32xf32>
    %431 = arith.mulf %430, %429 : vector<16x32xf32>
    %432 = math.tanh %431 : vector<16x32xf32>
    %cst_196 = arith.constant 5.000000e-01 : f32
    %433 = vector.broadcast %cst_196 : f32 to vector<16x32xf32>
    %434 = arith.mulf %433, %432 : vector<16x32xf32>
    %cst_197 = arith.constant 5.000000e-01 : f32
    %435 = vector.broadcast %cst_197 : f32 to vector<16x32xf32>
    %436 = arith.addf %434, %435 : vector<16x32xf32>
    %437 = vector.extract_strided_slice %428 {offsets = [0, 32], sizes = [16, 32], strides = [1, 1]} : vector<16x128xf32> to vector<16x32xf32>
    %cst_198 = arith.constant 5.000000e-01 : f32
    %438 = vector.broadcast %cst_198 : f32 to vector<16x32xf32>
    %439 = arith.mulf %438, %437 : vector<16x32xf32>
    %440 = math.tanh %439 : vector<16x32xf32>
    %cst_199 = arith.constant 5.000000e-01 : f32
    %441 = vector.broadcast %cst_199 : f32 to vector<16x32xf32>
    %442 = arith.mulf %441, %440 : vector<16x32xf32>
    %cst_200 = arith.constant 5.000000e-01 : f32
    %443 = vector.broadcast %cst_200 : f32 to vector<16x32xf32>
    %444 = arith.addf %442, %443 : vector<16x32xf32>
    %445 = vector.extract_strided_slice %428 {offsets = [0, 64], sizes = [16, 32], strides = [1, 1]} : vector<16x128xf32> to vector<16x32xf32>
    %446 = math.tanh %445 : vector<16x32xf32>
    %447 = vector.extract_strided_slice %428 {offsets = [0, 96], sizes = [16, 32], strides = [1, 1]} : vector<16x128xf32> to vector<16x32xf32>
    %cst_201 = arith.constant 5.000000e-01 : f32
    %448 = vector.broadcast %cst_201 : f32 to vector<16x32xf32>
    %449 = arith.mulf %448, %447 : vector<16x32xf32>
    %450 = math.tanh %449 : vector<16x32xf32>
    %cst_202 = arith.constant 5.000000e-01 : f32
    %451 = vector.broadcast %cst_202 : f32 to vector<16x32xf32>
    %452 = arith.mulf %451, %450 : vector<16x32xf32>
    %cst_203 = arith.constant 5.000000e-01 : f32
    %453 = vector.broadcast %cst_203 : f32 to vector<16x32xf32>
    %454 = arith.addf %452, %453 : vector<16x32xf32>
    %455 = arith.mulf %444, %417 : vector<16x32xf32>
    %456 = arith.mulf %436, %446 : vector<16x32xf32>
    %457 = arith.addf %455, %456 : vector<16x32xf32>
    %458 = math.tanh %457 : vector<16x32xf32>
    %459 = arith.mulf %454, %458 : vector<16x32xf32>
    %cst_204 = arith.constant dense<0.000000e+00> : vector<16x256xf32>
    %460 = tpu.matmul %459, %376, %cst_204 {dimension_numbers = #tpu.dot_dimension_numbers<[1], [0], [0], [1], [0, 0, 1, 1], [], []>} : vector<16x32xf32>, vector<32x256xf32>, vector<16x256xf32> -> vector<16x256xf32>
    %c16_205 = arith.constant 16 : index
    %c0_206 = arith.constant 0 : index
    %461 = vector.load %arg17[%c16_205, %c0_206] : memref<64x256xf32, #tpu.memory_space<vmem>>, vector<8x128xf32>
    %462 = vector.extract_strided_slice %460 {offsets = [0, 0], sizes = [8, 128], strides = [1, 1]} : vector<16x256xf32> to vector<8x128xf32>
    %463 = arith.addf %461, %462 : vector<8x128xf32>
    %c40_207 = arith.constant 40 : index
    %c128_208 = arith.constant 128 : index
    %464 = vector.load %arg17[%c40_207, %c128_208] : memref<64x256xf32, #tpu.memory_space<vmem>>, vector<8x128xf32>
    %465 = vector.extract_strided_slice %460 {offsets = [8, 128], sizes = [8, 128], strides = [1, 1]} : vector<16x256xf32> to vector<8x128xf32>
    %466 = arith.addf %464, %465 : vector<8x128xf32>
    %467 = tpu.concatenate %463, %466 in 0 : vector<8x128xf32>, vector<8x128xf32> -> vector<16x128xf32>
    %468 = vector.extract_strided_slice %467 {offsets = [0, 0], sizes = [16, 32], strides = [1, 1]} : vector<16x128xf32> to vector<16x32xf32>
    %cst_209 = arith.constant 5.000000e-01 : f32
    %469 = vector.broadcast %cst_209 : f32 to vector<16x32xf32>
    %470 = arith.mulf %469, %468 : vector<16x32xf32>
    %471 = math.tanh %470 : vector<16x32xf32>
    %cst_210 = arith.constant 5.000000e-01 : f32
    %472 = vector.broadcast %cst_210 : f32 to vector<16x32xf32>
    %473 = arith.mulf %472, %471 : vector<16x32xf32>
    %cst_211 = arith.constant 5.000000e-01 : f32
    %474 = vector.broadcast %cst_211 : f32 to vector<16x32xf32>
    %475 = arith.addf %473, %474 : vector<16x32xf32>
    %476 = vector.extract_strided_slice %467 {offsets = [0, 32], sizes = [16, 32], strides = [1, 1]} : vector<16x128xf32> to vector<16x32xf32>
    %cst_212 = arith.constant 5.000000e-01 : f32
    %477 = vector.broadcast %cst_212 : f32 to vector<16x32xf32>
    %478 = arith.mulf %477, %476 : vector<16x32xf32>
    %479 = math.tanh %478 : vector<16x32xf32>
    %cst_213 = arith.constant 5.000000e-01 : f32
    %480 = vector.broadcast %cst_213 : f32 to vector<16x32xf32>
    %481 = arith.mulf %480, %479 : vector<16x32xf32>
    %cst_214 = arith.constant 5.000000e-01 : f32
    %482 = vector.broadcast %cst_214 : f32 to vector<16x32xf32>
    %483 = arith.addf %481, %482 : vector<16x32xf32>
    %484 = vector.extract_strided_slice %467 {offsets = [0, 64], sizes = [16, 32], strides = [1, 1]} : vector<16x128xf32> to vector<16x32xf32>
    %485 = math.tanh %484 : vector<16x32xf32>
    %486 = vector.extract_strided_slice %467 {offsets = [0, 96], sizes = [16, 32], strides = [1, 1]} : vector<16x128xf32> to vector<16x32xf32>
    %cst_215 = arith.constant 5.000000e-01 : f32
    %487 = vector.broadcast %cst_215 : f32 to vector<16x32xf32>
    %488 = arith.mulf %487, %486 : vector<16x32xf32>
    %489 = math.tanh %488 : vector<16x32xf32>
    %cst_216 = arith.constant 5.000000e-01 : f32
    %490 = vector.broadcast %cst_216 : f32 to vector<16x32xf32>
    %491 = arith.mulf %490, %489 : vector<16x32xf32>
    %cst_217 = arith.constant 5.000000e-01 : f32
    %492 = vector.broadcast %cst_217 : f32 to vector<16x32xf32>
    %493 = arith.addf %491, %492 : vector<16x32xf32>
    %494 = arith.mulf %483, %457 : vector<16x32xf32>
    %495 = arith.mulf %475, %485 : vector<16x32xf32>
    %496 = arith.addf %494, %495 : vector<16x32xf32>
    %497 = math.tanh %496 : vector<16x32xf32>
    %498 = arith.mulf %493, %497 : vector<16x32xf32>
    %cst_218 = arith.constant dense<0.000000e+00> : vector<16x256xf32>
    %499 = tpu.matmul %498, %376, %cst_218 {dimension_numbers = #tpu.dot_dimension_numbers<[1], [0], [0], [1], [0, 0, 1, 1], [], []>} : vector<16x32xf32>, vector<32x256xf32>, vector<16x256xf32> -> vector<16x256xf32>
    %c24_219 = arith.constant 24 : index
    %c0_220 = arith.constant 0 : index
    %500 = vector.load %arg17[%c24_219, %c0_220] : memref<64x256xf32, #tpu.memory_space<vmem>>, vector<8x128xf32>
    %501 = vector.extract_strided_slice %499 {offsets = [0, 0], sizes = [8, 128], strides = [1, 1]} : vector<16x256xf32> to vector<8x128xf32>
    %502 = arith.addf %500, %501 : vector<8x128xf32>
    %c32_221 = arith.constant 32 : index
    %c128_222 = arith.constant 128 : index
    %503 = vector.load %arg17[%c32_221, %c128_222] : memref<64x256xf32, #tpu.memory_space<vmem>>, vector<8x128xf32>
    %504 = vector.extract_strided_slice %499 {offsets = [8, 128], sizes = [8, 128], strides = [1, 1]} : vector<16x256xf32> to vector<8x128xf32>
    %505 = arith.addf %503, %504 : vector<8x128xf32>
    %506 = tpu.concatenate %502, %505 in 0 : vector<8x128xf32>, vector<8x128xf32> -> vector<16x128xf32>
    %507 = vector.extract_strided_slice %506 {offsets = [0, 0], sizes = [16, 32], strides = [1, 1]} : vector<16x128xf32> to vector<16x32xf32>
    %cst_223 = arith.constant 5.000000e-01 : f32
    %508 = vector.broadcast %cst_223 : f32 to vector<16x32xf32>
    %509 = arith.mulf %508, %507 : vector<16x32xf32>
    %510 = math.tanh %509 : vector<16x32xf32>
    %cst_224 = arith.constant 5.000000e-01 : f32
    %511 = vector.broadcast %cst_224 : f32 to vector<16x32xf32>
    %512 = arith.mulf %511, %510 : vector<16x32xf32>
    %cst_225 = arith.constant 5.000000e-01 : f32
    %513 = vector.broadcast %cst_225 : f32 to vector<16x32xf32>
    %514 = arith.addf %512, %513 : vector<16x32xf32>
    %515 = vector.extract_strided_slice %506 {offsets = [0, 32], sizes = [16, 32], strides = [1, 1]} : vector<16x128xf32> to vector<16x32xf32>
    %cst_226 = arith.constant 5.000000e-01 : f32
    %516 = vector.broadcast %cst_226 : f32 to vector<16x32xf32>
    %517 = arith.mulf %516, %515 : vector<16x32xf32>
    %518 = math.tanh %517 : vector<16x32xf32>
    %cst_227 = arith.constant 5.000000e-01 : f32
    %519 = vector.broadcast %cst_227 : f32 to vector<16x32xf32>
    %520 = arith.mulf %519, %518 : vector<16x32xf32>
    %cst_228 = arith.constant 5.000000e-01 : f32
    %521 = vector.broadcast %cst_228 : f32 to vector<16x32xf32>
    %522 = arith.addf %520, %521 : vector<16x32xf32>
    %523 = vector.extract_strided_slice %506 {offsets = [0, 64], sizes = [16, 32], strides = [1, 1]} : vector<16x128xf32> to vector<16x32xf32>
    %524 = math.tanh %523 : vector<16x32xf32>
    %525 = vector.extract_strided_slice %506 {offsets = [0, 96], sizes = [16, 32], strides = [1, 1]} : vector<16x128xf32> to vector<16x32xf32>
    %cst_229 = arith.constant 5.000000e-01 : f32
    %526 = vector.broadcast %cst_229 : f32 to vector<16x32xf32>
    %527 = arith.mulf %526, %525 : vector<16x32xf32>
    %528 = math.tanh %527 : vector<16x32xf32>
    %cst_230 = arith.constant 5.000000e-01 : f32
    %529 = vector.broadcast %cst_230 : f32 to vector<16x32xf32>
    %530 = arith.mulf %529, %528 : vector<16x32xf32>
    %cst_231 = arith.constant 5.000000e-01 : f32
    %531 = vector.broadcast %cst_231 : f32 to vector<16x32xf32>
    %532 = arith.addf %530, %531 : vector<16x32xf32>
    %533 = arith.mulf %522, %496 : vector<16x32xf32>
    %534 = arith.mulf %514, %524 : vector<16x32xf32>
    %535 = arith.addf %533, %534 : vector<16x32xf32>
    %536 = math.tanh %535 : vector<16x32xf32>
    %537 = arith.mulf %532, %536 : vector<16x32xf32>
    %cst_232 = arith.constant dense<0.000000e+00> : vector<16x256xf32>
    %538 = tpu.matmul %537, %376, %cst_232 {dimension_numbers = #tpu.dot_dimension_numbers<[1], [0], [0], [1], [0, 0, 1, 1], [], []>} : vector<16x32xf32>, vector<32x256xf32>, vector<16x256xf32> -> vector<16x256xf32>
    %c32_233 = arith.constant 32 : index
    %c0_234 = arith.constant 0 : index
    %539 = vector.load %arg17[%c32_233, %c0_234] : memref<64x256xf32, #tpu.memory_space<vmem>>, vector<8x128xf32>
    %540 = vector.extract_strided_slice %538 {offsets = [0, 0], sizes = [8, 128], strides = [1, 1]} : vector<16x256xf32> to vector<8x128xf32>
    %541 = arith.addf %539, %540 : vector<8x128xf32>
    %c24_235 = arith.constant 24 : index
    %c128_236 = arith.constant 128 : index
    %542 = vector.load %arg17[%c24_235, %c128_236] : memref<64x256xf32, #tpu.memory_space<vmem>>, vector<8x128xf32>
    %543 = vector.extract_strided_slice %538 {offsets = [8, 128], sizes = [8, 128], strides = [1, 1]} : vector<16x256xf32> to vector<8x128xf32>
    %544 = arith.addf %542, %543 : vector<8x128xf32>
    %545 = tpu.concatenate %541, %544 in 0 : vector<8x128xf32>, vector<8x128xf32> -> vector<16x128xf32>
    %546 = vector.extract_strided_slice %545 {offsets = [0, 0], sizes = [16, 32], strides = [1, 1]} : vector<16x128xf32> to vector<16x32xf32>
    %cst_237 = arith.constant 5.000000e-01 : f32
    %547 = vector.broadcast %cst_237 : f32 to vector<16x32xf32>
    %548 = arith.mulf %547, %546 : vector<16x32xf32>
    %549 = math.tanh %548 : vector<16x32xf32>
    %cst_238 = arith.constant 5.000000e-01 : f32
    %550 = vector.broadcast %cst_238 : f32 to vector<16x32xf32>
    %551 = arith.mulf %550, %549 : vector<16x32xf32>
    %cst_239 = arith.constant 5.000000e-01 : f32
    %552 = vector.broadcast %cst_239 : f32 to vector<16x32xf32>
    %553 = arith.addf %551, %552 : vector<16x32xf32>
    %554 = vector.extract_strided_slice %545 {offsets = [0, 32], sizes = [16, 32], strides = [1, 1]} : vector<16x128xf32> to vector<16x32xf32>
    %cst_240 = arith.constant 5.000000e-01 : f32
    %555 = vector.broadcast %cst_240 : f32 to vector<16x32xf32>
    %556 = arith.mulf %555, %554 : vector<16x32xf32>
    %557 = math.tanh %556 : vector<16x32xf32>
    %cst_241 = arith.constant 5.000000e-01 : f32
    %558 = vector.broadcast %cst_241 : f32 to vector<16x32xf32>
    %559 = arith.mulf %558, %557 : vector<16x32xf32>
    %cst_242 = arith.constant 5.000000e-01 : f32
    %560 = vector.broadcast %cst_242 : f32 to vector<16x32xf32>
    %561 = arith.addf %559, %560 : vector<16x32xf32>
    %562 = vector.extract_strided_slice %545 {offsets = [0, 64], sizes = [16, 32], strides = [1, 1]} : vector<16x128xf32> to vector<16x32xf32>
    %563 = math.tanh %562 : vector<16x32xf32>
    %564 = vector.extract_strided_slice %545 {offsets = [0, 96], sizes = [16, 32], strides = [1, 1]} : vector<16x128xf32> to vector<16x32xf32>
    %cst_243 = arith.constant 5.000000e-01 : f32
    %565 = vector.broadcast %cst_243 : f32 to vector<16x32xf32>
    %566 = arith.mulf %565, %564 : vector<16x32xf32>
    %567 = math.tanh %566 : vector<16x32xf32>
    %cst_244 = arith.constant 5.000000e-01 : f32
    %568 = vector.broadcast %cst_244 : f32 to vector<16x32xf32>
    %569 = arith.mulf %568, %567 : vector<16x32xf32>
    %cst_245 = arith.constant 5.000000e-01 : f32
    %570 = vector.broadcast %cst_245 : f32 to vector<16x32xf32>
    %571 = arith.addf %569, %570 : vector<16x32xf32>
    %572 = arith.mulf %561, %535 : vector<16x32xf32>
    %573 = arith.mulf %553, %563 : vector<16x32xf32>
    %574 = arith.addf %572, %573 : vector<16x32xf32>
    %575 = math.tanh %574 : vector<16x32xf32>
    %576 = arith.mulf %571, %575 : vector<16x32xf32>
    %cst_246 = arith.constant dense<0.000000e+00> : vector<16x256xf32>
    %577 = tpu.matmul %576, %376, %cst_246 {dimension_numbers = #tpu.dot_dimension_numbers<[1], [0], [0], [1], [0, 0, 1, 1], [], []>} : vector<16x32xf32>, vector<32x256xf32>, vector<16x256xf32> -> vector<16x256xf32>
    %c40_247 = arith.constant 40 : index
    %c0_248 = arith.constant 0 : index
    %578 = vector.load %arg17[%c40_247, %c0_248] : memref<64x256xf32, #tpu.memory_space<vmem>>, vector<8x128xf32>
    %579 = vector.extract_strided_slice %577 {offsets = [0, 0], sizes = [8, 128], strides = [1, 1]} : vector<16x256xf32> to vector<8x128xf32>
    %580 = arith.addf %578, %579 : vector<8x128xf32>
    %c16_249 = arith.constant 16 : index
    %c128_250 = arith.constant 128 : index
    %581 = vector.load %arg17[%c16_249, %c128_250] : memref<64x256xf32, #tpu.memory_space<vmem>>, vector<8x128xf32>
    %582 = vector.extract_strided_slice %577 {offsets = [8, 128], sizes = [8, 128], strides = [1, 1]} : vector<16x256xf32> to vector<8x128xf32>
    %583 = arith.addf %581, %582 : vector<8x128xf32>
    %584 = tpu.concatenate %580, %583 in 0 : vector<8x128xf32>, vector<8x128xf32> -> vector<16x128xf32>
    %585 = vector.extract_strided_slice %584 {offsets = [0, 0], sizes = [16, 32], strides = [1, 1]} : vector<16x128xf32> to vector<16x32xf32>
    %cst_251 = arith.constant 5.000000e-01 : f32
    %586 = vector.broadcast %cst_251 : f32 to vector<16x32xf32>
    %587 = arith.mulf %586, %585 : vector<16x32xf32>
    %588 = math.tanh %587 : vector<16x32xf32>
    %cst_252 = arith.constant 5.000000e-01 : f32
    %589 = vector.broadcast %cst_252 : f32 to vector<16x32xf32>
    %590 = arith.mulf %589, %588 : vector<16x32xf32>
    %cst_253 = arith.constant 5.000000e-01 : f32
    %591 = vector.broadcast %cst_253 : f32 to vector<16x32xf32>
    %592 = arith.addf %590, %591 : vector<16x32xf32>
    %593 = vector.extract_strided_slice %584 {offsets = [0, 32], sizes = [16, 32], strides = [1, 1]} : vector<16x128xf32> to vector<16x32xf32>
    %cst_254 = arith.constant 5.000000e-01 : f32
    %594 = vector.broadcast %cst_254 : f32 to vector<16x32xf32>
    %595 = arith.mulf %594, %593 : vector<16x32xf32>
    %596 = math.tanh %595 : vector<16x32xf32>
    %cst_255 = arith.constant 5.000000e-01 : f32
    %597 = vector.broadcast %cst_255 : f32 to vector<16x32xf32>
    %598 = arith.mulf %597, %596 : vector<16x32xf32>
    %cst_256 = arith.constant 5.000000e-01 : f32
    %599 = vector.broadcast %cst_256 : f32 to vector<16x32xf32>
    %600 = arith.addf %598, %599 : vector<16x32xf32>
    %601 = vector.extract_strided_slice %584 {offsets = [0, 64], sizes = [16, 32], strides = [1, 1]} : vector<16x128xf32> to vector<16x32xf32>
    %602 = math.tanh %601 : vector<16x32xf32>
    %603 = vector.extract_strided_slice %584 {offsets = [0, 96], sizes = [16, 32], strides = [1, 1]} : vector<16x128xf32> to vector<16x32xf32>
    %cst_257 = arith.constant 5.000000e-01 : f32
    %604 = vector.broadcast %cst_257 : f32 to vector<16x32xf32>
    %605 = arith.mulf %604, %603 : vector<16x32xf32>
    %606 = math.tanh %605 : vector<16x32xf32>
    %cst_258 = arith.constant 5.000000e-01 : f32
    %607 = vector.broadcast %cst_258 : f32 to vector<16x32xf32>
    %608 = arith.mulf %607, %606 : vector<16x32xf32>
    %cst_259 = arith.constant 5.000000e-01 : f32
    %609 = vector.broadcast %cst_259 : f32 to vector<16x32xf32>
    %610 = arith.addf %608, %609 : vector<16x32xf32>
    %611 = arith.mulf %600, %574 : vector<16x32xf32>
    %612 = arith.mulf %592, %602 : vector<16x32xf32>
    %613 = arith.addf %611, %612 : vector<16x32xf32>
    %614 = math.tanh %613 : vector<16x32xf32>
    %615 = arith.mulf %610, %614 : vector<16x32xf32>
    %cst_260 = arith.constant dense<0.000000e+00> : vector<16x256xf32>
    %616 = tpu.matmul %615, %376, %cst_260 {dimension_numbers = #tpu.dot_dimension_numbers<[1], [0], [0], [1], [0, 0, 1, 1], [], []>} : vector<16x32xf32>, vector<32x256xf32>, vector<16x256xf32> -> vector<16x256xf32>
    %c48_261 = arith.constant 48 : index
    %c0_262 = arith.constant 0 : index
    %617 = vector.load %arg17[%c48_261, %c0_262] : memref<64x256xf32, #tpu.memory_space<vmem>>, vector<8x128xf32>
    %618 = vector.extract_strided_slice %616 {offsets = [0, 0], sizes = [8, 128], strides = [1, 1]} : vector<16x256xf32> to vector<8x128xf32>
    %619 = arith.addf %617, %618 : vector<8x128xf32>
    %c8_263 = arith.constant 8 : index
    %c128_264 = arith.constant 128 : index
    %620 = vector.load %arg17[%c8_263, %c128_264] : memref<64x256xf32, #tpu.memory_space<vmem>>, vector<8x128xf32>
    %621 = vector.extract_strided_slice %616 {offsets = [8, 128], sizes = [8, 128], strides = [1, 1]} : vector<16x256xf32> to vector<8x128xf32>
    %622 = arith.addf %620, %621 : vector<8x128xf32>
    %623 = tpu.concatenate %619, %622 in 0 : vector<8x128xf32>, vector<8x128xf32> -> vector<16x128xf32>
    %624 = vector.extract_strided_slice %623 {offsets = [0, 0], sizes = [16, 32], strides = [1, 1]} : vector<16x128xf32> to vector<16x32xf32>
    %cst_265 = arith.constant 5.000000e-01 : f32
    %625 = vector.broadcast %cst_265 : f32 to vector<16x32xf32>
    %626 = arith.mulf %625, %624 : vector<16x32xf32>
    %627 = math.tanh %626 : vector<16x32xf32>
    %cst_266 = arith.constant 5.000000e-01 : f32
    %628 = vector.broadcast %cst_266 : f32 to vector<16x32xf32>
    %629 = arith.mulf %628, %627 : vector<16x32xf32>
    %cst_267 = arith.constant 5.000000e-01 : f32
    %630 = vector.broadcast %cst_267 : f32 to vector<16x32xf32>
    %631 = arith.addf %629, %630 : vector<16x32xf32>
    %632 = vector.extract_strided_slice %623 {offsets = [0, 32], sizes = [16, 32], strides = [1, 1]} : vector<16x128xf32> to vector<16x32xf32>
    %cst_268 = arith.constant 5.000000e-01 : f32
    %633 = vector.broadcast %cst_268 : f32 to vector<16x32xf32>
    %634 = arith.mulf %633, %632 : vector<16x32xf32>
    %635 = math.tanh %634 : vector<16x32xf32>
    %cst_269 = arith.constant 5.000000e-01 : f32
    %636 = vector.broadcast %cst_269 : f32 to vector<16x32xf32>
    %637 = arith.mulf %636, %635 : vector<16x32xf32>
    %cst_270 = arith.constant 5.000000e-01 : f32
    %638 = vector.broadcast %cst_270 : f32 to vector<16x32xf32>
    %639 = arith.addf %637, %638 : vector<16x32xf32>
    %640 = vector.extract_strided_slice %623 {offsets = [0, 64], sizes = [16, 32], strides = [1, 1]} : vector<16x128xf32> to vector<16x32xf32>
    %641 = math.tanh %640 : vector<16x32xf32>
    %642 = vector.extract_strided_slice %623 {offsets = [0, 96], sizes = [16, 32], strides = [1, 1]} : vector<16x128xf32> to vector<16x32xf32>
    %cst_271 = arith.constant 5.000000e-01 : f32
    %643 = vector.broadcast %cst_271 : f32 to vector<16x32xf32>
    %644 = arith.mulf %643, %642 : vector<16x32xf32>
    %645 = math.tanh %644 : vector<16x32xf32>
    %cst_272 = arith.constant 5.000000e-01 : f32
    %646 = vector.broadcast %cst_272 : f32 to vector<16x32xf32>
    %647 = arith.mulf %646, %645 : vector<16x32xf32>
    %cst_273 = arith.constant 5.000000e-01 : f32
    %648 = vector.broadcast %cst_273 : f32 to vector<16x32xf32>
    %649 = arith.addf %647, %648 : vector<16x32xf32>
    %650 = arith.mulf %639, %613 : vector<16x32xf32>
    %651 = arith.mulf %631, %641 : vector<16x32xf32>
    %652 = arith.addf %650, %651 : vector<16x32xf32>
    %653 = math.tanh %652 : vector<16x32xf32>
    %654 = arith.mulf %649, %653 : vector<16x32xf32>
    %cst_274 = arith.constant dense<0.000000e+00> : vector<16x256xf32>
    %655 = tpu.matmul %654, %376, %cst_274 {dimension_numbers = #tpu.dot_dimension_numbers<[1], [0], [0], [1], [0, 0, 1, 1], [], []>} : vector<16x32xf32>, vector<32x256xf32>, vector<16x256xf32> -> vector<16x256xf32>
    %c56_275 = arith.constant 56 : index
    %c0_276 = arith.constant 0 : index
    %656 = vector.load %arg17[%c56_275, %c0_276] : memref<64x256xf32, #tpu.memory_space<vmem>>, vector<8x128xf32>
    %657 = vector.extract_strided_slice %655 {offsets = [0, 0], sizes = [8, 128], strides = [1, 1]} : vector<16x256xf32> to vector<8x128xf32>
    %658 = arith.addf %656, %657 : vector<8x128xf32>
    %c0_277 = arith.constant 0 : index
    %c128_278 = arith.constant 128 : index
    %659 = vector.load %arg17[%c0_277, %c128_278] : memref<64x256xf32, #tpu.memory_space<vmem>>, vector<8x128xf32>
    %660 = vector.extract_strided_slice %655 {offsets = [8, 128], sizes = [8, 128], strides = [1, 1]} : vector<16x256xf32> to vector<8x128xf32>
    %661 = arith.addf %659, %660 : vector<8x128xf32>
    %662 = tpu.concatenate %658, %661 in 0 : vector<8x128xf32>, vector<8x128xf32> -> vector<16x128xf32>
    %663 = vector.extract_strided_slice %662 {offsets = [0, 0], sizes = [16, 32], strides = [1, 1]} : vector<16x128xf32> to vector<16x32xf32>
    %cst_279 = arith.constant 5.000000e-01 : f32
    %664 = vector.broadcast %cst_279 : f32 to vector<16x32xf32>
    %665 = arith.mulf %664, %663 : vector<16x32xf32>
    %666 = math.tanh %665 : vector<16x32xf32>
    %cst_280 = arith.constant 5.000000e-01 : f32
    %667 = vector.broadcast %cst_280 : f32 to vector<16x32xf32>
    %668 = arith.mulf %667, %666 : vector<16x32xf32>
    %cst_281 = arith.constant 5.000000e-01 : f32
    %669 = vector.broadcast %cst_281 : f32 to vector<16x32xf32>
    %670 = arith.addf %668, %669 : vector<16x32xf32>
    %671 = vector.extract_strided_slice %662 {offsets = [0, 32], sizes = [16, 32], strides = [1, 1]} : vector<16x128xf32> to vector<16x32xf32>
    %cst_282 = arith.constant 5.000000e-01 : f32
    %672 = vector.broadcast %cst_282 : f32 to vector<16x32xf32>
    %673 = arith.mulf %672, %671 : vector<16x32xf32>
    %674 = math.tanh %673 : vector<16x32xf32>
    %cst_283 = arith.constant 5.000000e-01 : f32
    %675 = vector.broadcast %cst_283 : f32 to vector<16x32xf32>
    %676 = arith.mulf %675, %674 : vector<16x32xf32>
    %cst_284 = arith.constant 5.000000e-01 : f32
    %677 = vector.broadcast %cst_284 : f32 to vector<16x32xf32>
    %678 = arith.addf %676, %677 : vector<16x32xf32>
    %679 = vector.extract_strided_slice %662 {offsets = [0, 64], sizes = [16, 32], strides = [1, 1]} : vector<16x128xf32> to vector<16x32xf32>
    %680 = math.tanh %679 : vector<16x32xf32>
    %681 = vector.extract_strided_slice %662 {offsets = [0, 96], sizes = [16, 32], strides = [1, 1]} : vector<16x128xf32> to vector<16x32xf32>
    %cst_285 = arith.constant 5.000000e-01 : f32
    %682 = vector.broadcast %cst_285 : f32 to vector<16x32xf32>
    %683 = arith.mulf %682, %681 : vector<16x32xf32>
    %684 = math.tanh %683 : vector<16x32xf32>
    %cst_286 = arith.constant 5.000000e-01 : f32
    %685 = vector.broadcast %cst_286 : f32 to vector<16x32xf32>
    %686 = arith.mulf %685, %684 : vector<16x32xf32>
    %cst_287 = arith.constant 5.000000e-01 : f32
    %687 = vector.broadcast %cst_287 : f32 to vector<16x32xf32>
    %688 = arith.addf %686, %687 : vector<16x32xf32>
    %689 = arith.mulf %678, %652 : vector<16x32xf32>
    %690 = arith.mulf %670, %680 : vector<16x32xf32>
    %691 = arith.addf %689, %690 : vector<16x32xf32>
    %692 = math.tanh %691 : vector<16x32xf32>
    %693 = arith.mulf %688, %692 : vector<16x32xf32>
    %c1_288 = arith.constant 1 : index
    %c0_289 = arith.constant 0 : index
    %c0_290 = arith.constant 0 : index
    %694 = vector.load %arg13[%c1_288, %c0_289, %c0_290] : memref<2x16x32xf32, #tpu.memory_space<vmem>>, vector<1x16x32xf32>
    %695 = vector.shape_cast %694 : vector<1x16x32xf32> to vector<16x32xf32>
    %696 = vector.shape_cast %693 : vector<16x32xf32> to vector<1x16x32xf32>
    tpu.vector_store %arg13[%c1_288, %c0_289, %c0_290], %696 {strides = array<i32>} : memref<2x16x32xf32, #tpu.memory_space<vmem>>, vector<1x16x32xf32>,
    %c1_291 = arith.constant 1 : index
    %c0_292 = arith.constant 0 : index
    %c0_293 = arith.constant 0 : index
    %697 = vector.load %arg14[%c1_291, %c0_292, %c0_293] : memref<2x16x32xf32, #tpu.memory_space<vmem>>, vector<1x16x32xf32>
    %698 = vector.shape_cast %697 : vector<1x16x32xf32> to vector<16x32xf32>
    %699 = vector.shape_cast %691 : vector<16x32xf32> to vector<1x16x32xf32>
    tpu.vector_store %arg14[%c1_291, %c0_292, %c0_293], %699 {strides = array<i32>} : memref<2x16x32xf32, #tpu.memory_space<vmem>>, vector<1x16x32xf32>,
    %c0_294 = arith.constant 0 : index
    %c0_295 = arith.constant 0 : index
    %700 = vector.load %arg11[%c0_294, %c0_295] : memref<32x128xf32, #tpu.memory_space<vmem>>, vector<32x128xf32>
    %cst_296 = arith.constant dense<0.000000e+00> : vector<8x128xf32>
    %701 = tpu.matmul %420, %700, %cst_296 {dimension_numbers = #tpu.dot_dimension_numbers<[1], [0], [0], [1], [0, 0, 1, 1], [], []>} : vector<8x32xf32>, vector<32x128xf32>, vector<8x128xf32> -> vector<8x128xf32>
    %c0_297 = arith.constant 0 : index
    %c0_298 = arith.constant 0 : index
    %702 = vector.load %arg12[%c0_297, %c0_298] : memref<1x128xf32, #tpu.memory_space<vmem>>, vector<1x128xf32>
    %703 = vector.broadcast %702 : vector<1x128xf32> to vector<8x128xf32>
    %704 = arith.addf %701, %703 : vector<8x128xf32>
    %cst_299 = arith.constant 5.000000e-01 : f32
    %705 = vector.broadcast %cst_299 : f32 to vector<8x128xf32>
    %706 = arith.mulf %705, %704 : vector<8x128xf32>
    %707 = math.tanh %706 : vector<8x128xf32>
    %cst_300 = arith.constant 5.000000e-01 : f32
    %708 = vector.broadcast %cst_300 : f32 to vector<8x128xf32>
    %709 = arith.mulf %708, %707 : vector<8x128xf32>
    %cst_301 = arith.constant 5.000000e-01 : f32
    %710 = vector.broadcast %cst_301 : f32 to vector<8x128xf32>
    %711 = arith.addf %709, %710 : vector<8x128xf32>
    %c0_302 = arith.constant 0 : index
    %c0_303 = arith.constant 0 : index
    %712 = vector.load %arg15[%c0_302, %c0_303] : memref<8x128xf32, #tpu.memory_space<vmem>>, vector<8x128xf32>
    tpu.vector_store %arg15[%c0_302, %c0_303], %711 {strides = array<i32>} : memref<8x128xf32, #tpu.memory_space<vmem>>, vector<8x128xf32>,
    return
  }
  func.func @transform_0(%arg0: i32) -> (i32, i32) {
    %c0_i32 = arith.constant 0 : i32
    %c0_i32_0 = arith.constant 0 : i32
    %c0_i32_1 = arith.constant 0 : i32
    return %c0_i32, %c0_i32_0 : i32, i32
  }
  func.func @transform_1(%arg0: i32) -> (i32, i32) {
    %c0_i32 = arith.constant 0 : i32
    %c0_i32_0 = arith.constant 0 : i32
    %c0_i32_1 = arith.constant 0 : i32
    return %c0_i32, %c0_i32_0 : i32, i32
  }
  func.func @transform_2(%arg0: i32) -> (i32, i32) {
    %c0_i32 = arith.constant 0 : i32
    %c0_i32_0 = arith.constant 0 : i32
    %c0_i32_1 = arith.constant 0 : i32
    return %c0_i32, %c0_i32_0 : i32, i32
  }
  func.func @transform_3(%arg0: i32) -> (i32, i32) {
    %c0_i32 = arith.constant 0 : i32
    %c0_i32_0 = arith.constant 0 : i32
    %c0_i32_1 = arith.constant 0 : i32
    return %c0_i32, %c0_i32_0 : i32, i32
  }
  func.func @transform_4(%arg0: i32) -> (i32, i32) {
    %c0_i32 = arith.constant 0 : i32
    %c0_i32_0 = arith.constant 0 : i32
    %c0_i32_1 = arith.constant 0 : i32
    return %c0_i32, %c0_i32_0 : i32, i32
  }
  func.func @transform_5(%arg0: i32) -> (i32, i32) {
    %c0_i32 = arith.constant 0 : i32
    %c0_i32_0 = arith.constant 0 : i32
    %c0_i32_1 = arith.constant 0 : i32
    return %c0_i32, %c0_i32_0 : i32, i32
  }
  func.func @transform_6(%arg0: i32) -> (i32, i32) {
    %c0_i32 = arith.constant 0 : i32
    %c0_i32_0 = arith.constant 0 : i32
    %c0_i32_1 = arith.constant 0 : i32
    return %c0_i32, %c0_i32_0 : i32, i32
  }
  func.func @transform_7(%arg0: i32) -> (i32, i32) {
    %c0_i32 = arith.constant 0 : i32
    %c0_i32_0 = arith.constant 0 : i32
    %c0_i32_1 = arith.constant 0 : i32
    return %c0_i32, %c0_i32_0 : i32, i32
  }
  func.func @transform_8(%arg0: i32) -> (i32, i32, i32) {
    %c0_i32 = arith.constant 0 : i32
    %c0_i32_0 = arith.constant 0 : i32
    %c0_i32_1 = arith.constant 0 : i32
    %c0_i32_2 = arith.constant 0 : i32
    return %c0_i32, %c0_i32_0, %c0_i32_1 : i32, i32, i32
  }
  func.func @transform_9(%arg0: i32) -> (i32, i32, i32) {
    %c0_i32 = arith.constant 0 : i32
    %c0_i32_0 = arith.constant 0 : i32
    %c0_i32_1 = arith.constant 0 : i32
    %c0_i32_2 = arith.constant 0 : i32
    return %c0_i32, %c0_i32_0, %c0_i32_1 : i32, i32, i32
  }
  func.func @transform_10(%arg0: i32) -> (i32, i32) {
    %c0_i32 = arith.constant 0 : i32
    %c0_i32_0 = arith.constant 0 : i32
    %c0_i32_1 = arith.constant 0 : i32
    return %c0_i32, %c0_i32_0 : i32, i32
  }
  func.func @transform_11(%arg0: i32) -> (i32, i32) {
    %c0_i32 = arith.constant 0 : i32
    %c0_i32_0 = arith.constant 0 : i32
    %c0_i32_1 = arith.constant 0 : i32
    return %c0_i32, %c0_i32_0 : i32, i32
  }
  func.func @transform_12(%arg0: i32) -> (i32, i32, i32) {
    %c0_i32 = arith.constant 0 : i32
    %c0_i32_0 = arith.constant 0 : i32
    %c0_i32_1 = arith.constant 0 : i32
    %c0_i32_2 = arith.constant 0 : i32
    return %c0_i32, %c0_i32_0, %c0_i32_1 : i32, i32, i32
  }
  func.func @transform_13(%arg0: i32) -> (i32, i32, i32) {
    %c0_i32 = arith.constant 0 : i32
    %c0_i32_0 = arith.constant 0 : i32
    %c0_i32_1 = arith.constant 0 : i32
    %c0_i32_2 = arith.constant 0 : i32
    return %c0_i32, %c0_i32_0, %c0_i32_1 : i32, i32, i32
  }
  func.func @transform_14(%arg0: i32) -> (i32, i32) {
    %c0_i32 = arith.constant 0 : i32
    %c0_i32_0 = arith.constant 0 : i32
    %c0_i32_1 = arith.constant 0 : i32
    return %c0_i32, %c0_i32_0 : i32, i32
  }
}

</mosaic_0001>

<bundles_post_ra>
// kernel: _lambda_.1
= control target key start
LH: loop header
LB: loop body
LE: loop exit
PB: predicated region body
PF: predicated region fallthrough
CT: control target
= control target key end

     0   :  { %20 = vsyncpa [#allocation5], 0  ;;  %s4410_s0 = inlined_call_operand.vmem [shape: s32[64,1], index: 0, kind: input, shape index: {}]   ;;  %s4411_s1 = inlined_call_operand.hbm [shape: f32[56,128], index: 1, kind: input, shape index: {}]   ;;  %s4412_s2 = inlined_call_operand.hbm [shape: f32[128,256], index: 2, kind: input, shape index: {}]   ;;  %s4413_s3 = inlined_call_operand.hbm [shape: f32[32,256], index: 3, kind: input, shape index: {}]   ;;  %s4414_s4 = inlined_call_operand.vmem [shape: f32[1,256], index: 4, kind: input, shape index: {}]   ;;  %s4415_s5 = inlined_call_operand.vmem [shape: f32[64,256], index: 5, kind: input, shape index: {}]   ;;  %s4416_s6 = inlined_call_operand.vmem [shape: f32[32,256], index: 6, kind: input, shape index: {}]   ;;  %s4417_s7 = inlined_call_operand.vmem [shape: f32[1,256], index: 7, kind: input, shape index: {}]   ;;  %s4418_s8 = inlined_call_operand.vmem [shape: f32[2,16,32], index: 8, kind: input, shape index: {}]   ;;  %s4419_s9 = inlined_call_operand.vmem [shape: f32[2,16,32], index: 9, kind: input, shape index: {}]   ;;  %s4420_s10 = inlined_call_operand.vmem [shape: f32[32,128], index: 10, kind: input, shape index: {}]   ;;  %s4421_s11 = inlined_call_operand.vmem [shape: f32[1,128], index: 11, kind: input, shape index: {}]   ;;  %s4422_s12 = inlined_call_operand.vmem [shape: f32[2,16,32], index: 12, kind: output, shape index: {0}]   ;;  %s4423_s13 = inlined_call_operand.vmem [shape: f32[2,16,32], index: 13, kind: output, shape index: {1}]   ;;  %s4424_s14 = inlined_call_operand.vmem [shape: f32[8,128], index: 14, kind: output, shape index: {2}]  }
   0x1   :  { %21 = vsyncpa [#allocation7], 0  ;;  %s3593_s29 = smov [#allocation6]   ;;  %s3523_s17 = scalar_lea.hbm %s4412_s2, 4096 }
   0x2   :  { %s41_s30 = sshll.u32 %s3593_s29, 4  ;;  %p3524_p0 = scmp.ne.s32.totalorder %s4412_s2, %s3523_s17  ;;  %s42_s30 = int_to_ptr.vmem [resolvable:$true] %s41_s30 }
   0x3   :  { %p3527_p1 = scmp.lt.u32.totalorder %s3523_s17, %s4412_s2 }
   0x5   :  { %p3529_p2 = pnand %p3527_p1, %p3524_p0 }
   0x7   :  { %3532 = shalt.err (!%p3529_p2)
}
   0x8   :  { %s3533_s22 = scalar_lea.vmem %s42_s30, 4096  ;;  %p3538_p4 = scmp.lt.s32.totalorder %s42_s30, %s42_s30 }
   0x9   :  { %p3534_p3 = scmp.ne.s32.totalorder %s42_s30, %s3533_s22  ;;  %p3539_p5 = scmp.lt.s32.totalorder %s3533_s22, %s3533_s22 }
   0xb   :  { %p3540_p6 = por %p3539_p5, %p3538_p4 }
   0xd   :  { %p3541_p7 = pnand %p3540_p6, %p3534_p3 }
   0xf   :  { %3544 = shalt.err (!%p3541_p7)
}
  0x10   :  { %s3594_s23 = smov 256   ;;  %s3595_s24 = smov 16  }
  0x11   :  { %47 = dma.hbm_to_vmem [thread:$0]  %s4412_s2, 4096, %s42_s30, [#allocation7], %s3594_s23, %s3594_s23, %s3595_s24  }
  0x12   :  { %s3596_s27 = smov [#allocation4]   ;;  %s3545_s16 = scalar_lea.hbm %s4411_s1, 896 }
  0x13   :  { %s29_s28 = sshll.u32 %s3596_s27, 4  ;;  %p3546_p8 = scmp.ne.s32.totalorder %s4411_s1, %s3545_s16  ;;  %s30_s28 = int_to_ptr.vmem [resolvable:$true] %s29_s28 }
  0x14   :  { %p3549_p9 = scmp.lt.u32.totalorder %s3545_s16, %s4411_s1 }
  0x16   :  { %p3551_p10 = pnand %p3549_p9, %p3546_p8 }
  0x18   :  { %3554 = shalt.err (!%p3551_p10)
}
  0x19   :  { %s3555_s21 = scalar_lea.vmem %s30_s28, 896  ;;  %p3560_p12 = scmp.lt.s32.totalorder %s30_s28, %s30_s28 }
  0x1a   :  { %p3556_p11 = scmp.ne.s32.totalorder %s30_s28, %s3555_s21  ;;  %p3561_p13 = scmp.lt.s32.totalorder %s3555_s21, %s3555_s21 }
  0x1c   :  { %p3562_p0 = por %p3561_p13, %p3560_p12 }
  0x1e   :  { %p3563_p1 = pnand %p3562_p0, %p3556_p11 }
  0x20   :  { %3566 = shalt.err (!%p3563_p1)
}
  0x21   :  { %s3597_s2 = smov 128   ;;  %s3598_s30 = smov 8  }
  0x22   :  { %35 = dma.hbm_to_vmem [thread:$0]  %s4411_s1, 896, %s30_s28, [#allocation5], %s3597_s2, %s3597_s2, %s3598_s30  }
  0x23   :  { %s3599_s26 = smov [#allocation8]   ;;  %s3567_s16 = scalar_lea.hbm %s4413_s3, 1024 }
  0x24   :  { %s53_s27 = sshll.u32 %s3599_s26, 4  ;;  %p3568_p2 = scmp.ne.s32.totalorder %s4413_s3, %s3567_s16  ;;  %s54_s27 = int_to_ptr.vmem [resolvable:$true] %s53_s27 }
  0x25   :  { %p3571_p3 = scmp.lt.u32.totalorder %s3567_s16, %s4413_s3 }
  0x27   :  { %p3573_p4 = pnand %p3571_p3, %p3568_p2 }
  0x29   :  { %3576 = shalt.err (!%p3573_p4)
}
  0x2a   :  { %s3577_s21 = scalar_lea.vmem %s54_s27, 1024  ;;  %p3582_p6 = scmp.lt.s32.totalorder %s54_s27, %s54_s27 }
  0x2b   :  { %p3578_p5 = scmp.ne.s32.totalorder %s54_s27, %s3577_s21  ;;  %p3583_p7 = scmp.lt.s32.totalorder %s3577_s21, %s3577_s21 }
  0x2d   :  { %p3584_p8 = por %p3583_p7, %p3582_p6 }
  0x2f   :  { %p3585_p9 = pnand %p3584_p8, %p3578_p5 }
  0x31   :  { %3588 = shalt.err (!%p3585_p9)
}
  0x32   :  { %59 = dma.hbm_to_vmem [thread:$0]  %s4413_s3, 1024, %s54_s27, [#allocation7], %s3594_s23, %s3594_s23, %s3595_s24  }
  0x33   :  { %3589 = dma.done.wait [#allocation5], 896  }
  0x34   :  { %3590 = vsyncadd [#allocation5], 4294966400 }
  0x35   :  { %3591 = dma.done.wait [#allocation7], 5120  }
  0x36   :  { %3592 = vsyncadd [#allocation7], 4294962176  ;;  %v3600_v0 = vmov 0   ;;  %v3601_v1 = vmov 0.0   ;;  %v87_v2 = vld [vmem:[%s4410_s0 + $0x10] sm:$0xff]  ;;  %v85_v3 = vld [vmem:[%s4410_s0] sm:$0xff] }
  0x37   :  { %3328 = vset.pattern.permute.xlu1 %v3600_v0  ;;  %3327 = vset.pattern.permute.xlu0 %v3600_v0  ;;  %v88_v4 = vld [vmem:[%s4410_s0 + $0x18] sm:$0xff]  ;;  %v86_v5 = vld [vmem:[%s4410_s0 + $0x8] sm:$0xff]  ;;  %v143_v6 = vld [vmem:[#allocation4] sm:$0xff]  ;;  %vm150_vm0 = vcmask 457728   ;;  %vm465_vm9 = vcmask 261120   ;;  %s3603_s3 = smov 32  }
  0x38   :  { %388 = vmatprep.mubr.f32.mxu1 %v3601_v1  ;;  %102 = vperm.xlu1 %3328, %v87_v2   ;;  %v144_v7 = vld [vmem:[#allocation4 + $0x8] sm:$0xff]  ;;  %v145_v8 = vld [vmem:[#allocation4 + $0x10] sm:$0xff]  ;;  %v146_v9 = vld [vmem:[#allocation4 + $0x18] sm:$0xff]  ;;  %vm612_vm10 = vcmask 523520   ;;  %vm1638_vm11 = vcmask 523264   ;;  %vm3605_vm12 = vmmov 0  }
  0x39   :  { %96 = vperm.xlu0 %3327, %v85_v3   ;;  %v3119_v10 = vpack.c.bf16 %v144_v7, %v143_v6  ;;  %v3123_v11 = vpack.c.bf16 %v146_v9, %v145_v8  ;;  %v147_v12 = vld [vmem:[#allocation4 + $0x20] sm:$0xff]  ;;  %v148_v13 = vld [vmem:[#allocation4 + $0x28] sm:$0xff]  ;;  %v92_v17 = vld [vmem:[%s4410_s0 + $0x38] sm:$0xff]  ;;  %v93_v8 = vlaneseq }
  0x3a   :  { %v90_v14 = vld [vmem:[%s4410_s0 + $0x28] sm:$0xff]  ;;  %v89_v15 = vld [vmem:[%s4410_s0 + $0x20] sm:$0xff]  ;;  %v3127_v16 = vpack.c.bf16 %v148_v13, %v147_v12  ;;  %v91_v18 = vld [vmem:[%s4410_s0 + $0x30] sm:$0xff] }
  0x3b   :  { %3120 = vmatprep.subr.bf16.mxu0 %v3119_v10  ;;  %v149_v19 = vld [vmem:[#allocation4 + $0x30] sm:$0xff]  ;;  %v281_v20 = vld [vmem:[#allocation6 + $0x8] sm:$0xff]  ;;  %v280_v22 = vld [vmem:[#allocation6] sm:$0xff]  ;;  %v94_v9 = vand.u32 127, %v93_v8 }
  0x3c   :  { %105 = vperm.xlu1 %3328, %v88_v4   ;;  %3122 = vmatpush3.bf16.msra.mxu0 %v3119_v10  ;;  %v283_v21 = vld [vmem:[#allocation6 + $0x18] sm:$0xff]  ;;  %v282_v24 = vld [vmem:[#allocation6 + $0x10] sm:$0xff]  ;;  %v285_v25 = vld [vmem:[#allocation6 + $0x28] sm:$0xff] }
  0x3d   :  { %99 = vperm.xlu0 %3327, %v86_v5   ;;  %3124 = vmatprep.subr.bf16.mxu0 %v3123_v11  ;;  %v3131_v23 = vpack.c.bf16 %v283_v21, %v281_v20  ;;  %v287_v26 = vld [vmem:[#allocation6 + $0x38] sm:$0xff]  ;;  %v3133_v27 = vpack.c.bf16 %v282_v24, %v280_v22  ;;  %v284_v29 = vld [vmem:[#allocation6 + $0x20] sm:$0xff]  ;;  %v286_v30 = vld [vmem:[#allocation6 + $0x30] sm:$0xff] }
  0x3e   :  { %v3135_v28 = vpack.c.bf16 %v287_v26, %v285_v25  ;;  %v289_v31 = vld [vmem:[#allocation6 + $0x48] sm:$0xff]  ;;  %v291_v32 = vld [vmem:[#allocation6 + $0x58] sm:$0xff]  ;;  %v3137_v33 = vpack.c.bf16 %v286_v30, %v284_v29  ;;  %v288_v35 = vld [vmem:[#allocation6 + $0x40] sm:$0xff] }
  0x3f   :  { %3132 = vmatprep.subr.bf16.mxu1 %v3131_v23  ;;  %v3139_v34 = vpack.c.bf16 %v291_v32, %v289_v31  ;;  %v290_v36 = vld [vmem:[#allocation6 + $0x50] sm:$0xff]  ;;  %v293_v37 = vld [vmem:[#allocation6 + $0x68] sm:$0xff]  ;;  %v295_v38 = vld [vmem:[#allocation6 + $0x78] sm:$0xff] }
  0x40   :  { %111 = vperm.xlu1 %3328, %v90_v14   ;;  %3126 = vmatpush3.bf16.msra.mxu0 %v3123_v11  ;;  %v3141_v39 = vpack.c.bf16 %v290_v36, %v288_v35  ;;  %v292_v40 = vld [vmem:[#allocation6 + $0x60] sm:$0xff]  ;;  %v3143_v41 = vpack.c.bf16 %v295_v38, %v293_v37  ;;  %v294_v42 = vld [vmem:[#allocation6 + $0x70] sm:$0xff]  ;;  %v454_v43 = vld [vmem:[#allocation8 + $0x8] sm:$0xff] }
  0x41   :  { %108 = vperm.xlu0 %3327, %v89_v15   ;;  %3128 = vmatprep.subr.bf16.mxu0 %v3127_v16  ;;  %v456_v44 = vld [vmem:[#allocation8 + $0x18] sm:$0xff]  ;;  %v297_v45 = vld [vmem:[#allocation6 + $0x88] sm:$0xff]  ;;  %v3145_v48 = vpack.c.bf16 %v294_v42, %v292_v40  ;;  %v296_v50 = vld [vmem:[#allocation6 + $0x80] sm:$0xff] }
  0x42   :  { %3134 = vmatpush1.bf16.msra.mxu1 %v3133_v27  ;;  %v299_v46 = vld [vmem:[#allocation6 + $0x98] sm:$0xff]  ;;  %v3749_v47 = vpack.c.bf16 %v456_v44, %v454_v43  ;;  %v298_v51 = vld [vmem:[#allocation6 + $0x90] sm:$0xff]  ;;  %v301_v52 = vld [vmem:[#allocation6 + $0xa8] sm:$0xff] }
  0x43   :  { %3136 = vmatprep.subr.bf16.mxu1 %v3135_v28  ;;  %v3147_v49 = vpack.c.bf16 %v299_v46, %v297_v45  ;;  %v303_v53 = vld [vmem:[#allocation6 + $0xb8] sm:$0xff]  ;;  %v3149_v54 = vpack.c.bf16 %v298_v51, %v296_v50  ;;  %v300_v56 = vld [vmem:[#allocation6 + $0xa0] sm:$0xff]  ;;  %v302_v57 = vld [vmem:[#allocation6 + $0xb0] sm:$0xff]  ;;  %v3808_v50 = vshrl.u32 %v93_v8, 7 }
  0x44   :  { %117 = vperm.xlu1 %3328, %v92_v17   ;;  %3130 = vmatpush3.bf16.msra.mxu0 %v3127_v16  ;;  %v3151_v55 = vpack.c.bf16 %v303_v53, %v301_v52  ;;  %v305_v58 = vld [vmem:[#allocation6 + $0xc8] sm:$0xff]  ;;  %v307_v59 = vld [vmem:[#allocation6 + $0xd8] sm:$0xff]  ;;  %v3153_v60 = vpack.c.bf16 %v302_v57, %v300_v56  ;;  %v304_v62 = vld [vmem:[#allocation6 + $0xc0] sm:$0xff] }
  0x45   :  { %114 = vperm.xlu0 %3327, %v91_v18   ;;  %3094 = vmatprep.subr.mxu0 %v149_v19  ;;  %v3155_v61 = vpack.c.bf16 %v307_v59, %v305_v58  ;;  %v306_v63 = vld [vmem:[#allocation6 + $0xd0] sm:$0xff]  ;;  %v309_v0 = vld [vmem:[#allocation6 + $0xe8] sm:$0xff]  ;;  %v311_v2 = vld [vmem:[#allocation6 + $0xf8] sm:$0xff]  ;;  %v316_v51 = vsub.s32 0, %v3808_v50  ;;  %v320_v53 = vsub.s32 1, %v3808_v50 }
  0x46   :  { %3138 = vmatpush1.bf16.msra.mxu1 %v3137_v33  ;;  %v3157_v3 = vpack.c.bf16 %v306_v63, %v304_v62  ;;  %v3159_v4 = vpack.c.bf16 %v311_v2, %v309_v0  ;;  %v308_v5 = vld [vmem:[#allocation6 + $0xe0] sm:$0xff]  ;;  %v310_v6 = vld [vmem:[#allocation6 + $0xf0] sm:$0xff]  ;;  %v458_v29 = vld [vmem:[#allocation8 + $0x28] sm:$0xff] }
  0x47   :  { %3140 = vmatprep.subr.bf16.mxu1 %v3139_v34  ;;  %v3161_v7 = vpack.c.bf16 %v310_v6, %v308_v5  ;;  %v453_v12 = vld [vmem:[#allocation8] sm:$0xff]  ;;  %v455_v13 = vld [vmem:[#allocation8 + $0x10] sm:$0xff]  ;;  %v460_v30 = vld [vmem:[#allocation8 + $0x38] sm:$0xff] }
  0x48   :  { %3095 = vmatpush3.msra.mxu0 %v149_v19  ;;  %v3756_v17 = vpack.c.bf16 %v455_v13, %v453_v12  ;;  %v3774_v31 = vpack.c.bf16 %v460_v30, %v458_v29  ;;  %v457_v32 = vld [vmem:[#allocation8 + $0x20] sm:$0xff]  ;;  %v459_v33 = vld [vmem:[#allocation8 + $0x30] sm:$0xff]  ;;  %v461_v35 = vld [vmem:[%s4418_s8] sm:$0xff] }
  0x49   :  { %3164 = vmatprep.subr.bf16.mxu0 %v3749_v47  ;;  %v3776_v34 = vpack.c.bf16 %v459_v33, %v457_v32  ;;  %v462_v36 = vld [vmem:[%s4418_s8 + $0x8] sm:$0xff]  ;;  %v312_v52 = vld [vmem:[%s4414_s4] sm:$0x3]  ;;  %s3602_s4 = smov 64  }
  0x4a   :  { %3142 = vmatpush1.bf16.msra.mxu1 %v3141_v39 }
  0x4b   :  { %3144 = vmatprep.subr.bf16.mxu1 %v3143_v41 }
  0x4e   :  { %3146 = vmatpush1.bf16.msra.mxu1 %v3145_v48 }
  0x4f   :  { %3148 = vmatprep.subr.bf16.mxu1 %v3147_v49 }
  0x52   :  { %3150 = vmatpush1.bf16.msra.mxu1 %v3149_v54  ;;  %v317_v54 = vrot.slane %v312_v52, %v316_v51 }
  0x53   :  { %3152 = vmatprep.subr.bf16.mxu1 %v3151_v55  ;;  %v321_v55 = vrot.slane %v312_v52, %v320_v53 }
  0x56   :  { %3154 = vmatpush1.bf16.msra.mxu1 %v3153_v60 }
  0x57   :  { %3156 = vmatprep.subr.bf16.mxu1 %v3155_v61 }
  0x5a   :  { %3158 = vmatpush1.bf16.msra.mxu1 %v3157_v3 }
  0x5b   :  { %3160 = vmatprep.subr.bf16.mxu1 %v3159_v4 }
  0x5e   :  { %3162 = vmatpush1.bf16.msra.mxu1 %v3161_v7 }
  0x5f   :  { %3204 = vmatprep.subr.bf16.mxu1 %v3749_v47 }
  0xb7   :  { %v103_v10 = vpop.permute.xlu1 %102 }
  0xb8   :  { %v97_v11 = vpop.permute.xlu0 %96  ;;  %vm121_vm2 = vcmp.eq.s32.totalorder %v103_v10, %v94_v9 }
  0xb9   :  { %vm119_vm1 = vcmp.eq.s32.totalorder %v97_v11, %v94_v9  ;;  %v2998_v18 = vsel %vm121_vm2, 1.0, %v3601_v1 }
  0xba   :  { %v2996_v14 = vsel %vm119_vm1, 1.0, %v3601_v1 }
  0xbb   :  { %3096 = vmatprep.mubr.msk.f32.mxu0 %vm150_vm0, %v2996_v14  ;;  %v106_v15 = vpop.permute.xlu1 %105  ;;  %v463_v14 = vld [vmem:[%s4419_s9] sm:$0xff] }
  0xbc   :  { %v100_v16 = vpop.permute.xlu0 %99  ;;  %vm122_vm3 = vcmp.eq.s32.totalorder %v106_v15, %v94_v9 }
  0xbd   :  { %vm120_vm4 = vcmp.eq.s32.totalorder %v100_v16, %v94_v9  ;;  %v2999_v20 = vsel %vm122_vm3, 1.0, %v3601_v1 }
  0xbe   :  { %v2997_v19 = vsel %vm120_vm4, 1.0, %v3601_v1 }
  0xbf   :  { %3097 = vmatmul.mubr.msk.f32.vlgmr.msra.gmra.mrb[0].mxu0 %vm150_vm0, %v2997_v19  ;;  %v112_v21 = vpop.permute.xlu1 %111 }
  0xc0   :  { %v109_v22 = vpop.permute.xlu0 %108  ;;  %3099 = vmatprep.mubr.msk.f32.mxu0 %vm150_vm0, %v2998_v18  ;;  %3166 = vmatpush1.bf16.msra.mxu0 %v3756_v17  ;;  %vm124_vm6 = vcmp.eq.s32.totalorder %v112_v21, %v94_v9 }
  0xc1   :  { %vm123_vm5 = vcmp.eq.s32.totalorder %v109_v22, %v94_v9  ;;  %v3001_v26 = vsel %vm124_vm6, 1.0, %v3601_v1  ;;  %3168 = vmatprep.subr.bf16.mxu0 %v3774_v31 }
  0xc2   :  { %v3000_v23 = vsel %vm123_vm5, 1.0, %v3601_v1 }
  0xc3   :  { %3100 = vmatmul.mubr.msk.f32.gmra.mrb[2].mxu0 %vm150_vm0, %v2999_v20  ;;  %v118_v24 = vpop.permute.xlu1 %117  ;;  %v464_v20 = vld [vmem:[%s4419_s9 + $0x8] sm:$0xff] }
  0xc4   :  { %3102 = vmatprep.mubr.msk.f32.mxu0 %vm150_vm0, %v3000_v23  ;;  %v115_v25 = vpop.permute.xlu0 %114  ;;  %vm126_vm8 = vcmp.eq.s32.totalorder %v118_v24, %v94_v9  ;;  %3170 = vmatpush1.bf16.msra.mxu0 %v3776_v34 }
  0xc5   :  { %vm125_vm7 = vcmp.eq.s32.totalorder %v115_v25, %v94_v9  ;;  %v3003_v28 = vsel %vm126_vm8, 1.0, %v3601_v1  ;;  %3172 = vmatprep.subr.bf16.mxu0 %v3749_v47 }
  0xc6   :  { %v3002_v27 = vsel %vm125_vm7, 1.0, %v3601_v1 }
  0xc7   :  { %3103 = vmatmul.mubr.msk.f32.gmra.mrb[4].mxu0 %vm150_vm0, %v3001_v26 }
  0xc8   :  { %3105 = vmatprep.mubr.msk.f32.mxu0 %vm150_vm0, %v3002_v27 }
  0xcb   :  { %3106 = vmatmul.mubr.msk.f32.gmra.mrb[6].mxu0 %vm150_vm0, %v3003_v28 }
  0xcc   :  { %536 = vmatprep.mubr.f32.mxu0 %v3601_v1 }
  0xcf   :  { %3012 = vmatmul.mubr.msk.f32.vlgmr.msra.gmra.mrb[8].mxu0 %vm465_vm9, %v461_v35 }
  0xd0   :  { %541 = vmatprep.mubr.f32.mxu0 %v3601_v1  ;;  %3174 = vmatpush1.bf16.msra.mxu0 %v3756_v17 }
  0xd1   :  { %3176 = vmatprep.subr.bf16.mxu0 %v3774_v31 }
  0xd3   :  { %3013 = vmatmul.mubr.msk.f32.gmra.mrb[10].mxu0 %vm465_vm9, %v462_v36 }
  0xd4   :  { %3178 = vmatpush1.bf16.msra.mxu0 %v3776_v34  ;;  %684 = vmatprep.mubr.f32.mxu0 %v3601_v1 }
  0xd5   :  { %3180 = vmatprep.subr.bf16.mxu0 %v3749_v47 }
 0x192   :  { %v3098_v37 = vpop.f32.mrb[0].mxu0 }
 0x193   :  { %v241_v38 = vpop.f32.mrb[1].mxu0 }
 0x194   :  { %389 = vmatmul.mubr.f32.vlgmr.msra.gmra.mrb[0].mxu1 %v241_v38 }
 0x195   :  { %394 = vmatprep.mubr.f32.mxu1 %v3601_v1  ;;  %3206 = vmatpush1.bf16.msra.mxu1 %v3756_v17 }
 0x196   :  { %v3101_v39 = vpop.f32.mrb[2].mxu0  ;;  %3208 = vmatprep.subr.bf16.mxu1 %v3774_v31 }
 0x197   :  { %v251_v40 = vpop.f32.mrb[3].mxu0 }
 0x198   :  { %395 = vmatmul.mubr.f32.gmra.mrb[2].mxu1 %v3098_v37 }
 0x199   :  { %400 = vmatprep.mubr.f32.mxu1 %v3601_v1  ;;  %3210 = vmatpush1.bf16.msra.mxu1 %v3776_v34 }
 0x19a   :  { %v3104_v41 = vpop.f32.mrb[4].mxu0  ;;  %3220 = vmatprep.subr.bf16.mxu1 %v3749_v47 }
 0x19b   :  { %v261_v42 = vpop.f32.mrb[5].mxu0 }
 0x19c   :  { %401 = vmatmul.mubr.f32.gmra.mrb[4].mxu1 %v251_v40 }
 0x19d   :  { %406 = vmatprep.mubr.f32.mxu1 %v3601_v1 }
 0x19e   :  { %v3107_v43 = vpop.f32.mrb[6].mxu0 }
 0x19f   :  { %v271_v44 = vpop.f32.mrb[7].mxu0 }
 0x1a0   :  { %407 = vmatmul.mubr.f32.gmra.mrb[6].mxu1 %v3101_v39 }
 0x1a1   :  { %412 = vmatprep.mubr.f32.mxu1 %v3601_v1 }
 0x1a2   :  { %v538_v45 = vpop.f32.mrb[8].mxu0 }
 0x1a3   :  { %v540_v46 = vpop.f32.mrb[9].mxu0 }
 0x1a4   :  { %413 = vmatmul.mubr.f32.gmra.mrb[8].mxu1 %v261_v42 }
 0x1a5   :  { %418 = vmatprep.mubr.f32.mxu1 %v3601_v1 }
 0x1a6   :  { %v543_v48 = vpop.f32.mrb[10].mxu0 }
 0x1a7   :  { %v544_v49 = vpop.f32.mrb[11].mxu0 }
 0x1a8   :  { %419 = vmatmul.mubr.f32.gmra.mrb[10].mxu1 %v3104_v41 }
 0x1a9   :  { %424 = vmatprep.mubr.f32.mxu1 %v3601_v1 }
 0x1ac   :  { %425 = vmatmul.mubr.f32.gmra.mrb[12].mxu1 %v271_v44 }
 0x1ad   :  { %430 = vmatprep.mubr.f32.mxu1 %v3601_v1 }
 0x1b0   :  { %431 = vmatmul.mubr.f32.gmra.mrb[14].mxu1 %v3107_v43 }
 0x1b1   :  { %1240 = vmatprep.mubr.f32.mxu1 %v3601_v1 }
 0x267   :  { %v390_v56 = vpop.f32.mrb[0].mxu1 }
 0x268   :  { %v391_v57 = vadd.f32 %v390_v56, %v317_v54  ;;  %v392_v58 = vpop.f32.mrb[1].mxu1 }
 0x269   :  { %v3819_v59 = vadd.f32 %v392_v58, %v321_v55 }
 0x26a   :  { %v548_v60 = vadd.f32 %v538_v45, %v391_v57 }
 0x26b   :  { %v396_v61 = vpop.f32.mrb[2].mxu1 }
 0x26c   :  { %3329 = vtanh.f32 %v548_v60  ;;  %v3821_v62 = vadd.f32 %v396_v61, %v317_v54  ;;  %v398_v63 = vpop.f32.mrb[3].mxu1  ;;  %v551_v33 = vmul.f32 0.5, %v548_v60 }
 0x26d   :  { %v3823_v0 = vadd.f32 %v398_v63, %v321_v55 }
 0x26f   :  { %v402_v2 = vpop.f32.mrb[4].mxu1 }
 0x270   :  { %v3825_v3 = vadd.f32 %v402_v2, %v317_v54  ;;  %v404_v4 = vpop.f32.mrb[5].mxu1 }
 0x271   :  { %v3827_v5 = vadd.f32 %v404_v4, %v321_v55 }
 0x273   :  { %v408_v6 = vpop.f32.mrb[6].mxu1 }
 0x274   :  { %v3829_v7 = vadd.f32 %v408_v6, %v317_v54  ;;  %v410_v8 = vpop.f32.mrb[7].mxu1 }
 0x275   :  { %v3831_v9 = vadd.f32 %v410_v8, %v321_v55 }
 0x276   :  { %v3330_v10 = vpop.eup %3329 }
 0x277   :  { %v414_v11 = vpop.f32.mrb[8].mxu1  ;;  %573 = vrot.lane.b32.xlu0 %v3330_v10, %s3602_s4 }
 0x278   :  { %v3834_v12 = vadd.f32 %v414_v11, %v317_v54  ;;  %v416_v13 = vpop.f32.mrb[9].mxu1 }
 0x279   :  { %v3839_v15 = vadd.f32 %v416_v13, %v321_v55 }
 0x27b   :  { %v420_v16 = vpop.f32.mrb[10].mxu1  ;;  %563 = vrot.lane.b32.xlu0 %v463_v14, %s3603_s3 }
 0x27c   :  { %v3842_v18 = vadd.f32 %v420_v16, %v317_v54  ;;  %v422_v19 = vpop.f32.mrb[11].mxu1 }
 0x27d   :  { %v3847_v21 = vadd.f32 %v422_v19, %v321_v55 }
 0x27f   :  { %565 = vrot.lane.b32.xlu0 %v464_v20, %s3603_s3  ;;  %v426_v22 = vpop.f32.mrb[12].mxu1 }
 0x280   :  { %v3850_v23 = vadd.f32 %v426_v22, %v317_v54  ;;  %v428_v24 = vpop.f32.mrb[13].mxu1 }
 0x281   :  { %v3852_v25 = vadd.f32 %v428_v24, %v321_v55 }
 0x283   :  { %v432_v26 = vpop.f32.mrb[14].mxu1 }
 0x284   :  { %v3854_v27 = vadd.f32 %v432_v26, %v317_v54  ;;  %v434_v28 = vpop.f32.mrb[15].mxu1 }
 0x285   :  { %v435_v29 = vadd.f32 %v434_v28, %v321_v55 }
 0x287   :  { %v550_v30 = vadd.f32 %v544_v49, %v435_v29 }
 0x289   :  { %3331 = vtanh.f32 %v550_v30  ;;  %v552_v40 = vmul.f32 0.5, %v550_v30 }
 0x28a   :  { %3333 = vtanh.f32 %v551_v33 }
 0x28b   :  { %3335 = vtanh.f32 %v552_v40 }
 0x293   :  { %v3332_v32 = vpop.eup %3331 }
 0x294   :  { %575 = vrot.lane.b32.xlu1 %v3332_v32, %s3602_s4  ;;  %v3334_v35 = vpop.eup %3333 }
 0x295   :  { %v555_v36 = vmul.f32 0.5, %v3334_v35  ;;  %v3336_v41 = vpop.eup %3335 }
 0x296   :  { %v556_v42 = vmul.f32 0.5, %v3336_v41 }
 0x297   :  { %v557_v37 = vadd.f32 0.5, %v555_v36 }
 0x298   :  { %v558_v43 = vadd.f32 0.5, %v556_v42 }
 0x2e9   :  { %v574_v38 = vpop.permute.xlu0 %573 }
 0x2ea   :  { %v579_v39 = vmul.f32 %v574_v38, %v557_v37 }
 0x2ec   :  { %583 = vrot.lane.b32.xlu1 %v579_v39, %s3603_s3 }
 0x2ed   :  { %v564_v46 = vpop.permute.xlu0 %563 }
 0x2ee   :  { %v569_v48 = vmul.f32 %v564_v46, %v557_v37 }
 0x2f1   :  { %v566_v55 = vpop.permute.xlu0 %565 }
 0x2f2   :  { %v570_v56 = vmul.f32 %v566_v55, %v558_v43 }
 0x306   :  { %v576_v44 = vpop.permute.xlu1 %575 }
 0x307   :  { %v580_v45 = vmul.f32 %v576_v44, %v558_v43 }
 0x309   :  { %585 = vrot.lane.b32.xlu1 %v580_v45, %s3603_s3 }
 0x35e   :  { %v584_v49 = vpop.permute.xlu1 %583 }
 0x35f   :  { %v589_v52 = vadd.f32 %v584_v49, %v569_v48 }
 0x361   :  { %3337 = vtanh.f32 %v589_v52 }
 0x36b   :  { %v3338_v54 = vpop.eup %3337 }
 0x36c   :  { %595 = vrot.lane.b32.xlu0 %v3338_v54, %s3602_s4 }
 0x37b   :  { %v586_v57 = vpop.permute.xlu1 %585 }
 0x37c   :  { %v590_v58 = vadd.f32 %v586_v57, %v570_v56 }
 0x37e   :  { %3339 = vtanh.f32 %v590_v58 }
 0x388   :  { %v3340_v60 = vpop.eup %3339 }
 0x389   :  { %597 = vrot.lane.b32.xlu1 %v3340_v60, %s3602_s4 }
 0x3de   :  { %v596_v61 = vpop.permute.xlu0 %595 }
 0x3df   :  { %v601_v63 = vmul.f32 %v596_v61, %v557_v37 }
 0x3e1   :  { %604 = vrot.lane.b32.xlu0 %v601_v63, %s3603_s3 }
 0x3fb   :  { %v598_v2 = vpop.permute.xlu1 %597 }
 0x3fc   :  { %v3862_v4 = vmul.f32 %v598_v2, %v558_v43 }
 0x3fe   :  { %614 = vrot.lane.b32.xlu1 %v3862_v4, %s3603_s3 }
 0x453   :  { %v605_v6 = vpop.permute.xlu0 %604 }
 0x454   :  { %607 = vst.msk [vmem:[#allocation2] sm:$0xff] %vm465_vm9, %v605_v6  ;;  %3014 = vmatmul.mubr.msk.f32.vlgmr.msra.gmra.mrb[12].mxu0 %vm465_vm9, %v605_v6 }
 0x455   :  { %689 = vmatprep.mubr.f32.mxu0 %v3601_v1  ;;  %3182 = vmatpush1.bf16.msra.mxu0 %v3756_v17 }
 0x456   :  { %3184 = vmatprep.subr.bf16.mxu0 %v3774_v31 }
 0x459   :  { %3186 = vmatpush1.bf16.msra.mxu0 %v3776_v34 }
 0x45a   :  { %3188 = vmatprep.subr.bf16.mxu0 %v3749_v47 }
 0x470   :  { %v615_v8 = vpop.permute.xlu1 %614 }
 0x471   :  { %3015 = vmatmul.mubr.msk.f32.gmra.mrb[14].mxu0 %vm465_vm9, %v615_v8 }
 0x472   :  { %823 = vmatprep.mubr.f32.mxu0 %v3601_v1 }
 0x527   :  { %v686_v10 = vpop.f32.mrb[12].mxu0 }
 0x528   :  { %v696_v11 = vadd.f32 %v686_v10, %v3821_v62  ;;  %v688_v13 = vpop.f32.mrb[13].mxu0 }
 0x52a   :  { %3341 = vtanh.f32 %v696_v11  ;;  %v699_v24 = vmul.f32 0.5, %v696_v11 }
 0x534   :  { %v3342_v14 = vpop.eup %3341 }
 0x535   :  { %713 = vrot.lane.b32.xlu0 %v3342_v14, %s3602_s4 }
 0x544   :  { %v691_v16 = vpop.f32.mrb[14].mxu0 }
 0x545   :  { %v692_v19 = vpop.f32.mrb[15].mxu0 }
 0x546   :  { %v698_v20 = vadd.f32 %v692_v19, %v3852_v25 }
 0x548   :  { %3343 = vtanh.f32 %v698_v20  ;;  %v700_v32 = vmul.f32 0.5, %v698_v20 }
 0x549   :  { %3345 = vtanh.f32 %v699_v24 }
 0x54a   :  { %3347 = vtanh.f32 %v700_v32 }
 0x552   :  { %v3344_v22 = vpop.eup %3343 }
 0x553   :  { %715 = vrot.lane.b32.xlu1 %v3344_v22, %s3602_s4  ;;  %v3346_v26 = vpop.eup %3345 }
 0x554   :  { %v703_v28 = vmul.f32 0.5, %v3346_v26  ;;  %v3348_v33 = vpop.eup %3347 }
 0x555   :  { %v704_v35 = vmul.f32 0.5, %v3348_v33 }
 0x556   :  { %v705_v29 = vadd.f32 0.5, %v703_v28 }
 0x557   :  { %v706_v36 = vadd.f32 0.5, %v704_v35 }
 0x558   :  { %v709_v38 = vmul.f32 %v705_v29, %v589_v52 }
 0x559   :  { %v710_v42 = vmul.f32 %v706_v36, %v590_v58 }
 0x5a7   :  { %v714_v30 = vpop.permute.xlu0 %713 }
 0x5a8   :  { %v719_v62 = vmul.f32 %v714_v30, %v705_v29 }
 0x5aa   :  { %723 = vrot.lane.b32.xlu0 %v719_v62, %s3603_s3 }
 0x5c5   :  { %v716_v37 = vpop.permute.xlu1 %715 }
 0x5c6   :  { %v720_v25 = vmul.f32 %v716_v37, %v706_v36 }
 0x5c8   :  { %725 = vrot.lane.b32.xlu1 %v720_v25, %s3603_s3 }
 0x61c   :  { %v724_v39 = vpop.permute.xlu0 %723 }
 0x61d   :  { %v729_v40 = vadd.f32 %v724_v39, %v709_v38 }
 0x61f   :  { %3349 = vtanh.f32 %v729_v40 }
 0x629   :  { %v3350_v41 = vpop.eup %3349 }
 0x62a   :  { %735 = vrot.lane.b32.xlu0 %v3350_v41, %s3602_s4 }
 0x63a   :  { %v726_v43 = vpop.permute.xlu1 %725 }
 0x63b   :  { %v730_v44 = vadd.f32 %v726_v43, %v710_v42 }
 0x63d   :  { %3351 = vtanh.f32 %v730_v44 }
 0x647   :  { %v3352_v45 = vpop.eup %3351 }
 0x648   :  { %737 = vrot.lane.b32.xlu1 %v3352_v45, %s3602_s4 }
 0x69c   :  { %v736_v46 = vpop.permute.xlu0 %735 }
 0x69d   :  { %v741_v48 = vmul.f32 %v736_v46, %v705_v29 }
 0x69f   :  { %744 = vrot.lane.b32.xlu0 %v741_v48, %s3603_s3 }
 0x6ba   :  { %v738_v49 = vpop.permute.xlu1 %737 }
 0x6bb   :  { %v3884_v54 = vmul.f32 %v738_v49, %v706_v36 }
 0x6bd   :  { %753 = vrot.lane.b32.xlu1 %v3884_v54, %s3603_s3 }
 0x711   :  { %v745_v52 = vpop.permute.xlu0 %744 }
 0x712   :  { %747 = vst.msk [vmem:[#allocation2 + $0x8] sm:$0xff] %vm465_vm9, %v745_v52  ;;  %3016 = vmatmul.mubr.msk.f32.vlgmr.msra.gmra.mrb[16].mxu0 %vm465_vm9, %v745_v52 }
 0x713   :  { %828 = vmatprep.mubr.f32.mxu0 %v3601_v1  ;;  %3190 = vmatpush1.bf16.msra.mxu0 %v3756_v17 }
 0x714   :  { %3192 = vmatprep.subr.bf16.mxu0 %v3774_v31 }
 0x717   :  { %3194 = vmatpush1.bf16.msra.mxu0 %v3776_v34 }
 0x718   :  { %3196 = vmatprep.subr.bf16.mxu0 %v3749_v47 }
 0x72f   :  { %v754_v55 = vpop.permute.xlu1 %753 }
 0x730   :  { %3017 = vmatmul.mubr.msk.f32.gmra.mrb[18].mxu0 %vm465_vm9, %v754_v55 }
 0x731   :  { %962 = vmatprep.mubr.f32.mxu0 %v3601_v1 }
 0x7e5   :  { %v825_v56 = vpop.f32.mrb[16].mxu0 }
 0x7e6   :  { %v835_v57 = vadd.f32 %v825_v56, %v3825_v3  ;;  %v827_v58 = vpop.f32.mrb[17].mxu0 }
 0x7e8   :  { %3353 = vtanh.f32 %v835_v57  ;;  %v838_v8 = vmul.f32 0.5, %v835_v57 }
 0x7f2   :  { %v3354_v60 = vpop.eup %3353 }
 0x7f3   :  { %852 = vrot.lane.b32.xlu0 %v3354_v60, %s3602_s4 }
 0x803   :  { %v830_v61 = vpop.f32.mrb[18].mxu0 }
 0x804   :  { %v831_v63 = vpop.f32.mrb[19].mxu0 }
 0x805   :  { %v837_v2 = vadd.f32 %v831_v63, %v3847_v21 }
 0x807   :  { %3355 = vtanh.f32 %v837_v2  ;;  %v839_v16 = vmul.f32 0.5, %v837_v2 }
 0x808   :  { %3357 = vtanh.f32 %v838_v8 }
 0x809   :  { %3359 = vtanh.f32 %v839_v16 }
 0x811   :  { %v3356_v6 = vpop.eup %3355 }
 0x812   :  { %854 = vrot.lane.b32.xlu1 %v3356_v6, %s3602_s4  ;;  %v3358_v10 = vpop.eup %3357 }
 0x813   :  { %v842_v11 = vmul.f32 0.5, %v3358_v10  ;;  %v3360_v19 = vpop.eup %3359 }
 0x814   :  { %v843_v20 = vmul.f32 0.5, %v3360_v19 }
 0x815   :  { %v844_v13 = vadd.f32 0.5, %v842_v11 }
 0x816   :  { %v845_v22 = vadd.f32 0.5, %v843_v20 }
 0x817   :  { %v848_v26 = vmul.f32 %v844_v13, %v729_v40 }
 0x818   :  { %v849_v62 = vmul.f32 %v845_v22, %v730_v44 }
 0x865   :  { %v853_v14 = vpop.permute.xlu0 %852 }
 0x866   :  { %v858_v3 = vmul.f32 %v853_v14, %v844_v13 }
 0x868   :  { %862 = vrot.lane.b32.xlu0 %v858_v3, %s3603_s3 }
 0x884   :  { %v855_v24 = vpop.permute.xlu1 %854 }
 0x885   :  { %v859_v21 = vmul.f32 %v855_v24, %v845_v22 }
 0x887   :  { %864 = vrot.lane.b32.xlu1 %v859_v21, %s3603_s3 }
 0x8da   :  { %v863_v28 = vpop.permute.xlu0 %862 }
 0x8db   :  { %v868_v29 = vadd.f32 %v863_v28, %v848_v26 }
 0x8dd   :  { %3361 = vtanh.f32 %v868_v29 }
 0x8e7   :  { %v3362_v30 = vpop.eup %3361 }
 0x8e8   :  { %874 = vrot.lane.b32.xlu0 %v3362_v30, %s3602_s4 }
 0x8f9   :  { %v865_v32 = vpop.permute.xlu1 %864 }
 0x8fa   :  { %v869_v33 = vadd.f32 %v865_v32, %v849_v62 }
 0x8fc   :  { %3363 = vtanh.f32 %v869_v33 }
 0x906   :  { %v3364_v35 = vpop.eup %3363 }
 0x907   :  { %876 = vrot.lane.b32.xlu1 %v3364_v35, %s3602_s4 }
 0x95a   :  { %v875_v36 = vpop.permute.xlu0 %874 }
 0x95b   :  { %v880_v37 = vmul.f32 %v875_v36, %v844_v13 }
 0x95d   :  { %883 = vrot.lane.b32.xlu0 %v880_v37, %s3603_s3 }
 0x979   :  { %v877_v25 = vpop.permute.xlu1 %876 }
 0x97a   :  { %v3906_v38 = vmul.f32 %v877_v25, %v845_v22 }
 0x97c   :  { %892 = vrot.lane.b32.xlu1 %v3906_v38, %s3603_s3 }
 0x9cf   :  { %v884_v39 = vpop.permute.xlu0 %883 }
 0x9d0   :  { %886 = vst.msk [vmem:[#allocation2 + $0x10] sm:$0xff] %vm465_vm9, %v884_v39  ;;  %3018 = vmatmul.mubr.msk.f32.vlgmr.msra.gmra.mrb[20].mxu0 %vm465_vm9, %v884_v39 }
 0x9d1   :  { %967 = vmatprep.mubr.f32.mxu0 %v3601_v1  ;;  %3198 = vmatpush1.bf16.msra.mxu0 %v3756_v17 }
 0x9d2   :  { %3200 = vmatprep.subr.bf16.mxu0 %v3774_v31 }
 0x9d5   :  { %3202 = vmatpush1.bf16.msra.mxu0 %v3776_v34 }
 0x9d6   :  { %3212 = vmatprep.subr.bf16.mxu0 %v3749_v47 }
 0x9ee   :  { %v893_v40 = vpop.permute.xlu1 %892 }
 0x9ef   :  { %3019 = vmatmul.mubr.msk.f32.gmra.mrb[22].mxu0 %vm465_vm9, %v893_v40 }
 0x9f0   :  { %1101 = vmatprep.mubr.f32.mxu0 %v3601_v1 }
 0xaa3   :  { %v964_v41 = vpop.f32.mrb[20].mxu0 }
 0xaa4   :  { %v974_v42 = vadd.f32 %v964_v41, %v3829_v7  ;;  %v966_v43 = vpop.f32.mrb[21].mxu0 }
 0xaa6   :  { %3365 = vtanh.f32 %v974_v42  ;;  %v977_v47 = vmul.f32 0.5, %v974_v42 }
 0xab0   :  { %v3366_v44 = vpop.eup %3365 }
 0xab1   :  { %991 = vrot.lane.b32.xlu0 %v3366_v44, %s3602_s4 }
 0xac2   :  { %v969_v45 = vpop.f32.mrb[22].mxu0 }
 0xac3   :  { %v970_v46 = vpop.f32.mrb[23].mxu0 }
 0xac4   :  { %v976_v48 = vadd.f32 %v970_v46, %v3839_v15 }
 0xac6   :  { %3367 = vtanh.f32 %v976_v48  ;;  %v978_v58 = vmul.f32 0.5, %v976_v48 }
 0xac7   :  { %3369 = vtanh.f32 %v977_v47 }
 0xac8   :  { %3371 = vtanh.f32 %v978_v58 }
 0xad0   :  { %v3368_v49 = vpop.eup %3367 }
 0xad1   :  { %993 = vrot.lane.b32.xlu1 %v3368_v49, %s3602_s4  ;;  %v3370_v52 = vpop.eup %3369 }
 0xad2   :  { %v981_v55 = vmul.f32 0.5, %v3370_v52  ;;  %v3372_v60 = vpop.eup %3371 }
 0xad3   :  { %v982_v61 = vmul.f32 0.5, %v3372_v60 }
 0xad4   :  { %v983_v56 = vadd.f32 0.5, %v981_v55 }
 0xad5   :  { %v984_v63 = vadd.f32 0.5, %v982_v61 }
 0xad6   :  { %v987_v6 = vmul.f32 %v983_v56, %v868_v29 }
 0xad7   :  { %v988_v13 = vmul.f32 %v984_v63, %v869_v33 }
 0xb23   :  { %v992_v57 = vpop.permute.xlu0 %991 }
 0xb24   :  { %v997_v7 = vmul.f32 %v992_v57, %v983_v56 }
 0xb26   :  { %1001 = vrot.lane.b32.xlu0 %v997_v7, %s3603_s3 }
 0xb43   :  { %v994_v2 = vpop.permute.xlu1 %993 }
 0xb44   :  { %v998_v15 = vmul.f32 %v994_v2, %v984_v63 }
 0xb46   :  { %1003 = vrot.lane.b32.xlu1 %v998_v15, %s3603_s3 }
 0xb98   :  { %v1002_v8 = vpop.permute.xlu0 %1001 }
 0xb99   :  { %v1007_v10 = vadd.f32 %v1002_v8, %v987_v6 }
 0xb9b   :  { %3373 = vtanh.f32 %v1007_v10 }
 0xba5   :  { %v3374_v11 = vpop.eup %3373 }
 0xba6   :  { %1013 = vrot.lane.b32.xlu0 %v3374_v11, %s3602_s4 }
 0xbb8   :  { %v1004_v14 = vpop.permute.xlu1 %1003 }
 0xbb9   :  { %v1008_v3 = vadd.f32 %v1004_v14, %v988_v13 }
 0xbbb   :  { %3375 = vtanh.f32 %v1008_v3 }
 0xbc5   :  { %v3376_v16 = vpop.eup %3375 }
 0xbc6   :  { %1015 = vrot.lane.b32.xlu1 %v3376_v16, %s3602_s4 }
 0xc18   :  { %v1014_v19 = vpop.permute.xlu0 %1013 }
 0xc19   :  { %v1019_v20 = vmul.f32 %v1014_v19, %v983_v56 }
 0xc1b   :  { %1022 = vrot.lane.b32.xlu0 %v1019_v20, %s3603_s3 }
 0xc38   :  { %v1016_v22 = vpop.permute.xlu1 %1015 }
 0xc39   :  { %v3928_v24 = vmul.f32 %v1016_v22, %v984_v63 }
 0xc3b   :  { %1031 = vrot.lane.b32.xlu1 %v3928_v24, %s3603_s3 }
 0xc8d   :  { %v1023_v21 = vpop.permute.xlu0 %1022 }
 0xc8e   :  { %1025 = vst.msk [vmem:[#allocation2 + $0x18] sm:$0xff] %vm465_vm9, %v1023_v21  ;;  %3020 = vmatmul.mubr.msk.f32.vlgmr.msra.gmra.mrb[24].mxu0 %vm465_vm9, %v1023_v21 }
 0xc8f   :  { %1106 = vmatprep.mubr.f32.mxu0 %v3601_v1  ;;  %3214 = vmatpush1.bf16.msra.mxu0 %v3756_v17 }
 0xc90   :  { %3216 = vmatprep.subr.bf16.mxu0 %v3774_v31 }
 0xc93   :  { %3218 = vmatpush1.bf16.msra.mxu0 %v3776_v34 }
 0xcad   :  { %v1032_v26 = vpop.permute.xlu1 %1031 }
 0xcae   :  { %3021 = vmatmul.mubr.msk.f32.gmra.mrb[26].mxu0 %vm465_vm9, %v1032_v26 }
 0xcaf   :  { %1379 = vmatprep.mubr.f32.mxu0 %v3601_v1 }
 0xd61   :  { %v1103_v28 = vpop.f32.mrb[24].mxu0 }
 0xd62   :  { %v1113_v29 = vadd.f32 %v1103_v28, %v3834_v12  ;;  %v1105_v30 = vpop.f32.mrb[25].mxu0 }
 0xd64   :  { %3377 = vtanh.f32 %v1113_v29  ;;  %v1116_v37 = vmul.f32 0.5, %v1113_v29 }
 0xd6e   :  { %v3378_v62 = vpop.eup %3377 }
 0xd6f   :  { %1130 = vrot.lane.b32.xlu0 %v3378_v62, %s3602_s4 }
 0xd81   :  { %v1108_v32 = vpop.f32.mrb[26].mxu0 }
 0xd82   :  { %v1109_v33 = vpop.f32.mrb[27].mxu0 }
 0xd83   :  { %v1115_v35 = vadd.f32 %v1109_v33, %v3831_v9 }
 0xd85   :  { %3379 = vtanh.f32 %v1115_v35  ;;  %v1117_v42 = vmul.f32 0.5, %v1115_v35 }
 0xd86   :  { %3381 = vtanh.f32 %v1116_v37 }
 0xd87   :  { %3383 = vtanh.f32 %v1117_v42 }
 0xd8f   :  { %v3380_v36 = vpop.eup %3379 }
 0xd90   :  { %1132 = vrot.lane.b32.xlu1 %v3380_v36, %s3602_s4  ;;  %v3382_v25 = vpop.eup %3381 }
 0xd91   :  { %v1120_v39 = vmul.f32 0.5, %v3382_v25  ;;  %v3384_v43 = vpop.eup %3383 }
 0xd92   :  { %v1121_v44 = vmul.f32 0.5, %v3384_v43 }
 0xd93   :  { %v1122_v40 = vadd.f32 0.5, %v1120_v39 }
 0xd94   :  { %v1123_v45 = vadd.f32 0.5, %v1121_v44 }
 0xd95   :  { %v1126_v48 = vmul.f32 %v1122_v40, %v1007_v10 }
 0xd96   :  { %v1127_v55 = vmul.f32 %v1123_v45, %v1008_v3 }
 0xde1   :  { %v1131_v41 = vpop.permute.xlu0 %1130 }
 0xde2   :  { %v1136_v12 = vmul.f32 %v1131_v41, %v1122_v40 }
 0xde4   :  { %1140 = vrot.lane.b32.xlu0 %v1136_v12, %s3603_s3 }
 0xe02   :  { %v1133_v46 = vpop.permute.xlu1 %1132 }
 0xe03   :  { %v1137_v9 = vmul.f32 %v1133_v46, %v1123_v45 }
 0xe05   :  { %1142 = vrot.lane.b32.xlu1 %v1137_v9, %s3603_s3 }
 0xe56   :  { %v1141_v49 = vpop.permute.xlu0 %1140 }
 0xe57   :  { %v1146_v47 = vadd.f32 %v1141_v49, %v1126_v48 }
 0xe59   :  { %3385 = vtanh.f32 %v1146_v47 }
 0xe63   :  { %v3386_v52 = vpop.eup %3385 }
 0xe64   :  { %1152 = vrot.lane.b32.xlu0 %v3386_v52, %s3602_s4 }
 0xe77   :  { %v1143_v56 = vpop.permute.xlu1 %1142 }
 0xe78   :  { %v1147_v57 = vadd.f32 %v1143_v56, %v1127_v55 }
 0xe7a   :  { %3387 = vtanh.f32 %v1147_v57 }
 0xe84   :  { %v3388_v7 = vpop.eup %3387 }
 0xe85   :  { %1154 = vrot.lane.b32.xlu1 %v3388_v7, %s3602_s4 }
 0xed6   :  { %v1153_v58 = vpop.permute.xlu0 %1152 }
 0xed7   :  { %v1158_v60 = vmul.f32 %v1153_v58, %v1122_v40 }
 0xed9   :  { %1161 = vrot.lane.b32.xlu0 %v1158_v60, %s3603_s3 }
 0xef7   :  { %v1155_v61 = vpop.permute.xlu1 %1154 }
 0xef8   :  { %v3949_v63 = vmul.f32 %v1155_v61, %v1123_v45 }
 0xefa   :  { %1170 = vrot.lane.b32.xlu1 %v3949_v63, %s3603_s3 }
 0xf4b   :  { %v3953_v2 = vpop.permute.xlu0 %1161 }
 0xf4c   :  { %3022 = vmatmul.mubr.msk.f32.vlgmr.msra.gmra.mrb[16].mxu1 %vm465_vm9, %v3953_v2 }
 0xf4d   :  { %1245 = vmatprep.mubr.f32.mxu1 %v3601_v1  ;;  %3222 = vmatpush1.bf16.msra.mxu1 %v3756_v17 }
 0xf4e   :  { %3224 = vmatprep.subr.bf16.mxu1 %v3774_v31 }
 0xf51   :  { %3226 = vmatpush1.bf16.msra.mxu1 %v3776_v34 }
 0xf6c   :  { %v1171_v15 = vpop.permute.xlu1 %1170 }
 0xf6d   :  { %3023 = vmatmul.mubr.msk.f32.gmra.mrb[18].mxu1 %vm465_vm9, %v1171_v15 }
 0xf6e   :  { %1518 = vmatprep.mubr.f32.mxu1 %v3601_v1 }
0x101f   :  { %v1242_v6 = vpop.f32.mrb[16].mxu1 }
0x1020   :  { %v1252_v8 = vadd.f32 %v1242_v6, %v3842_v18  ;;  %v1244_v10 = vpop.f32.mrb[17].mxu1 }
0x1022   :  { %3389 = vtanh.f32 %v1252_v8  ;;  %v1255_v34 = vmul.f32 0.5, %v1252_v8 }
0x102c   :  { %v3390_v11 = vpop.eup %3389 }
0x102d   :  { %1269 = vrot.lane.b32.xlu0 %v3390_v11, %s3602_s4 }
0x1040   :  { %v1247_v13 = vpop.f32.mrb[18].mxu1 }
0x1041   :  { %v1248_v14 = vpop.f32.mrb[19].mxu1 }
0x1042   :  { %v1254_v17 = vadd.f32 %v1248_v14, %v3827_v5 }
0x1044   :  { %3391 = vtanh.f32 %v1254_v17  ;;  %v1256_v22 = vmul.f32 0.5, %v1254_v17 }
0x1045   :  { %3393 = vtanh.f32 %v1255_v34 }
0x1046   :  { %3395 = vtanh.f32 %v1256_v22 }
0x104e   :  { %v3392_v31 = vpop.eup %3391 }
0x104f   :  { %1271 = vrot.lane.b32.xlu1 %v3392_v31, %s3602_s4  ;;  %v3394_v3 = vpop.eup %3393 }
0x1050   :  { %v1259_v16 = vmul.f32 0.5, %v3394_v3  ;;  %v3396_v21 = vpop.eup %3395 }
0x1051   :  { %v1260_v26 = vmul.f32 0.5, %v3396_v21 }
0x1052   :  { %v1261_v19 = vadd.f32 0.5, %v1259_v16 }
0x1053   :  { %v1262_v28 = vadd.f32 0.5, %v1260_v26 }
0x1054   :  { %v1265_v30 = vmul.f32 %v1261_v19, %v1146_v47 }
0x1055   :  { %v1266_v35 = vmul.f32 %v1262_v28, %v1147_v57 }
0x109f   :  { %v1270_v20 = vpop.permute.xlu0 %1269 }
0x10a0   :  { %v1275_v18 = vmul.f32 %v1270_v20, %v1261_v19 }
0x10a2   :  { %1279 = vrot.lane.b32.xlu0 %v1275_v18, %s3603_s3 }
0x10c1   :  { %v1272_v29 = vpop.permute.xlu1 %1271 }
0x10c2   :  { %v1276_v5 = vmul.f32 %v1272_v29, %v1262_v28 }
0x10c4   :  { %1281 = vrot.lane.b32.xlu1 %v1276_v5, %s3603_s3 }
0x1114   :  { %v1280_v62 = vpop.permute.xlu0 %1279 }
0x1115   :  { %v1285_v32 = vadd.f32 %v1280_v62, %v1265_v30 }
0x1117   :  { %3397 = vtanh.f32 %v1285_v32 }
0x1121   :  { %v3398_v33 = vpop.eup %3397 }
0x1122   :  { %1291 = vrot.lane.b32.xlu0 %v3398_v33, %s3602_s4 }
0x1136   :  { %v1282_v36 = vpop.permute.xlu1 %1281 }
0x1137   :  { %v1286_v37 = vadd.f32 %v1282_v36, %v1266_v35 }
0x1139   :  { %3399 = vtanh.f32 %v1286_v37 }
0x1143   :  { %v3400_v25 = vpop.eup %3399 }
0x1144   :  { %1293 = vrot.lane.b32.xlu1 %v3400_v25, %s3602_s4 }
0x1194   :  { %v1292_v39 = vpop.permute.xlu0 %1291 }
0x1195   :  { %v1297_v40 = vmul.f32 %v1292_v39, %v1261_v19 }
0x1197   :  { %1300 = vrot.lane.b32.xlu0 %v1297_v40, %s3603_s3 }
0x11b6   :  { %v1294_v41 = vpop.permute.xlu1 %1293 }
0x11b7   :  { %v3972_v12 = vmul.f32 %v1294_v41, %v1262_v28 }
0x11b9   :  { %1309 = vrot.lane.b32.xlu1 %v3972_v12, %s3603_s3 }
0x1209   :  { %v3976_v42 = vpop.permute.xlu0 %1300 }
0x120a   :  { %3024 = vmatmul.mubr.msk.f32.vlgmr.msra.gmra.mrb[28].mxu0 %vm465_vm9, %v3976_v42 }
0x120b   :  { %1384 = vmatprep.mubr.f32.mxu0 %v3601_v1 }
0x122b   :  { %v1310_v43 = vpop.permute.xlu1 %1309 }
0x122c   :  { %3025 = vmatmul.mubr.msk.f32.gmra.mrb[30].mxu0 %vm465_vm9, %v1310_v43 }
0x122d   :  { %1727 = vmatprep.mubr.f32.mxu0 %v3601_v1 }
0x12dd   :  { %v1381_v44 = vpop.f32.mrb[28].mxu0 }
0x12de   :  { %v1391_v45 = vadd.f32 %v1381_v44, %v3850_v23  ;;  %v1383_v46 = vpop.f32.mrb[29].mxu0 }
0x12e0   :  { %3401 = vtanh.f32 %v1391_v45  ;;  %v1394_v55 = vmul.f32 0.5, %v1391_v45 }
0x12ea   :  { %v3402_v9 = vpop.eup %3401 }
0x12eb   :  { %1408 = vrot.lane.b32.xlu0 %v3402_v9, %s3602_s4 }
0x12ff   :  { %v1386_v48 = vpop.f32.mrb[30].mxu0 }
0x1300   :  { %v1387_v49 = vpop.f32.mrb[31].mxu0 }
0x1301   :  { %v1393_v47 = vadd.f32 %v1387_v49, %v3823_v0 }
0x1303   :  { %3403 = vtanh.f32 %v1393_v47  ;;  %v1395_v60 = vmul.f32 0.5, %v1393_v47 }
0x1304   :  { %3405 = vtanh.f32 %v1394_v55 }
0x1305   :  { %3407 = vtanh.f32 %v1395_v60 }
0x130d   :  { %v3404_v52 = vpop.eup %3403 }
0x130e   :  { %1410 = vrot.lane.b32.xlu1 %v3404_v52, %s3602_s4  ;;  %v3406_v56 = vpop.eup %3405 }
0x130f   :  { %v1398_v57 = vmul.f32 0.5, %v3406_v56  ;;  %v3408_v61 = vpop.eup %3407 }
0x1310   :  { %v1399_v15 = vmul.f32 0.5, %v3408_v61 }
0x1311   :  { %v1400_v7 = vadd.f32 0.5, %v1398_v57 }
0x1312   :  { %v1401_v6 = vadd.f32 0.5, %v1399_v15  ;;  %v1614_v15 = vld [vmem:[%s4415_s5 + $0x20] sm:$0xff] }
0x1313   :  { %v1404_v10 = vmul.f32 %v1400_v7, %v1285_v32 }
0x1314   :  { %v1405_v17 = vmul.f32 %v1401_v6, %v1286_v37 }
0x135d   :  { %v1409_v58 = vpop.permute.xlu0 %1408 }
0x135e   :  { %v1414_v23 = vmul.f32 %v1409_v58, %v1400_v7  ;;  %v1615_v58 = vld [vmem:[%s4415_s5 + $0x28] sm:$0xff] }
0x1360   :  { %1418 = vrot.lane.b32.xlu0 %v1414_v23, %s3603_s3  ;;  %v1617_v23 = vld [vmem:[%s4415_s5 + $0x38] sm:$0xff] }
0x1361   :  { %v3231_v61 = vpack.c.bf16 %v1617_v23, %v1615_v58  ;;  %v1626_v58 = vld [vmem:[%s4417_s7] sm:$0x3] }
0x1362   :  { %v1631_v23 = vrot.slane %v1626_v58, %v316_v51 }
0x1380   :  { %v1411_v8 = vpop.permute.xlu1 %1410 }
0x1381   :  { %v1415_v0 = vmul.f32 %v1411_v8, %v1401_v6 }
0x1383   :  { %1420 = vrot.lane.b32.xlu1 %v1415_v0, %s3603_s3 }
0x13d2   :  { %v1419_v11 = vpop.permute.xlu0 %1418 }
0x13d3   :  { %v1424_v13 = vadd.f32 %v1419_v11, %v1404_v10 }
0x13d5   :  { %3409 = vtanh.f32 %v1424_v13 }
0x13df   :  { %v3410_v14 = vpop.eup %3409 }
0x13e0   :  { %1430 = vrot.lane.b32.xlu0 %v3410_v14, %s3602_s4 }
0x13f5   :  { %v1421_v31 = vpop.permute.xlu1 %1420 }
0x13f6   :  { %v1425_v34 = vadd.f32 %v1421_v31, %v1405_v17  ;;  %v1619_v17 = vld [vmem:[%s4415_s5 + $0x48] sm:$0xff]  ;;  %v1621_v31 = vld [vmem:[%s4415_s5 + $0x58] sm:$0xff] }
0x13f8   :  { %3411 = vtanh.f32 %v1425_v34 }
0x1402   :  { %v3412_v3 = vpop.eup %3411 }
0x1403   :  { %1432 = vrot.lane.b32.xlu1 %v3412_v3, %s3602_s4  ;;  %v1618_v3 = vld [vmem:[%s4415_s5 + $0x40] sm:$0xff] }
0x1452   :  { %v1431_v16 = vpop.permute.xlu0 %1430 }
0x1453   :  { %v1436_v19 = vmul.f32 %v1431_v16, %v1400_v7  ;;  %v1612_v7 = vld [vmem:[%s4415_s5 + $0x10] sm:$0xff] }
0x1455   :  { %1439 = vrot.lane.b32.xlu0 %v1436_v19, %s3603_s3  ;;  %v1793_v19 = vld [vmem:[%s4416_s6 + $0x8] sm:$0xff] }
0x1475   :  { %v1433_v20 = vpop.permute.xlu1 %1432 }
0x1476   :  { %v1437_v18 = vmul.f32 %v1433_v20, %v1401_v6  ;;  %v1616_v6 = vld [vmem:[%s4415_s5 + $0x30] sm:$0xff]  ;;  %v1795_v20 = vld [vmem:[%s4416_s6 + $0x18] sm:$0xff] }
0x1477   :  { %v3233_v8 = vpack.c.bf16 %v1616_v6, %v1614_v15 }
0x1478   :  { %1448 = vrot.lane.b32.xlu1 %v1437_v18, %s3603_s3 }
0x14c7   :  { %v3993_v22 = vpop.permute.xlu0 %1439 }
0x14c8   :  { %3026 = vmatmul.mubr.msk.f32.vlgmr.msra.gmra.mrb[20].mxu1 %vm465_vm9, %v3993_v22 }
0x14c9   :  { %1523 = vmatprep.mubr.f32.mxu1 %v3601_v1 }
0x14ea   :  { %v1449_v21 = vpop.permute.xlu1 %1448 }
0x14eb   :  { %3027 = vmatmul.mubr.msk.f32.gmra.mrb[22].mxu1 %vm465_vm9, %v1449_v21  ;;  %v1792_v21 = vld [vmem:[%s4416_s6] sm:$0xff] }
0x14ec   :  { %1876 = vmatprep.mubr.f32.mxu1 %v3601_v1 }
0x159b   :  { %v1520_v26 = vpop.f32.mrb[20].mxu1 }
0x159c   :  { %v1530_v28 = vadd.f32 %v1520_v26, %v3854_v27  ;;  %v1522_v29 = vpop.f32.mrb[21].mxu1  ;;  %v1794_v26 = vld [vmem:[%s4416_s6 + $0x10] sm:$0xff] }
0x159d   :  { %v1623_v29 = vld [vmem:[%s4415_s5 + $0x68] sm:$0xff] }
0x159e   :  { %3413 = vtanh.f32 %v1530_v28  ;;  %v1533_v35 = vmul.f32 0.5, %v1530_v28  ;;  %v4085_v28 = vpack.c.bf16 %v1794_v26, %v1792_v21  ;;  %v3038_v26 = vld [vmem:[%s4419_s9 + $0x10] sm:$0xff] }
0x15a8   :  { %v3414_v5 = vpop.eup %3413 }
0x15a9   :  { %1547 = vrot.lane.b32.xlu1 %v3414_v5, %s3602_s4  ;;  %v1625_v5 = vld [vmem:[%s4415_s5 + $0x78] sm:$0xff] }
0x15be   :  { %v1525_v30 = vpop.f32.mrb[22].mxu1 }
0x15bf   :  { %v1526_v62 = vpop.f32.mrb[23].mxu1  ;;  %v3239_v30 = vpack.c.bf16 %v1625_v5, %v1623_v29 }
0x15c0   :  { %v1532_v32 = vadd.f32 %v1526_v62, %v3819_v59  ;;  %v1622_v62 = vld [vmem:[%s4415_s5 + $0x60] sm:$0xff] }
0x15c2   :  { %3415 = vtanh.f32 %v1532_v32  ;;  %v1534_v40 = vmul.f32 0.5, %v1532_v32  ;;  %v1624_v32 = vld [vmem:[%s4415_s5 + $0x70] sm:$0xff] }
0x15c3   :  { %3417 = vtanh.f32 %v1533_v35  ;;  %v1797_v35 = vld [vmem:[%s4416_s6 + $0x28] sm:$0xff] }
0x15c4   :  { %3419 = vtanh.f32 %v1534_v40 }
0x15cc   :  { %v3416_v33 = vpop.eup %3415 }
0x15cd   :  { %1549 = vrot.lane.b32.xlu0 %v3416_v33, %s3602_s4  ;;  %v3418_v36 = vpop.eup %3417  ;;  %v3241_v33 = vpack.c.bf16 %v1624_v32, %v1622_v62  ;;  %v3039_v32 = vld [vmem:[%s4419_s9 + $0x18] sm:$0xff] }
0x15ce   :  { %v1537_v37 = vmul.f32 0.5, %v3418_v36  ;;  %v3420_v41 = vpop.eup %3419  ;;  %v1799_v36 = vld [vmem:[%s4416_s6 + $0x38] sm:$0xff] }
0x15cf   :  { %v1538_v43 = vmul.f32 0.5, %v3420_v41  ;;  %v3036_v41 = vld [vmem:[%s4418_s8 + $0x10] sm:$0xff] }
0x15d0   :  { %v4004_v25 = vadd.f32 0.5, %v1537_v37  ;;  %v4107_v37 = vpack.c.bf16 %v1799_v36, %v1797_v35 }
0x15d1   :  { %v4008_v59 = vadd.f32 0.5, %v1538_v43 }
0x15d2   :  { %v1543_v46 = vmul.f32 %v4004_v25, %v1424_v13 }
0x15d3   :  { %v1544_v47 = vmul.f32 %v4008_v59, %v1425_v34  ;;  %v3235_v34 = vpack.c.bf16 %v1621_v31, %v1619_v17 }
0x161b   :  { %v1548_v27 = vpop.permute.xlu1 %1547 }
0x161c   :  { %v1553_v39 = vmul.f32 %v1548_v27, %v4004_v25  ;;  %v1796_v27 = vld [vmem:[%s4416_s6 + $0x20] sm:$0xff] }
0x161e   :  { %1557 = vrot.lane.b32.xlu1 %v1553_v39, %s3603_s3  ;;  %v1798_v39 = vld [vmem:[%s4416_s6 + $0x30] sm:$0xff] }
0x161f   :  { %v4115_v40 = vpack.c.bf16 %v1798_v39, %v1796_v27 }
0x163f   :  { %v1550_v44 = vpop.permute.xlu0 %1549 }
0x1640   :  { %v1554_v45 = vmul.f32 %v1550_v44, %v4008_v59 }
0x1642   :  { %1559 = vrot.lane.b32.xlu0 %v1554_v45, %s3603_s3  ;;  %v3037_v45 = vld [vmem:[%s4418_s8 + $0x18] sm:$0xff] }
0x1690   :  { %v1558_v9 = vpop.permute.xlu1 %1557 }
0x1691   :  { %v4013_v48 = vadd.f32 %v1558_v9, %v1543_v46 }
0x1693   :  { %3421 = vtanh.f32 %v4013_v48 }
0x169d   :  { %v3422_v49 = vpop.eup %3421 }
0x169e   :  { %1569 = vrot.lane.b32.xlu1 %v3422_v49, %s3602_s4 }
0x16a2   :  { %1444 = vrot.lane.b32.xlu1 %v1437_v18, %s3602_s4  ;;  %v4077_v18 = vpack.c.bf16 %v1795_v20, %v1793_v19 }
0x16a4   :  { %3244 = vmatprep.subr.bf16.mxu1 %v4077_v18 }
0x16a5   :  { %3246 = vmatpush1.bf16.msra.mxu1 %v4085_v28 }
0x16a6   :  { %1166 = vrot.lane.b32.xlu1 %v3949_v63, %s3602_s4  ;;  %v1611_v63 = vld [vmem:[%s4415_s5 + $0x8] sm:$0xff]  ;;  %3248 = vmatprep.subr.bf16.mxu1 %v4107_v37 }
0x16a9   :  { %3250 = vmatpush1.bf16.msra.mxu1 %v4115_v40 }
0x16aa   :  { %888 = vrot.lane.b32.xlu1 %v3906_v38, %s3602_s4  ;;  %v1613_v38 = vld [vmem:[%s4415_s5 + $0x18] sm:$0xff]  ;;  %3252 = vmatprep.subr.bf16.mxu1 %v4077_v18 }
0x16ab   :  { %v3227_v57 = vpack.c.bf16 %v1613_v38, %v1611_v63 }
0x16ac   :  { %3040 = vmatmul.mubr.msk.f32.vlgmr.msra.gmra.mrb[24].mxu1 %vm465_vm9, %v3036_v41 }
0x16ad   :  { %3228 = vmatprep.subr.bf16.mxu0 %v3227_v57  ;;  %1881 = vmatprep.mubr.f32.mxu1 %v3601_v1 }
0x16ae   :  { %609 = vrot.lane.b32.xlu1 %v3862_v4, %s3602_s4  ;;  %v1610_v4 = vld [vmem:[%s4415_s5] sm:$0xff]  ;;  %3254 = vmatpush1.bf16.msra.mxu1 %v4085_v28 }
0x16af   :  { %v3229_v60 = vpack.c.bf16 %v1612_v7, %v1610_v4  ;;  %3256 = vmatprep.subr.bf16.mxu1 %v4107_v37 }
0x16b0   :  { %3041 = vmatmul.mubr.msk.f32.gmra.mrb[26].mxu1 %vm465_vm9, %v3037_v45 }
0x16b1   :  { %3230 = vmatpush1.bf16.msra.mxu0 %v3229_v60  ;;  %2017 = vmatprep.mubr.f32.mxu1 %v3601_v1  ;;  %v1635_v60 = vrot.slane %v1626_v58, %v320_v53 }
0x16b2   :  { %3232 = vmatprep.subr.bf16.mxu0 %v3231_v61  ;;  %3258 = vmatpush1.bf16.msra.mxu1 %v4115_v40 }
0x16b3   :  { %3260 = vmatprep.subr.bf16.mxu1 %v4077_v18 }
0x16b4   :  { %v1560_v52 = vpop.permute.xlu0 %1559 }
0x16b5   :  { %v4025_v55 = vadd.f32 %v1560_v52, %v1544_v47  ;;  %3234 = vmatpush1.bf16.msra.mxu0 %v3233_v8 }
0x16b6   :  { %3236 = vmatprep.subr.bf16.mxu0 %v3235_v34 }
0x16b7   :  { %3423 = vtanh.f32 %v4025_v55 }
0x16c1   :  { %v3424_v56 = vpop.eup %3423 }
0x16c2   :  { %1571 = vrot.lane.b32.xlu0 %v3424_v56, %s3602_s4 }
0x1710   :  { %v1570_v0 = vpop.permute.xlu1 %1569 }
0x1714   :  { %v1445_v10 = vpop.permute.xlu1 %1444 }
0x1715   :  { %1447 = vst.msk [vmem:[#allocation2 + $0x8] sm:$0xff] %vm612_vm10, %v1445_v10 }
0x1718   :  { %v1167_v11 = vpop.permute.xlu1 %1166 }
0x1719   :  { %1169 = vst.msk [vmem:[#allocation2 + $0x18] sm:$0xff] %vm612_vm10, %v1167_v11 }
0x171c   :  { %v889_v13 = vpop.permute.xlu1 %888  ;;  %v1603_v9 = vld [vmem:[#allocation2 + $0x8] sm:$0xff] }
0x171d   :  { %891 = vst.msk [vmem:[#allocation2 + $0x28] sm:$0xff] %vm612_vm10, %v889_v13 }
0x171e   :  { %1303 = vst.msk [vmem:[#allocation2 + $0x28] sm:$0xff] %vm465_vm9, %v3976_v42  ;;  %v1620_v42 = vld [vmem:[%s4415_s5 + $0x50] sm:$0xff] }
0x171f   :  { %v3237_v16 = vpack.c.bf16 %v1620_v42, %v1618_v3 }
0x1720   :  { %v610_v14 = vpop.permute.xlu1 %609 }
0x1721   :  { %613 = vst.msk [vmem:[#allocation2 + $0x38] sm:$0xff] %vm612_vm10, %v610_v14  ;;  %3238 = vmatpush1.bf16.msra.mxu0 %v3237_v16 }
0x1722   :  { %3240 = vmatprep.subr.bf16.mxu0 %v3239_v30 }
0x1725   :  { %3242 = vmatpush1.bf16.msra.mxu0 %v3241_v33  ;;  %v1607_v52 = vld [vmem:[#allocation2 + $0x28] sm:$0xff] }
0x1726   :  { %3284 = vmatprep.subr.bf16.mxu0 %v4077_v18 }
0x1734   :  { %v1572_v43 = vpop.permute.xlu0 %1571 }
0x1735   :  { %v4126_v44 = vmul.f32 %v1572_v43, %v4008_v59  ;;  %v1575_v59 = vmul.f32 %v1570_v0, %v4004_v25 }
0x1737   :  { %1583 = vrot.lane.b32.xlu0 %v4126_v44, %s3602_s4 }
0x173b   :  { %1305 = vrot.lane.b32.xlu0 %v3972_v12, %s3602_s4 }
0x173f   :  { %1027 = vrot.lane.b32.xlu0 %v3928_v24, %s3602_s4 }
0x1743   :  { %749 = vrot.lane.b32.xlu0 %v3884_v54, %s3602_s4 }
0x1747   :  { %1578 = vrot.lane.b32.xlu0 %v1575_v59, %s3603_s3 }
0x177f   :  { %v1878_v38 = vpop.f32.mrb[24].mxu1 }
0x1780   :  { %v1880_v4 = vpop.f32.mrb[25].mxu1 }
0x1783   :  { %v1883_v57 = vpop.f32.mrb[26].mxu1 }
0x1784   :  { %v1884_v7 = vpop.f32.mrb[27].mxu1 }
0x17a9   :  { %v1584_v46 = vpop.permute.xlu0 %1583 }
0x17aa   :  { %1586 = vst.msk [vmem:[#allocation2] sm:$0xff] %vm612_vm10, %v1584_v46 }
0x17ad   :  { %v1306_v12 = vpop.permute.xlu0 %1305 }
0x17ae   :  { %1308 = vst.msk [vmem:[#allocation2 + $0x10] sm:$0xff] %vm612_vm10, %v1306_v12 }
0x17b1   :  { %v1028_v54 = vpop.permute.xlu0 %1027  ;;  %v1602_v24 = vld [vmem:[#allocation2] sm:$0xff] }
0x17b2   :  { %1030 = vst.msk [vmem:[#allocation2 + $0x20] sm:$0xff] %vm612_vm10, %v1028_v54  ;;  %3028 = vmatmul.mubr.msk.f32.vlgmr.msra.gmra.mrb[32].mxu0 %vm1638_vm11, %v1602_v24 }
0x17b3   :  { %1164 = vst.msk [vmem:[#allocation2 + $0x20] sm:$0xff] %vm465_vm9, %v3953_v2  ;;  %1733 = vmatprep.mubr.f32.mxu0 %v3601_v1  ;;  %3286 = vmatpush1.bf16.msra.mxu0 %v4085_v28 }
0x17b4   :  { %3288 = vmatprep.subr.bf16.mxu0 %v4107_v37 }
0x17b5   :  { %v750_v25 = vpop.permute.xlu0 %749  ;;  %v1604_v49 = vld [vmem:[#allocation2 + $0x10] sm:$0xff] }
0x17b6   :  { %752 = vst.msk [vmem:[#allocation2 + $0x30] sm:$0xff] %vm612_vm10, %v750_v25  ;;  %3029 = vmatmul.mubr.msk.f32.gmra.mrb[34].mxu0 %vm1638_vm11, %v1603_v9 }
0x17b7   :  { %1442 = vst.msk [vmem:[#allocation2 + $0x30] sm:$0xff] %vm465_vm9, %v3993_v22  ;;  %1739 = vmatprep.mubr.f32.mxu0 %v3601_v1  ;;  %3290 = vmatpush1.bf16.msra.mxu0 %v4115_v40  ;;  %v1605_v22 = vld [vmem:[#allocation2 + $0x18] sm:$0xff] }
0x17b8   :  { %3300 = vmatprep.subr.bf16.mxu0 %v4077_v18 }
0x17b9   :  { %v1579_v2 = vpop.permute.xlu0 %1578 }
0x17ba   :  { %1581 = vst.msk [vmem:[#allocation2 + $0x38] sm:$0xff] %vm465_vm9, %v1579_v2  ;;  %1590 = vst.msk [vmem:[%s4422_s12] sm:$0xff] %vm465_vm9, %v1579_v2  ;;  %3030 = vmatmul.mubr.msk.f32.gmra.mrb[36].mxu0 %vm1638_vm11, %v1604_v49  ;;  %v1606_v47 = vld [vmem:[#allocation2 + $0x20] sm:$0xff] }
0x17bb   :  { %1745 = vmatprep.mubr.f32.mxu0 %v3601_v1 }
0x17be   :  { %3031 = vmatmul.mubr.msk.f32.gmra.mrb[38].mxu0 %vm1638_vm11, %v1605_v22  ;;  %v1608_v56 = vld [vmem:[#allocation2 + $0x30] sm:$0xff] }
0x17bf   :  { %1751 = vmatprep.mubr.f32.mxu0 %v3601_v1 }
0x17c1   :  { %v1609_v63 = vld [vmem:[#allocation2 + $0x38] sm:$0xff] }
0x17c2   :  { %3032 = vmatmul.mubr.msk.f32.gmra.mrb[40].mxu0 %vm1638_vm11, %v1606_v47 }
0x17c3   :  { %1757 = vmatprep.mubr.f32.mxu0 %v3601_v1 }
0x17c6   :  { %3033 = vmatmul.mubr.msk.f32.gmra.mrb[42].mxu0 %vm1638_vm11, %v1607_v52 }
0x17c7   :  { %1763 = vmatprep.mubr.f32.mxu0 %v3601_v1 }
0x17ca   :  { %3034 = vmatmul.mubr.msk.f32.gmra.mrb[44].mxu0 %vm1638_vm11, %v1608_v56 }
0x17cb   :  { %1769 = vmatprep.mubr.f32.mxu0 %v3601_v1 }
0x17ce   :  { %3035 = vmatmul.mubr.msk.f32.gmra.mrb[46].mxu0 %vm1638_vm11, %v1609_v63 }
0x17cf   :  { %2549 = vmatprep.mubr.f32.mxu0 %v3601_v1 }
0x1885   :  { %v1729_v61 = vpop.f32.mrb[32].mxu0 }
0x1886   :  { %v1730_v15 = vadd.f32 %v1729_v61, %v1631_v23  ;;  %v1731_v6 = vpop.f32.mrb[33].mxu0 }
0x1887   :  { %v4188_v8 = vadd.f32 %v1731_v6, %v1635_v60 }
0x1888   :  { %v1888_v0 = vadd.f32 %v1878_v38, %v1730_v15 }
0x1889   :  { %v1735_v10 = vpop.f32.mrb[34].mxu0 }
0x188a   :  { %3425 = vtanh.f32 %v1888_v0  ;;  %v4190_v11 = vadd.f32 %v1735_v10, %v1631_v23  ;;  %v1737_v13 = vpop.f32.mrb[35].mxu0  ;;  %v1891_v54 = vmul.f32 0.5, %v1888_v0 }
0x188b   :  { %v4192_v14 = vadd.f32 %v1737_v13, %v1635_v60 }
0x188d   :  { %v1741_v17 = vpop.f32.mrb[36].mxu0 }
0x188e   :  { %v4194_v31 = vadd.f32 %v1741_v17, %v1631_v23  ;;  %v1743_v51 = vpop.f32.mrb[37].mxu0 }
0x188f   :  { %v4196_v34 = vadd.f32 %v1743_v51, %v1635_v60 }
0x1891   :  { %v1747_v50 = vpop.f32.mrb[38].mxu0 }
0x1892   :  { %v4198_v53 = vadd.f32 %v1747_v50, %v1631_v23  ;;  %v1749_v3 = vpop.f32.mrb[39].mxu0 }
0x1893   :  { %v4200_v42 = vadd.f32 %v1749_v3, %v1635_v60 }
0x1894   :  { %v3426_v16 = vpop.eup %3425 }
0x1895   :  { %1913 = vrot.lane.b32.xlu1 %v3426_v16, %s3602_s4  ;;  %v1753_v19 = vpop.f32.mrb[40].mxu0 }
0x1896   :  { %v4203_v20 = vadd.f32 %v1753_v19, %v1631_v23  ;;  %v1755_v21 = vpop.f32.mrb[41].mxu0 }
0x1897   :  { %v4208_v29 = vadd.f32 %v1755_v21, %v1635_v60 }
0x1899   :  { %1903 = vrot.lane.b32.xlu1 %v3038_v26, %s3603_s3  ;;  %v1759_v5 = vpop.f32.mrb[42].mxu0 }
0x189a   :  { %v4211_v30 = vadd.f32 %v1759_v5, %v1631_v23  ;;  %v1761_v62 = vpop.f32.mrb[43].mxu0 }
0x189b   :  { %v4216_v33 = vadd.f32 %v1761_v62, %v1635_v60 }
0x189d   :  { %1905 = vrot.lane.b32.xlu1 %v3039_v32, %s3603_s3  ;;  %v1765_v35 = vpop.f32.mrb[44].mxu0 }
0x189e   :  { %v4219_v36 = vadd.f32 %v1765_v35, %v1631_v23  ;;  %v1767_v27 = vpop.f32.mrb[45].mxu0 }
0x189f   :  { %v4221_v39 = vadd.f32 %v1767_v27, %v1635_v60 }
0x18a1   :  { %v1771_v41 = vpop.f32.mrb[46].mxu0 }
0x18a2   :  { %v4223_v43 = vadd.f32 %v1771_v41, %v1631_v23  ;;  %v1773_v59 = vpop.f32.mrb[47].mxu0 }
0x18a3   :  { %v1774_v45 = vadd.f32 %v1773_v59, %v1635_v60 }
0x18a5   :  { %v1890_v46 = vadd.f32 %v1884_v7, %v1774_v45 }
0x18a7   :  { %3427 = vtanh.f32 %v1890_v46  ;;  %v1892_v22 = vmul.f32 0.5, %v1890_v46 }
0x18a8   :  { %3429 = vtanh.f32 %v1891_v54 }
0x18a9   :  { %3431 = vtanh.f32 %v1892_v22 }
0x18b1   :  { %v3428_v12 = vpop.eup %3427 }
0x18b2   :  { %1915 = vrot.lane.b32.xlu0 %v3428_v12, %s3602_s4  ;;  %v3430_v24 = vpop.eup %3429 }
0x18b3   :  { %v1895_v25 = vmul.f32 0.5, %v3430_v24  ;;  %v3432_v47 = vpop.eup %3431 }
0x18b4   :  { %v1896_v52 = vmul.f32 0.5, %v3432_v47 }
0x18b5   :  { %v1897_v9 = vadd.f32 0.5, %v1895_v25 }
0x18b6   :  { %v1898_v56 = vadd.f32 0.5, %v1896_v52 }
0x1907   :  { %v1914_v2 = vpop.permute.xlu1 %1913 }
0x1908   :  { %v1919_v49 = vmul.f32 %v1914_v2, %v1897_v9 }
0x190a   :  { %1923 = vrot.lane.b32.xlu0 %v1919_v49, %s3603_s3 }
0x190b   :  { %v1904_v4 = vpop.permute.xlu1 %1903 }
0x190c   :  { %v1909_v57 = vmul.f32 %v1904_v4, %v1897_v9 }
0x190f   :  { %v1906_v60 = vpop.permute.xlu1 %1905 }
0x1910   :  { %v1910_v61 = vmul.f32 %v1906_v60, %v1898_v56 }
0x1924   :  { %v1916_v63 = vpop.permute.xlu0 %1915 }
0x1925   :  { %v1920_v38 = vmul.f32 %v1916_v63, %v1898_v56 }
0x1927   :  { %1925 = vrot.lane.b32.xlu0 %v1920_v38, %s3603_s3 }
0x197c   :  { %v1924_v7 = vpop.permute.xlu0 %1923 }
0x197d   :  { %v1929_v58 = vadd.f32 %v1924_v7, %v1909_v57 }
0x197f   :  { %3433 = vtanh.f32 %v1929_v58 }
0x1989   :  { %v3434_v23 = vpop.eup %3433 }
0x198a   :  { %1935 = vrot.lane.b32.xlu1 %v3434_v23, %s3602_s4 }
0x1999   :  { %v1926_v15 = vpop.permute.xlu0 %1925 }
0x199a   :  { %v1930_v6 = vadd.f32 %v1926_v15, %v1910_v61 }
0x199c   :  { %3435 = vtanh.f32 %v1930_v6 }
0x19a6   :  { %v3436_v0 = vpop.eup %3435 }
0x19a7   :  { %1937 = vrot.lane.b32.xlu0 %v3436_v0, %s3602_s4 }
0x19fc   :  { %v1936_v10 = vpop.permute.xlu1 %1935 }
0x19fd   :  { %v1941_v13 = vmul.f32 %v1936_v10, %v1897_v9 }
0x19ff   :  { %1945 = vrot.lane.b32.xlu1 %v1941_v13, %s3603_s3 }
0x1a19   :  { %v1938_v17 = vpop.permute.xlu0 %1937 }
0x1a1a   :  { %v1942_v51 = vmul.f32 %v1938_v17, %v1898_v56 }
0x1a1c   :  { %1947 = vrot.lane.b32.xlu0 %v1942_v51, %s3603_s3 }
0x1a71   :  { %v1946_v50 = vpop.permute.xlu1 %1945 }
0x1a72   :  { %3042 = vmatmul.mubr.msk.f32.vlgmr.msra.gmra.mrb[28].mxu1 %vm465_vm9, %v1946_v50 }
0x1a73   :  { %2022 = vmatprep.mubr.f32.mxu1 %v3601_v1  ;;  %3262 = vmatpush1.bf16.msra.mxu1 %v4085_v28 }
0x1a74   :  { %3264 = vmatprep.subr.bf16.mxu1 %v4107_v37 }
0x1a77   :  { %3266 = vmatpush1.bf16.msra.mxu1 %v4115_v40 }
0x1a78   :  { %3268 = vmatprep.subr.bf16.mxu1 %v4077_v18 }
0x1a8e   :  { %v4238_v3 = vpop.permute.xlu0 %1947 }
0x1a8f   :  { %3043 = vmatmul.mubr.msk.f32.gmra.mrb[30].mxu1 %vm465_vm9, %v4238_v3 }
0x1a90   :  { %2150 = vmatprep.mubr.f32.mxu1 %v3601_v1 }
0x1b45   :  { %v2019_v16 = vpop.f32.mrb[28].mxu1 }
0x1b46   :  { %v2029_v19 = vadd.f32 %v2019_v16, %v4190_v11  ;;  %v2021_v21 = vpop.f32.mrb[29].mxu1 }
0x1b48   :  { %3437 = vtanh.f32 %v2029_v19  ;;  %v2032_v27 = vmul.f32 0.5, %v2029_v19 }
0x1b52   :  { %v3438_v26 = vpop.eup %3437 }
0x1b53   :  { %2046 = vrot.lane.b32.xlu1 %v3438_v26, %s3602_s4 }
0x1b62   :  { %v2024_v5 = vpop.f32.mrb[30].mxu1 }
0x1b63   :  { %v2025_v62 = vpop.f32.mrb[31].mxu1 }
0x1b64   :  { %v2031_v32 = vadd.f32 %v2025_v62, %v4221_v39 }
0x1b66   :  { %3439 = vtanh.f32 %v2031_v32  ;;  %v2033_v12 = vmul.f32 0.5, %v2031_v32 }
0x1b67   :  { %3441 = vtanh.f32 %v2032_v27 }
0x1b68   :  { %3443 = vtanh.f32 %v2033_v12 }
0x1b70   :  { %v3440_v35 = vpop.eup %3439 }
0x1b71   :  { %2048 = vrot.lane.b32.xlu0 %v3440_v35, %s3602_s4  ;;  %v3442_v41 = vpop.eup %3441 }
0x1b72   :  { %v2036_v59 = vmul.f32 0.5, %v3442_v41  ;;  %v3444_v54 = vpop.eup %3443 }
0x1b73   :  { %v2037_v24 = vmul.f32 0.5, %v3444_v54 }
0x1b74   :  { %v2038_v45 = vadd.f32 0.5, %v2036_v59 }
0x1b75   :  { %v2039_v25 = vadd.f32 0.5, %v2037_v24 }
0x1b76   :  { %v2042_v2 = vmul.f32 %v2038_v45, %v1929_v58 }
0x1b77   :  { %v2043_v52 = vmul.f32 %v2039_v25, %v1930_v6 }
0x1bc5   :  { %v2047_v46 = vpop.permute.xlu1 %2046 }
0x1bc6   :  { %v2052_v11 = vmul.f32 %v2047_v46, %v2038_v45 }
0x1bc8   :  { %2056 = vrot.lane.b32.xlu1 %v2052_v11, %s3603_s3 }
0x1be3   :  { %v2049_v9 = vpop.permute.xlu0 %2048 }
0x1be4   :  { %v2053_v39 = vmul.f32 %v2049_v9, %v2039_v25 }
0x1be6   :  { %2058 = vrot.lane.b32.xlu0 %v2053_v39, %s3603_s3 }
0x1c3a   :  { %v2057_v49 = vpop.permute.xlu1 %2056 }
0x1c3b   :  { %v2062_v22 = vadd.f32 %v2057_v49, %v2042_v2 }
0x1c3d   :  { %3445 = vtanh.f32 %v2062_v22 }
0x1c47   :  { %v3446_v47 = vpop.eup %3445 }
0x1c48   :  { %2068 = vrot.lane.b32.xlu1 %v3446_v47, %s3602_s4 }
0x1c58   :  { %v2059_v56 = vpop.permute.xlu0 %2058 }
0x1c59   :  { %v2063_v63 = vadd.f32 %v2059_v56, %v2043_v52 }
0x1c5b   :  { %3447 = vtanh.f32 %v2063_v63 }
0x1c65   :  { %v3448_v38 = vpop.eup %3447 }
0x1c66   :  { %2070 = vrot.lane.b32.xlu0 %v3448_v38, %s3602_s4 }
0x1cba   :  { %v2069_v4 = vpop.permute.xlu1 %2068 }
0x1cbb   :  { %v2074_v57 = vmul.f32 %v2069_v4, %v2038_v45 }
0x1cbd   :  { %2078 = vrot.lane.b32.xlu1 %v2074_v57, %s3603_s3 }
0x1cd8   :  { %v2071_v7 = vpop.permute.xlu0 %2070 }
0x1cd9   :  { %v2075_v23 = vmul.f32 %v2071_v7, %v2039_v25 }
0x1cdb   :  { %2080 = vrot.lane.b32.xlu0 %v2075_v23, %s3603_s3 }
0x1d2f   :  { %v2079_v58 = vpop.permute.xlu1 %2078 }
0x1d30   :  { %3044 = vmatmul.mubr.msk.f32.vlgmr.msra.gmra.mrb[32].mxu1 %vm465_vm9, %v2079_v58 }
0x1d31   :  { %2155 = vmatprep.mubr.f32.mxu1 %v3601_v1  ;;  %3270 = vmatpush1.bf16.msra.mxu1 %v4085_v28 }
0x1d32   :  { %3272 = vmatprep.subr.bf16.mxu1 %v4107_v37 }
0x1d35   :  { %3274 = vmatpush1.bf16.msra.mxu1 %v4115_v40 }
0x1d36   :  { %3276 = vmatprep.subr.bf16.mxu1 %v4077_v18 }
0x1d4d   :  { %v2081_v60 = vpop.permute.xlu0 %2080 }
0x1d4e   :  { %3045 = vmatmul.mubr.msk.f32.gmra.mrb[34].mxu1 %vm465_vm9, %v2081_v60 }
0x1d4f   :  { %2283 = vmatprep.mubr.f32.mxu1 %v3601_v1 }
0x1e03   :  { %v2152_v61 = vpop.f32.mrb[32].mxu1 }
0x1e04   :  { %v2162_v15 = vadd.f32 %v2152_v61, %v4194_v31  ;;  %v2154_v6 = vpop.f32.mrb[33].mxu1 }
0x1e06   :  { %3449 = vtanh.f32 %v2162_v15  ;;  %v2165_v50 = vmul.f32 0.5, %v2162_v15 }
0x1e10   :  { %v3450_v0 = vpop.eup %3449 }
0x1e11   :  { %2179 = vrot.lane.b32.xlu1 %v3450_v0, %s3602_s4 }
0x1e21   :  { %v2157_v10 = vpop.f32.mrb[34].mxu1 }
0x1e22   :  { %v2158_v13 = vpop.f32.mrb[35].mxu1 }
0x1e23   :  { %v2164_v17 = vadd.f32 %v2158_v13, %v4216_v33 }
0x1e25   :  { %3451 = vtanh.f32 %v2164_v17  ;;  %v2166_v5 = vmul.f32 0.5, %v2164_v17 }
0x1e26   :  { %3453 = vtanh.f32 %v2165_v50 }
0x1e27   :  { %3455 = vtanh.f32 %v2166_v5 }
0x1e2f   :  { %v3452_v51 = vpop.eup %3451 }
0x1e30   :  { %2181 = vrot.lane.b32.xlu0 %v3452_v51, %s3602_s4  ;;  %v3454_v16 = vpop.eup %3453 }
0x1e31   :  { %v2169_v19 = vmul.f32 0.5, %v3454_v16  ;;  %v3456_v62 = vpop.eup %3455 }
0x1e32   :  { %v2170_v32 = vmul.f32 0.5, %v3456_v62 }
0x1e33   :  { %v2171_v21 = vadd.f32 0.5, %v2169_v19 }
0x1e34   :  { %v2172_v35 = vadd.f32 0.5, %v2170_v32 }
0x1e35   :  { %v2175_v41 = vmul.f32 %v2171_v21, %v2062_v22 }
0x1e36   :  { %v2176_v11 = vmul.f32 %v2172_v35, %v2063_v63 }
0x1e83   :  { %v2180_v26 = vpop.permute.xlu1 %2179 }
0x1e84   :  { %v2185_v31 = vmul.f32 %v2180_v26, %v2171_v21 }
0x1e86   :  { %2189 = vrot.lane.b32.xlu1 %v2185_v31, %s3603_s3 }
0x1ea2   :  { %v2182_v27 = vpop.permute.xlu0 %2181 }
0x1ea3   :  { %v2186_v33 = vmul.f32 %v2182_v27, %v2172_v35 }
0x1ea5   :  { %2191 = vrot.lane.b32.xlu0 %v2186_v33, %s3603_s3 }
0x1ef8   :  { %v2190_v59 = vpop.permute.xlu1 %2189 }
0x1ef9   :  { %v2195_v45 = vadd.f32 %v2190_v59, %v2175_v41 }
0x1efb   :  { %3457 = vtanh.f32 %v2195_v45 }
0x1f05   :  { %v3458_v46 = vpop.eup %3457 }
0x1f06   :  { %2201 = vrot.lane.b32.xlu1 %v3458_v46, %s3602_s4 }
0x1f17   :  { %v2192_v12 = vpop.permute.xlu0 %2191 }
0x1f18   :  { %v2196_v54 = vadd.f32 %v2192_v12, %v2176_v11 }
0x1f1a   :  { %3459 = vtanh.f32 %v2196_v54 }
0x1f24   :  { %v3460_v24 = vpop.eup %3459 }
0x1f25   :  { %2203 = vrot.lane.b32.xlu0 %v3460_v24, %s3602_s4 }
0x1f78   :  { %v2202_v25 = vpop.permute.xlu1 %2201 }
0x1f79   :  { %v2207_v9 = vmul.f32 %v2202_v25, %v2171_v21 }
0x1f7b   :  { %2211 = vrot.lane.b32.xlu1 %v2207_v9, %s3603_s3 }
0x1f97   :  { %v2204_v39 = vpop.permute.xlu0 %2203 }
0x1f98   :  { %v2208_v2 = vmul.f32 %v2204_v39, %v2172_v35 }
0x1f9a   :  { %2213 = vrot.lane.b32.xlu0 %v2208_v2, %s3603_s3 }
0x1fed   :  { %v2212_v49 = vpop.permute.xlu1 %2211 }
0x1fee   :  { %3046 = vmatmul.mubr.msk.f32.vlgmr.msra.gmra.mrb[36].mxu1 %vm465_vm9, %v2212_v49 }
0x1fef   :  { %2288 = vmatprep.mubr.f32.mxu1 %v3601_v1  ;;  %3278 = vmatpush1.bf16.msra.mxu1 %v4085_v28 }
0x1ff0   :  { %3280 = vmatprep.subr.bf16.mxu1 %v4107_v37 }
0x1ff3   :  { %3282 = vmatpush1.bf16.msra.mxu1 %v4115_v40 }
0x1ff4   :  { %3292 = vmatprep.subr.bf16.mxu1 %v4077_v18 }
0x200c   :  { %v2214_v22 = vpop.permute.xlu0 %2213 }
0x200d   :  { %3047 = vmatmul.mubr.msk.f32.gmra.mrb[38].mxu1 %vm465_vm9, %v2214_v22 }
0x200e   :  { %2416 = vmatprep.mubr.f32.mxu1 %v3601_v1 }
0x20c1   :  { %v2285_v47 = vpop.f32.mrb[36].mxu1 }
0x20c2   :  { %v2295_v52 = vadd.f32 %v2285_v47, %v4198_v53  ;;  %v2287_v56 = vpop.f32.mrb[37].mxu1 }
0x20c4   :  { %3461 = vtanh.f32 %v2295_v52  ;;  %v2298_v18 = vmul.f32 0.5, %v2295_v52 }
0x20ce   :  { %v3462_v63 = vpop.eup %3461 }
0x20cf   :  { %2312 = vrot.lane.b32.xlu1 %v3462_v63, %s3602_s4 }
0x20e0   :  { %v2290_v38 = vpop.f32.mrb[38].mxu1 }
0x20e1   :  { %v2291_v4 = vpop.f32.mrb[39].mxu1 }
0x20e2   :  { %v2297_v57 = vadd.f32 %v2291_v4, %v4208_v29 }
0x20e4   :  { %3463 = vtanh.f32 %v2297_v57  ;;  %v2299_v15 = vmul.f32 0.5, %v2297_v57 }
0x20e5   :  { %3465 = vtanh.f32 %v2298_v18 }
0x20e6   :  { %3467 = vtanh.f32 %v2299_v15 }
0x20ee   :  { %v3464_v7 = vpop.eup %3463 }
0x20ef   :  { %2314 = vrot.lane.b32.xlu0 %v3464_v7, %s3602_s4  ;;  %v3466_v23 = vpop.eup %3465 }
0x20f0   :  { %v2302_v58 = vmul.f32 0.5, %v3466_v23  ;;  %v3468_v6 = vpop.eup %3467 }
0x20f1   :  { %v2303_v0 = vmul.f32 0.5, %v3468_v6 }
0x20f2   :  { %v2304_v60 = vadd.f32 0.5, %v2302_v58 }
0x20f3   :  { %v2305_v10 = vadd.f32 0.5, %v2303_v0 }
0x20f4   :  { %v2308_v17 = vmul.f32 %v2304_v60, %v2195_v45 }
0x20f5   :  { %v2309_v19 = vmul.f32 %v2305_v10, %v2196_v54 }
0x2141   :  { %v2313_v61 = vpop.permute.xlu1 %2312 }
0x2142   :  { %v2318_v53 = vmul.f32 %v2313_v61, %v2304_v60 }
0x2144   :  { %2322 = vrot.lane.b32.xlu1 %v2318_v53, %s3603_s3 }
0x2161   :  { %v2315_v13 = vpop.permute.xlu0 %2314 }
0x2162   :  { %v2319_v29 = vmul.f32 %v2315_v13, %v2305_v10 }
0x2164   :  { %2324 = vrot.lane.b32.xlu0 %v2319_v29, %s3603_s3 }
0x21b6   :  { %v2323_v51 = vpop.permute.xlu1 %2322 }
0x21b7   :  { %v2328_v50 = vadd.f32 %v2323_v51, %v2308_v17 }
0x21b9   :  { %3469 = vtanh.f32 %v2328_v50 }
0x21c3   :  { %v3470_v16 = vpop.eup %3469 }
0x21c4   :  { %2334 = vrot.lane.b32.xlu1 %v3470_v16, %s3602_s4 }
0x21d6   :  { %v2325_v21 = vpop.permute.xlu0 %2324 }
0x21d7   :  { %v2329_v26 = vadd.f32 %v2325_v21, %v2309_v19 }
0x21d9   :  { %3471 = vtanh.f32 %v2329_v26 }
0x21e3   :  { %v3472_v31 = vpop.eup %3471 }
0x21e4   :  { %2336 = vrot.lane.b32.xlu0 %v3472_v31, %s3602_s4 }
0x2236   :  { %v2335_v5 = vpop.permute.xlu1 %2334 }
0x2237   :  { %v2340_v62 = vmul.f32 %v2335_v5, %v2304_v60 }
0x2239   :  { %2344 = vrot.lane.b32.xlu1 %v2340_v62, %s3603_s3 }
0x2256   :  { %v2337_v32 = vpop.permute.xlu0 %2336 }
0x2257   :  { %v2341_v35 = vmul.f32 %v2337_v32, %v2305_v10 }
0x2259   :  { %2346 = vrot.lane.b32.xlu0 %v2341_v35, %s3603_s3 }
0x22ab   :  { %v2345_v27 = vpop.permute.xlu1 %2344 }
0x22ac   :  { %3048 = vmatmul.mubr.msk.f32.vlgmr.msra.gmra.mrb[40].mxu1 %vm465_vm9, %v2345_v27 }
0x22ad   :  { %2421 = vmatprep.mubr.f32.mxu1 %v3601_v1  ;;  %3294 = vmatpush1.bf16.msra.mxu1 %v4085_v28 }
0x22ae   :  { %3296 = vmatprep.subr.bf16.mxu1 %v4107_v37 }
0x22b1   :  { %3298 = vmatpush1.bf16.msra.mxu1 %v4115_v40 }
0x22cb   :  { %v2347_v33 = vpop.permute.xlu0 %2346 }
0x22cc   :  { %3049 = vmatmul.mubr.msk.f32.gmra.mrb[42].mxu1 %vm465_vm9, %v2347_v33 }
0x22cd   :  { %2682 = vmatprep.mubr.f32.mxu1 %v3601_v1 }
0x237f   :  { %v2418_v41 = vpop.f32.mrb[40].mxu1 }
0x2380   :  { %v2428_v59 = vadd.f32 %v2418_v41, %v4203_v20  ;;  %v2420_v45 = vpop.f32.mrb[41].mxu1 }
0x2382   :  { %3473 = vtanh.f32 %v2428_v59  ;;  %v2431_v25 = vmul.f32 0.5, %v2428_v59 }
0x238c   :  { %v3474_v46 = vpop.eup %3473 }
0x238d   :  { %2445 = vrot.lane.b32.xlu1 %v3474_v46, %s3602_s4 }
0x239f   :  { %v2423_v11 = vpop.f32.mrb[42].mxu1 }
0x23a0   :  { %v2424_v12 = vpop.f32.mrb[43].mxu1 }
0x23a1   :  { %v2430_v54 = vadd.f32 %v2424_v12, %v4200_v42 }
0x23a3   :  { %3475 = vtanh.f32 %v2430_v54  ;;  %v2432_v22 = vmul.f32 0.5, %v2430_v54 }
0x23a4   :  { %3477 = vtanh.f32 %v2431_v25 }
0x23a5   :  { %3479 = vtanh.f32 %v2432_v22 }
0x23ad   :  { %v3476_v24 = vpop.eup %3475 }
0x23ae   :  { %2447 = vrot.lane.b32.xlu0 %v3476_v24, %s3602_s4  ;;  %v3478_v9 = vpop.eup %3477  ;;  %v3604_v24 = vmov 0.0|0.0  }
0x23af   :  { %v2435_v39 = vmul.f32 0.5, %v3478_v9  ;;  %v3480_v47 = vpop.eup %3479  ;;  %3307 = vmatprep.subr.bf16.mxu1 %v3604_v24 }
0x23b0   :  { %v2436_v52 = vmul.f32 0.5, %v3480_v47  ;;  %v2898_v47 = vld [vmem:[%s4420_s10 + $0x10] sm:$0xff] }
0x23b1   :  { %v2437_v2 = vadd.f32 0.5, %v2435_v39 }
0x23b2   :  { %v2438_v56 = vadd.f32 0.5, %v2436_v52  ;;  %v2899_v52 = vld [vmem:[%s4420_s10 + $0x18] sm:$0xff] }
0x23b3   :  { %v2441_v38 = vmul.f32 %v2437_v2, %v2328_v50 }
0x23b4   :  { %v2442_v18 = vmul.f32 %v2438_v56, %v2329_v26 }
0x23ff   :  { %v2446_v49 = vpop.permute.xlu1 %2445 }
0x2400   :  { %v2451_v20 = vmul.f32 %v2446_v49, %v2437_v2  ;;  %v2896_v49 = vld [vmem:[%s4420_s10] sm:$0xff] }
0x2402   :  { %2455 = vrot.lane.b32.xlu1 %v2451_v20, %s3603_s3  ;;  %v2897_v20 = vld [vmem:[%s4420_s10 + $0x8] sm:$0xff] }
0x2403   :  { %v3308_v22 = vpack.c.bf16 %v2897_v20, %v2896_v49 }
0x2420   :  { %v2448_v63 = vpop.permute.xlu0 %2447 }
0x2421   :  { %v2452_v42 = vmul.f32 %v2448_v63, %v2438_v56  ;;  %v3311_v63 = vpack.c.bf16 %v2899_v52, %v2898_v47 }
0x2423   :  { %2457 = vrot.lane.b32.xlu0 %v2452_v42, %s3603_s3 }
0x2474   :  { %v2456_v4 = vpop.permute.xlu1 %2455 }
0x2475   :  { %v2461_v57 = vadd.f32 %v2456_v4, %v2441_v38 }
0x2477   :  { %3481 = vtanh.f32 %v2461_v57 }
0x2481   :  { %v3482_v7 = vpop.eup %3481 }
0x2482   :  { %2467 = vrot.lane.b32.xlu1 %v3482_v7, %s3602_s4 }
0x2495   :  { %v2458_v23 = vpop.permute.xlu0 %2457 }
0x2496   :  { %v2462_v58 = vadd.f32 %v2458_v23, %v2442_v18 }
0x2498   :  { %3483 = vtanh.f32 %v2462_v58 }
0x24a2   :  { %v3484_v60 = vpop.eup %3483 }
0x24a3   :  { %2469 = vrot.lane.b32.xlu0 %v3484_v60, %s3602_s4  ;;  %v3060_v60 = vld [vmem:[%s4421_s11] ss:$0 sm:$0xff]  ;;  %s3606_s11 = smov 96  }
0x24f4   :  { %v2468_v61 = vpop.permute.xlu1 %2467 }
0x24f5   :  { %v2473_v53 = vmul.f32 %v2468_v61, %v2437_v2 }
0x24f7   :  { %2477 = vrot.lane.b32.xlu1 %v2473_v53, %s3603_s3 }
0x2515   :  { %v2470_v15 = vpop.permute.xlu0 %2469 }
0x2516   :  { %v2474_v6 = vmul.f32 %v2470_v15, %v2438_v56 }
0x2518   :  { %2479 = vrot.lane.b32.xlu0 %v2474_v6, %s3603_s3 }
0x2569   :  { %v2478_v0 = vpop.permute.xlu1 %2477 }
0x256a   :  { %3050 = vmatmul.mubr.msk.f32.vlgmr.msra.gmra.mrb[48].mxu0 %vm465_vm9, %v2478_v0 }
0x256b   :  { %2554 = vmatprep.mubr.f32.mxu0 %v3601_v1  ;;  %3302 = vmatpush1.bf16.msra.mxu0 %v4085_v28 }
0x256c   :  { %3304 = vmatprep.subr.bf16.mxu0 %v4107_v37 }
0x256f   :  { %3306 = vmatpush1.bf16.msra.mxu0 %v4115_v40 }
0x258a   :  { %v2480_v10 = vpop.permute.xlu0 %2479 }
0x258b   :  { %3051 = vmatmul.mubr.msk.f32.gmra.mrb[50].mxu0 %vm465_vm9, %v2480_v10 }
0x258c   :  { %2815 = vmatprep.mubr.f32.mxu0 %v3601_v1 }
0x263d   :  { %v2551_v13 = vpop.f32.mrb[48].mxu0 }
0x263e   :  { %v2561_v29 = vadd.f32 %v2551_v13, %v4211_v30  ;;  %v2553_v17 = vpop.f32.mrb[49].mxu0 }
0x2640   :  { %3485 = vtanh.f32 %v2561_v29  ;;  %v2564_v40 = vmul.f32 0.5, %v2561_v29 }
0x264a   :  { %v3486_v51 = vpop.eup %3485 }
0x264b   :  { %2578 = vrot.lane.b32.xlu1 %v3486_v51, %s3602_s4 }
0x265e   :  { %v2556_v50 = vpop.f32.mrb[50].mxu0 }
0x265f   :  { %v2557_v16 = vpop.f32.mrb[51].mxu0 }
0x2660   :  { %v2563_v28 = vadd.f32 %v2557_v16, %v4196_v34 }
0x2662   :  { %3487 = vtanh.f32 %v2563_v28  ;;  %v2565_v5 = vmul.f32 0.5, %v2563_v28 }
0x2663   :  { %3489 = vtanh.f32 %v2564_v40 }
0x2664   :  { %3491 = vtanh.f32 %v2565_v5 }
0x266c   :  { %v3488_v37 = vpop.eup %3487 }
0x266d   :  { %2580 = vrot.lane.b32.xlu0 %v3488_v37, %s3602_s4  ;;  %v3490_v19 = vpop.eup %3489 }
0x266e   :  { %v2568_v21 = vmul.f32 0.5, %v3490_v19  ;;  %v3492_v62 = vpop.eup %3491 }
0x266f   :  { %v2569_v32 = vmul.f32 0.5, %v3492_v62 }
0x2670   :  { %v2570_v26 = vadd.f32 0.5, %v2568_v21 }
0x2671   :  { %v2571_v35 = vadd.f32 0.5, %v2569_v32 }
0x2672   :  { %v2574_v33 = vmul.f32 %v2570_v26, %v2461_v57 }
0x2673   :  { %v2575_v46 = vmul.f32 %v2571_v35, %v2462_v58 }
0x26bd   :  { %v2579_v31 = vpop.permute.xlu1 %2578 }
0x26be   :  { %v2584_v30 = vmul.f32 %v2579_v31, %v2570_v26 }
0x26c0   :  { %2588 = vrot.lane.b32.xlu1 %v2584_v30, %s3603_s3 }
0x26df   :  { %v2581_v27 = vpop.permute.xlu0 %2580 }
0x26e0   :  { %v2585_v34 = vmul.f32 %v2581_v27, %v2571_v35 }
0x26e2   :  { %2590 = vrot.lane.b32.xlu0 %v2585_v34, %s3603_s3 }
0x2732   :  { %v2589_v41 = vpop.permute.xlu1 %2588 }
0x2733   :  { %v4319_v59 = vadd.f32 %v2589_v41, %v2574_v33 }
0x2735   :  { %3493 = vtanh.f32 %v4319_v59 }
0x273f   :  { %v3494_v45 = vpop.eup %3493 }
0x2740   :  { %2600 = vrot.lane.b32.xlu1 %v3494_v45, %s3602_s4 }
0x2754   :  { %v2591_v11 = vpop.permute.xlu0 %2590 }
0x2755   :  { %v4323_v12 = vadd.f32 %v2591_v11, %v2575_v46 }
0x2757   :  { %3495 = vtanh.f32 %v4323_v12 }
0x2761   :  { %v3496_v54 = vpop.eup %3495 }
0x2762   :  { %2602 = vrot.lane.b32.xlu0 %v3496_v54, %s3602_s4 }
0x27b2   :  { %v2601_v25 = vpop.permute.xlu1 %2600 }
0x27b3   :  { %v2606_v9 = vmul.f32 %v2601_v25, %v2570_v26 }
0x27b5   :  { %2610 = vrot.lane.b32.xlu1 %v2606_v9, %s3603_s3 }
0x27d4   :  { %v2603_v39 = vpop.permute.xlu0 %2602 }
0x27d5   :  { %v2607_v2 = vmul.f32 %v2603_v39, %v2571_v35 }
0x27d7   :  { %2612 = vrot.lane.b32.xlu0 %v2607_v2, %s3603_s3 }
0x2827   :  { %v2611_v56 = vpop.permute.xlu1 %2610 }
0x2828   :  { %3052 = vmatmul.mubr.msk.f32.vlgmr.msra.gmra.mrb[44].mxu1 %vm465_vm9, %v2611_v56 }
0x2829   :  { %3309 = vmatpush3.bf16.msra.mxu1 %v3308_v22  ;;  %2687 = vmatprep.mubr.f32.mxu1 %v3601_v1 }
0x282a   :  { %3310 = vmatprep.subr.bf16.mxu1 %v3604_v24 }
0x282d   :  { %3312 = vmatpush3.bf16.msra.mxu1 %v3311_v63 }
0x2849   :  { %v2613_v42 = vpop.permute.xlu0 %2612 }
0x284a   :  { %3053 = vmatmul.mubr.msk.f32.gmra.mrb[46].mxu1 %vm465_vm9, %v2613_v42 }
0x284b   :  { %3116 = vmatprep.mubr.msk.f32.mxu1 %vm3605_vm12, %v3601_v1 }
0x284e   :  { %3117 = vmatmul.mubr.msk.f32.vlgmr.msra.gmra.mrb[48].mxu1 %vm465_vm9, %v4238_v3 }
0x28fb   :  { %v2684_v38 = vpop.f32.mrb[44].mxu1 }
0x28fc   :  { %v2694_v4 = vadd.f32 %v2684_v38, %v4219_v36  ;;  %v2686_v57 = vpop.f32.mrb[45].mxu1 }
0x28fe   :  { %3497 = vtanh.f32 %v2694_v4 }
0x2908   :  { %v3498_v7 = vpop.eup %3497 }
0x2909   :  { %2711 = vrot.lane.b32.xlu1 %v3498_v7, %s3602_s4 }
0x291d   :  { %v2689_v18 = vpop.f32.mrb[46].mxu1 }
0x291e   :  { %v2690_v23 = vpop.f32.mrb[47].mxu1 }
0x291f   :  { %v2696_v58 = vadd.f32 %v2690_v23, %v4192_v14  ;;  %v2697_v14 = vmul.f32 0.5, %v2694_v4 }
0x2921   :  { %3499 = vtanh.f32 %v2696_v58  ;;  %v2973_v61 = vpop.f32.mrb[48].mxu1  ;;  %v2698_v16 = vmul.f32 0.5, %v2696_v58 }
0x2922   :  { %v2974_v53 = vadd.f32 %v3060_v60, %v2973_v61  ;;  %v3118_v3 = vpop.f32.mrb[49].mxu1 }
0x2924   :  { %v2977_v15 = vmul.f32 0.5, %v2974_v53 }
0x2926   :  { %3501 = vtanh.f32 %v2977_v15 }
0x2927   :  { %3503 = vtanh.f32 %v2697_v14 }
0x2928   :  { %3505 = vtanh.f32 %v2698_v16 }
0x292b   :  { %v3500_v36 = vpop.eup %3499 }
0x292c   :  { %2713 = vrot.lane.b32.xlu0 %v3500_v36, %s3602_s4 }
0x2930   :  { %v3502_v6 = vpop.eup %3501 }
0x2931   :  { %v2979_v0 = vmul.f32 0.5, %v3502_v6  ;;  %v3504_v13 = vpop.eup %3503 }
0x2932   :  { %v2701_v29 = vmul.f32 0.5, %v3504_v13  ;;  %v3506_v28 = vpop.eup %3505 }
0x2933   :  { %v2980_v10 = vadd.f32 0.5, %v2979_v0  ;;  %v2702_v37 = vmul.f32 0.5, %v3506_v28 }
0x2934   :  { %v2703_v17 = vadd.f32 0.5, %v2701_v29 }
0x2935   :  { %2981 = vst [vmem:[%s4424_s14] sm:$0xff] %v2980_v10  ;;  %v2704_v40 = vadd.f32 0.5, %v2702_v37 }
0x2936   :  { %v2707_v26 = vmul.f32 %v2703_v17, %v4319_v59 }
0x2937   :  { %v2708_v62 = vmul.f32 %v2704_v40, %v4323_v12 }
0x297b   :  { %v2712_v51 = vpop.permute.xlu1 %2711 }
0x297c   :  { %v2717_v50 = vmul.f32 %v2712_v51, %v2703_v17 }
0x297e   :  { %2721 = vrot.lane.b32.xlu1 %v2717_v50, %s3603_s3 }
0x299e   :  { %v2714_v19 = vpop.permute.xlu0 %2713 }
0x299f   :  { %v2718_v21 = vmul.f32 %v2714_v19, %v2704_v40 }
0x29a1   :  { %2723 = vrot.lane.b32.xlu0 %v2718_v21, %s3603_s3 }
0x29f0   :  { %v2722_v31 = vpop.permute.xlu1 %2721 }
0x29f1   :  { %v2727_v30 = vadd.f32 %v2722_v31, %v2707_v26 }
0x29f3   :  { %3507 = vtanh.f32 %v2727_v30 }
0x29fd   :  { %v3508_v5 = vpop.eup %3507 }
0x29fe   :  { %2733 = vrot.lane.b32.xlu1 %v3508_v5, %s3602_s4 }
0x2a13   :  { %v2724_v32 = vpop.permute.xlu0 %2723 }
0x2a14   :  { %v2728_v35 = vadd.f32 %v2724_v32, %v2708_v62 }
0x2a16   :  { %3509 = vtanh.f32 %v2728_v35 }
0x2a20   :  { %v3510_v27 = vpop.eup %3509 }
0x2a21   :  { %2735 = vrot.lane.b32.xlu0 %v3510_v27, %s3602_s4 }
0x2a70   :  { %v2734_v34 = vpop.permute.xlu1 %2733 }
0x2a71   :  { %v2739_v33 = vmul.f32 %v2734_v34, %v2703_v17 }
0x2a73   :  { %2743 = vrot.lane.b32.xlu1 %v2739_v33, %s3603_s3 }
0x2a93   :  { %v2736_v41 = vpop.permute.xlu0 %2735 }
0x2a94   :  { %v2740_v59 = vmul.f32 %v2736_v41, %v2704_v40 }
0x2a96   :  { %2745 = vrot.lane.b32.xlu0 %v2740_v59, %s3603_s3 }
0x2ae5   :  { %v2744_v45 = vpop.permute.xlu1 %2743 }
0x2ae6   :  { %3054 = vmatmul.mubr.msk.f32.vlgmr.msra.gmra.mrb[52].mxu0 %vm465_vm9, %v2744_v45 }
0x2ae7   :  { %2820 = vmatprep.mubr.f32.mxu0 %v3601_v1 }
0x2b08   :  { %v2746_v46 = vpop.permute.xlu0 %2745 }
0x2b09   :  { %3055 = vmatmul.mubr.msk.f32.gmra.mrb[54].mxu0 %vm465_vm9, %v2746_v46 }
0x2bb9   :  { %v2817_v11 = vpop.f32.mrb[52].mxu0 }
0x2bba   :  { %v2827_v12 = vadd.f32 %v2817_v11, %v4223_v43  ;;  %v2819_v54 = vpop.f32.mrb[53].mxu0 }
0x2bbc   :  { %3511 = vtanh.f32 %v2827_v12  ;;  %v2830_v1 = vmul.f32 0.5, %v2827_v12 }
0x2bc6   :  { %v3512_v24 = vpop.eup %3511 }
0x2bc7   :  { %2844 = vrot.lane.b32.xlu1 %v3512_v24, %s3602_s4 }
0x2bdc   :  { %v2822_v25 = vpop.f32.mrb[54].mxu0 }
0x2bdd   :  { %v2823_v9 = vpop.f32.mrb[55].mxu0 }
0x2bde   :  { %v2829_v39 = vadd.f32 %v2823_v9, %v4188_v8 }
0x2be0   :  { %3513 = vtanh.f32 %v2829_v39  ;;  %v2831_v52 = vmul.f32 0.5, %v2829_v39 }
0x2be1   :  { %3515 = vtanh.f32 %v2830_v1 }
0x2be2   :  { %3517 = vtanh.f32 %v2831_v52 }
0x2bea   :  { %v3514_v2 = vpop.eup %3513 }
0x2beb   :  { %2846 = vrot.lane.b32.xlu0 %v3514_v2, %s3602_s4  ;;  %v3516_v49 = vpop.eup %3515 }
0x2bec   :  { %v2834_v20 = vmul.f32 0.5, %v3516_v49  ;;  %v3518_v56 = vpop.eup %3517 }
0x2bed   :  { %v2835_v63 = vmul.f32 0.5, %v3518_v56 }
0x2bee   :  { %v2836_v22 = vadd.f32 0.5, %v2834_v20 }
0x2bef   :  { %v2837_v42 = vadd.f32 0.5, %v2835_v63 }
0x2bf0   :  { %v2840_v4 = vmul.f32 %v2836_v22, %v2727_v30 }
0x2bf1   :  { %v2841_v23 = vmul.f32 %v2837_v42, %v2728_v35 }
0x2c39   :  { %v2845_v47 = vpop.permute.xlu1 %2844 }
0x2c3a   :  { %v2850_v43 = vmul.f32 %v2845_v47, %v2836_v22 }
0x2c3c   :  { %2854 = vrot.lane.b32.xlu1 %v2850_v43, %s3603_s3 }
0x2c5d   :  { %v2847_v38 = vpop.permute.xlu0 %2846 }
0x2c5e   :  { %v2851_v8 = vmul.f32 %v2847_v38, %v2837_v42 }
0x2c60   :  { %2856 = vrot.lane.b32.xlu0 %v2851_v8, %s3603_s3 }
0x2cae   :  { %v2855_v57 = vpop.permute.xlu1 %2854 }
0x2caf   :  { %v2860_v7 = vadd.f32 %v2855_v57, %v2840_v4 }
0x2cb1   :  { %3519 = vtanh.f32 %v2860_v7 }
0x2cbb   :  { %v3520_v18 = vpop.eup %3519 }
0x2cbc   :  { %2866 = vrot.lane.b32.xlu1 %v3520_v18, %s3602_s4 }
0x2cc0   :  { %1587 = vrot.lane.b32.xlu1 %v4126_v44, %s3603_s3 }
0x2cc4   :  { %1596 = vrot.lane.b32.xlu1 %v4025_v55, %s3606_s11 }
0x2cd2   :  { %v2857_v58 = vpop.permute.xlu0 %2856 }
0x2cd3   :  { %v2861_v60 = vadd.f32 %v2857_v58, %v2841_v23 }
0x2cd5   :  { %3521 = vtanh.f32 %v2861_v60 }
0x2cdf   :  { %v3522_v61 = vpop.eup %3521 }
0x2ce0   :  { %2868 = vrot.lane.b32.xlu0 %v3522_v61, %s3602_s4 }
0x2ce4   :  { %1594 = vrot.lane.b32.xlu0 %v4013_v48, %s3606_s11 }
0x2d2e   :  { %v2867_v53 = vpop.permute.xlu1 %2866 }
0x2d2f   :  { %v2872_v3 = vmul.f32 %v2867_v53, %v2836_v22 }
0x2d31   :  { %2876 = vrot.lane.b32.xlu0 %v2872_v3, %s3603_s3 }
0x2d32   :  { %v1588_v15 = vpop.permute.xlu1 %1587 }
0x2d33   :  { %1591 = vst.msk [vmem:[%s4422_s12 + $0x8] sm:$0xff] %vm465_vm9, %v1588_v15 }
0x2d35   :  { %2887 = vrot.lane.b32.xlu0 %v2860_v7, %s3606_s11 }
0x2d36   :  { %v1597_v55 = vpop.permute.xlu1 %1596 }
0x2d37   :  { %1601 = vst.msk [vmem:[%s4423_s13 + $0x8] sm:$0xff] %vm465_vm9, %v1597_v55 }
0x2d52   :  { %v2869_v44 = vpop.permute.xlu0 %2868 }
0x2d53   :  { %v2873_v36 = vmul.f32 %v2869_v44, %v2837_v42 }
0x2d55   :  { %2878 = vrot.lane.b32.xlu1 %v2873_v36, %s3603_s3 }
0x2d56   :  { %v1595_v48 = vpop.permute.xlu0 %1594 }
0x2d57   :  { %1600 = vst.msk [vmem:[%s4423_s13] sm:$0xff] %vm465_vm9, %v1595_v48 }
0x2d59   :  { %2889 = vrot.lane.b32.xlu1 %v2861_v60, %s3606_s11 }
0x2da3   :  { %v2877_v6 = vpop.permute.xlu0 %2876 }
0x2da4   :  { %3056 = vst.msk [vmem:[%s4422_s12 + $0x10] sm:$0xff] %vm465_vm9, %v2877_v6 }
0x2da7   :  { %v2888_v0 = vpop.permute.xlu0 %2887 }
0x2da8   :  { %3058 = vst.msk [vmem:[%s4423_s13 + $0x10] sm:$0xff] %vm465_vm9, %v2888_v0 }
0x2dc7   :  { %v2879_v10 = vpop.permute.xlu1 %2878 }
0x2dc8   :  { %3057 = vst.msk [vmem:[%s4422_s12 + $0x18] sm:$0xff] %vm465_vm9, %v2879_v10 }
0x2dcb   :  { %v2890_v14 = vpop.permute.xlu1 %2889 }
0x2dcc   :  { %3059 = vst.msk [vmem:[%s4423_s13 + $0x18] sm:$0xff] %vm465_vm9, %v2890_v14 }
0x2dcd   :  { %2994 = vsyncpa [#allocation5], 1 }
0x2dce   :  { %2995 = vsyncpa [#allocation7], 1 }

</bundles_post_ra>
